<compile_context>
chip_gen: v7x
topology: tpu7x:2x2x1
jax: 0.10.0
libtpu: 0.0.40
codegen_flags: <defaults>
</compile_context>

<pallas_src>
import functools

import jax
import jax.numpy as jnp
from jax.experimental import pallas as pl
from jax.experimental.pallas import tpu as pltpu


# ----------------------------------------------------------------------------
# Fused double-conv kernel: (conv3x3 + bias + ReLU) x 2, one image per step.
# ----------------------------------------------------------------------------
def _double_conv_kernel(x_ref, w1_ref, b1_ref, w2t_ref, b2_ref, o_ref,
                        xp1_ref, xp2_ref, col1_ref, col2_ref,
                        *, H, W, Cin, Cmid, Cout):
    HW = H * W
    f32 = jnp.float32

    def zero_halo(xp, C):
        # Zero only the 1-pixel border; the interior is fully overwritten.
        dt = xp.dtype
        xp[pl.ds(0, 1), :, :] = jnp.zeros((1, W + 2, C), dt)          # top
        xp[pl.ds(H + 1, 1), :, :] = jnp.zeros((1, W + 2, C), dt)      # bottom
        xp[pl.ds(1, H), pl.ds(0, 1), :] = jnp.zeros((H, 1, C), dt)    # left
        xp[pl.ds(1, H), pl.ds(W + 1, 1), :] = jnp.zeros((H, 1, C), dt)  # right

    zero_halo(xp1_ref, Cin)
    zero_halo(xp2_ref, Cmid)

    # ---- conv1: build (HW, 9*Cin) im2col once, one MXU matmul --------------
    xp1_ref[pl.ds(1, H), pl.ds(1, W), :] = x_ref[0].astype(xp1_ref.dtype)
    for k in range(9):
        ky, kx = k // 3, k % 3
        win = xp1_ref[pl.ds(ky, H), pl.ds(kx, W), :].reshape(HW, Cin)
        col1_ref[:, pl.ds(k * Cin, Cin)] = win
    h = jnp.dot(col1_ref[...], w1_ref[...],
                preferred_element_type=f32)                  # (HW, Cmid) f32
    h = jnp.maximum(h + b1_ref[...], 0.0)                    # bias + ReLU (f32)

    # ---- conv2: build (HW, 9*Cmid) im2col (bf16), one NT MXU matmul --------
    # Mid activation stays in VMEM; never round-trips to HBM.
    xp2_ref[pl.ds(1, H), pl.ds(1, W), :] = h.reshape(H, W, Cmid)
    for k in range(9):
        ky, kx = k // 3, k % 3
        win = xp2_ref[pl.ds(ky, H), pl.ds(kx, W), :].reshape(HW, Cmid)
        col2_ref[:, pl.ds(k * Cmid, Cmid)] = win.astype(col2_ref.dtype)
    # y_t[c, p] = sum_j w2t[c, j] * col2[p, j]  -> (Cout, HW), lane-dense.
    y_t = jax.lax.dot_general(
        w2t_ref[...], col2_ref[...],
        dimension_numbers=(((1,), (1,)), ((), ())),
        preferred_element_type=f32)                          # (Cout, HW) f32
    y_t = jnp.maximum(y_t + b2_ref[...], 0.0)                # bias + ReLU (f32)
    o_ref[0] = y_t.astype(o_ref.dtype)                       # unmasked stores


# ----------------------------------------------------------------------------
# Wrapper: NCHW in/out (PyTorch convention), one fused pallas_call.
# ----------------------------------------------------------------------------
def inconv_forward(x_nchw, params):
    w1, b1 = params["w1"], params["b1"]    # (3,3,Cin,Cmid), (Cmid,)
    w2, b2 = params["w2"], params["b2"]    # (3,3,Cmid,Cout), (Cout,)
    N, Cin, H, W = x_nchw.shape
    Cmid = w1.shape[-1]
    Cout = w2.shape[-1]
    HW = H * W

    x_nhwc = jnp.transpose(x_nchw, (0, 2, 3, 1))             # NCHW -> NHWC

    # 2D, VMEM-resident weight/bias operands.  Row order (k, cin) of the
    # reshaped weights matches the im2col column order built in-kernel.
    w1_2d = w1.reshape(9 * Cin, Cmid).astype(jnp.float32)            # (36, Cmid)
    w2_t = w2.reshape(9 * Cmid, Cout).T.astype(jnp.bfloat16)         # (Cout, 288)
    b1_2d = b1.reshape(1, Cmid).astype(jnp.float32)
    b2_2d = b2.reshape(Cout, 1).astype(jnp.float32)

    kern = functools.partial(_double_conv_kernel,
                             H=H, W=W, Cin=Cin, Cmid=Cmid, Cout=Cout)

    out = pl.pallas_call(
        kern,
        # Output is channels-first per image -> already NCHW after a reshape.
        out_shape=jax.ShapeDtypeStruct((N, Cout, HW), x_nchw.dtype),
        grid=(N,),
        in_specs=[
            # activation tile: one image per grid step
            pl.BlockSpec((1, H, W, Cin), lambda n: (n, 0, 0, 0)),
            # weights / biases: constant block index -> fetched once, resident
            pl.BlockSpec((9 * Cin, Cmid), lambda n: (0, 0)),
            pl.BlockSpec((1, Cmid), lambda n: (0, 0)),
            pl.BlockSpec((Cout, 9 * Cmid), lambda n: (0, 0)),
            pl.BlockSpec((Cout, 1), lambda n: (0, 0)),
        ],
        out_specs=pl.BlockSpec((1, Cout, HW), lambda n: (n, 0, 0)),
        scratch_shapes=[
            pltpu.VMEM((H + 2, W + 2, Cin), jnp.float32),    # padded input
            pltpu.VMEM((H + 2, W + 2, Cmid), jnp.float32),   # padded mid act
            pltpu.VMEM((HW, 9 * Cin), jnp.float32),          # im2col, conv1
            pltpu.VMEM((HW, 9 * Cmid), jnp.bfloat16),        # im2col, conv2
        ],
        compiler_params=pltpu.CompilerParams(
            dimension_semantics=("parallel",)),
    )(x_nhwc, w1_2d, b1_2d, w2_t, b2_2d)

    return out.reshape(N, Cout, H, W)                        # already NCHW


# ----------------------------------------------------------------------------
# Pure-JAX reference (for correctness check)
# ----------------------------------------------------------------------------
def _conv_ref(x, w, b):
    y = jax.lax.conv_general_dilated(
        x, w, window_strides=(1, 1), padding="SAME",
        dimension_numbers=("NHWC", "HWIO", "NHWC"))
    return y + b.reshape(1, 1, 1, -1)


def inconv_ref(x_nchw, params):
    x = jnp.transpose(x_nchw, (0, 2, 3, 1))
    h = jnp.maximum(_conv_ref(x, params["w1"], params["b1"]), 0.0)
    h = jnp.maximum(_conv_ref(h, params["w2"], params["b2"]), 0.0)
    return jnp.transpose(h, (0, 3, 1, 2))


# ----------------------------------------------------------------------------
# Deterministic parameter init (Conv2d-style fan-in scaling)
# ----------------------------------------------------------------------------
def init_params(key, in_ch, out_ch, ksize=3):
    def conv_init(k, K, cin, cout):
        kw, kb = jax.random.split(k)
        scale = 1.0 / jnp.sqrt(K * K * cin)
        w = jax.random.normal(kw, (K, K, cin, cout), jnp.float32) * scale
        b = jax.random.uniform(kb, (cout,), jnp.float32,
                               minval=-scale, maxval=scale)
        return w, b

    k1, k2 = jax.random.split(key)
    w1, b1 = conv_init(k1, ksize, in_ch, out_ch)
    w2, b2 = conv_init(k2, ksize, out_ch, out_ch)
    return {"w1": w1, "b1": b1, "w2": w2, "b2": b2}


if __name__ == "__main__":
    # inconv(in_ch=4, out_ch=32) on a (2, 4, 16, 16) input.
    N, IN_CH, OUT_CH, H, W = 2, 4, 32, 16, 16

    key = jax.random.PRNGKey(0)
    kx, kp = jax.random.split(key)
    x = jax.random.normal(kx, (N, IN_CH, H, W), jnp.float32)
    params = init_params(kp, IN_CH, OUT_CH)

    out = jax.block_until_ready(jax.jit(inconv_forward)(x, params))
    assert out.shape == (N, OUT_CH, H, W), out.shape

    ref = jax.block_until_ready(inconv_ref(x, params))
    err = float(jnp.max(jnp.abs(out - ref)))
    assert jnp.allclose(out, ref, atol=5e-2, rtol=5e-2), err

    print("KERNEL_OK")
</pallas_src>

<mosaic_0001>
module attributes {stable_mosaic.version = 11 : i64} {
  func.func @_double_conv_kernel(%arg0: i32, %arg1: memref<1x16x16x4xf32, #tpu.memory_space<vmem>>, %arg2: memref<36x32xf32, #tpu.memory_space<vmem>>, %arg3: memref<1x32xf32, #tpu.memory_space<vmem>>, %arg4: memref<32x288xbf16, #tpu.memory_space<vmem>>, %arg5: memref<32x1xf32, #tpu.memory_space<vmem>>, %arg6: memref<1x32x256xf32, #tpu.memory_space<vmem>>, %arg7: memref<18x18x4xf32, #tpu.memory_space<vmem>>, %arg8: memref<18x18x32xf32, #tpu.memory_space<vmem>>, %arg9: memref<256x36xf32, #tpu.memory_space<vmem>>, %arg10: memref<256x288xbf16, #tpu.memory_space<vmem>>) attributes {dimension_semantics = [#tpu.dimension_semantics<parallel>], iteration_bounds = array<i64: 2>, scalar_prefetch = 0 : i64, scratch_operands = 4 : i64, tpu.core_type = #tpu.core_type<tc>, window_params = [{transform_indices = @transform_0, window_bounds = array<i64: 1, 16, 16, 4>}, {pipeline_mode = #tpu.pipeline_mode<synchronous>, transform_indices = @transform_1, window_bounds = array<i64: 36, 32>}, {pipeline_mode = #tpu.pipeline_mode<synchronous>, transform_indices = @transform_2, window_bounds = array<i64: 1, 32>}, {pipeline_mode = #tpu.pipeline_mode<synchronous>, transform_indices = @transform_3, window_bounds = array<i64: 32, 288>}, {pipeline_mode = #tpu.pipeline_mode<synchronous>, transform_indices = @transform_4, window_bounds = array<i64: 32, 1>}, {transform_indices = @transform_5, window_bounds = array<i64: 1, 32, 256>}]} {
    %cst = arith.constant 0.000000e+00 : f32
    %0 = vector.broadcast %cst : f32 to vector<1x18x4xf32>
    %c0 = arith.constant 0 : index
    %c0_0 = arith.constant 0 : index
    %c0_1 = arith.constant 0 : index
    %1 = vector.load %arg7[%c0, %c0_0, %c0_1] : memref<18x18x4xf32, #tpu.memory_space<vmem>>, vector<1x18x4xf32>
    tpu.vector_store %arg7[%c0, %c0_0, %c0_1], %0 {strides = array<i32>} : memref<18x18x4xf32, #tpu.memory_space<vmem>>, vector<1x18x4xf32>,
    %cst_2 = arith.constant 0.000000e+00 : f32
    %2 = vector.broadcast %cst_2 : f32 to vector<1x18x4xf32>
    %c17 = arith.constant 17 : index
    %c0_3 = arith.constant 0 : index
    %c0_4 = arith.constant 0 : index
    %3 = vector.load %arg7[%c17, %c0_3, %c0_4] : memref<18x18x4xf32, #tpu.memory_space<vmem>>, vector<1x18x4xf32>
    tpu.vector_store %arg7[%c17, %c0_3, %c0_4], %2 {strides = array<i32>} : memref<18x18x4xf32, #tpu.memory_space<vmem>>, vector<1x18x4xf32>,
    %cst_5 = arith.constant 0.000000e+00 : f32
    %4 = vector.broadcast %cst_5 : f32 to vector<16x1x4xf32>
    %c1 = arith.constant 1 : index
    %c0_6 = arith.constant 0 : index
    %c0_7 = arith.constant 0 : index
    %5 = vector.load %arg7[%c1, %c0_6, %c0_7] : memref<18x18x4xf32, #tpu.memory_space<vmem>>, vector<16x1x4xf32>
    tpu.vector_store %arg7[%c1, %c0_6, %c0_7], %4 {strides = array<i32>} : memref<18x18x4xf32, #tpu.memory_space<vmem>>, vector<16x1x4xf32>,
    %cst_8 = arith.constant 0.000000e+00 : f32
    %6 = vector.broadcast %cst_8 : f32 to vector<16x1x4xf32>
    %c1_9 = arith.constant 1 : index
    %c17_10 = arith.constant 17 : index
    %c0_11 = arith.constant 0 : index
    %7 = vector.load %arg7[%c1_9, %c17_10, %c0_11] : memref<18x18x4xf32, #tpu.memory_space<vmem>>, vector<16x1x4xf32>
    tpu.vector_store %arg7[%c1_9, %c17_10, %c0_11], %6 {strides = array<i32>} : memref<18x18x4xf32, #tpu.memory_space<vmem>>, vector<16x1x4xf32>,
    %cst_12 = arith.constant 0.000000e+00 : f32
    %8 = vector.broadcast %cst_12 : f32 to vector<1x18x32xf32>
    %c0_13 = arith.constant 0 : index
    %c0_14 = arith.constant 0 : index
    %c0_15 = arith.constant 0 : index
    %9 = vector.load %arg8[%c0_13, %c0_14, %c0_15] : memref<18x18x32xf32, #tpu.memory_space<vmem>>, vector<1x18x32xf32>
    tpu.vector_store %arg8[%c0_13, %c0_14, %c0_15], %8 {strides = array<i32>} : memref<18x18x32xf32, #tpu.memory_space<vmem>>, vector<1x18x32xf32>,
    %cst_16 = arith.constant 0.000000e+00 : f32
    %10 = vector.broadcast %cst_16 : f32 to vector<1x18x32xf32>
    %c17_17 = arith.constant 17 : index
    %c0_18 = arith.constant 0 : index
    %c0_19 = arith.constant 0 : index
    %11 = vector.load %arg8[%c17_17, %c0_18, %c0_19] : memref<18x18x32xf32, #tpu.memory_space<vmem>>, vector<1x18x32xf32>
    tpu.vector_store %arg8[%c17_17, %c0_18, %c0_19], %10 {strides = array<i32>} : memref<18x18x32xf32, #tpu.memory_space<vmem>>, vector<1x18x32xf32>,
    %cst_20 = arith.constant 0.000000e+00 : f32
    %12 = vector.broadcast %cst_20 : f32 to vector<16x1x32xf32>
    %c1_21 = arith.constant 1 : index
    %c0_22 = arith.constant 0 : index
    %c0_23 = arith.constant 0 : index
    %13 = vector.load %arg8[%c1_21, %c0_22, %c0_23] : memref<18x18x32xf32, #tpu.memory_space<vmem>>, vector<16x1x32xf32>
    tpu.vector_store %arg8[%c1_21, %c0_22, %c0_23], %12 {strides = array<i32>} : memref<18x18x32xf32, #tpu.memory_space<vmem>>, vector<16x1x32xf32>,
    %cst_24 = arith.constant 0.000000e+00 : f32
    %14 = vector.broadcast %cst_24 : f32 to vector<16x1x32xf32>
    %c1_25 = arith.constant 1 : index
    %c17_26 = arith.constant 17 : index
    %c0_27 = arith.constant 0 : index
    %15 = vector.load %arg8[%c1_25, %c17_26, %c0_27] : memref<18x18x32xf32, #tpu.memory_space<vmem>>, vector<16x1x32xf32>
    tpu.vector_store %arg8[%c1_25, %c17_26, %c0_27], %14 {strides = array<i32>} : memref<18x18x32xf32, #tpu.memory_space<vmem>>, vector<16x1x32xf32>,
    %c0_28 = arith.constant 0 : index
    %c0_29 = arith.constant 0 : index
    %c0_30 = arith.constant 0 : index
    %c0_31 = arith.constant 0 : index
    %16 = vector.load %arg1[%c0_28, %c0_29, %c0_30, %c0_31] : memref<1x16x16x4xf32, #tpu.memory_space<vmem>>, vector<1x16x16x4xf32>
    %17 = vector.shape_cast %16 : vector<1x16x16x4xf32> to vector<16x16x4xf32>
    %c1_32 = arith.constant 1 : index
    %c1_33 = arith.constant 1 : index
    %c0_34 = arith.constant 0 : index
    %18 = vector.load %arg7[%c1_32, %c1_33, %c0_34] : memref<18x18x4xf32, #tpu.memory_space<vmem>>, vector<16x16x4xf32>
    tpu.vector_store %arg7[%c1_32, %c1_33, %c0_34], %17 {strides = array<i32>} : memref<18x18x4xf32, #tpu.memory_space<vmem>>, vector<16x16x4xf32>,
    %c0_35 = arith.constant 0 : index
    %c0_36 = arith.constant 0 : index
    %c0_37 = arith.constant 0 : index
    %19 = vector.load %arg7[%c0_35, %c0_36, %c0_37] : memref<18x18x4xf32, #tpu.memory_space<vmem>>, vector<16x16x4xf32>
    %20 = vector.shape_cast %19 : vector<16x16x4xf32> to vector<256x4xf32>
    %c0_38 = arith.constant 0 : index
    %c0_39 = arith.constant 0 : index
    %21 = vector.load %arg9[%c0_38, %c0_39] : memref<256x36xf32, #tpu.memory_space<vmem>>, vector<256x4xf32>
    tpu.vector_store %arg9[%c0_38, %c0_39], %20 {strides = array<i32>} : memref<256x36xf32, #tpu.memory_space<vmem>>, vector<256x4xf32>,
    %c0_40 = arith.constant 0 : index
    %c1_41 = arith.constant 1 : index
    %c0_42 = arith.constant 0 : index
    %22 = vector.load %arg7[%c0_40, %c1_41, %c0_42] : memref<18x18x4xf32, #tpu.memory_space<vmem>>, vector<16x16x4xf32>
    %23 = vector.shape_cast %22 : vector<16x16x4xf32> to vector<256x4xf32>
    %c0_43 = arith.constant 0 : index
    %c4 = arith.constant 4 : index
    %24 = vector.load %arg9[%c0_43, %c4] : memref<256x36xf32, #tpu.memory_space<vmem>>, vector<256x4xf32>
    tpu.vector_store %arg9[%c0_43, %c4], %23 {strides = array<i32>} : memref<256x36xf32, #tpu.memory_space<vmem>>, vector<256x4xf32>,
    %c0_44 = arith.constant 0 : index
    %c2 = arith.constant 2 : index
    %c0_45 = arith.constant 0 : index
    %25 = vector.load %arg7[%c0_44, %c2, %c0_45] : memref<18x18x4xf32, #tpu.memory_space<vmem>>, vector<16x16x4xf32>
    %26 = vector.shape_cast %25 : vector<16x16x4xf32> to vector<256x4xf32>
    %c0_46 = arith.constant 0 : index
    %c8 = arith.constant 8 : index
    %27 = vector.load %arg9[%c0_46, %c8] : memref<256x36xf32, #tpu.memory_space<vmem>>, vector<256x4xf32>
    tpu.vector_store %arg9[%c0_46, %c8], %26 {strides = array<i32>} : memref<256x36xf32, #tpu.memory_space<vmem>>, vector<256x4xf32>,
    %c1_47 = arith.constant 1 : index
    %c0_48 = arith.constant 0 : index
    %c0_49 = arith.constant 0 : index
    %28 = vector.load %arg7[%c1_47, %c0_48, %c0_49] : memref<18x18x4xf32, #tpu.memory_space<vmem>>, vector<16x16x4xf32>
    %29 = vector.shape_cast %28 : vector<16x16x4xf32> to vector<256x4xf32>
    %c0_50 = arith.constant 0 : index
    %c12 = arith.constant 12 : index
    %30 = vector.load %arg9[%c0_50, %c12] : memref<256x36xf32, #tpu.memory_space<vmem>>, vector<256x4xf32>
    tpu.vector_store %arg9[%c0_50, %c12], %29 {strides = array<i32>} : memref<256x36xf32, #tpu.memory_space<vmem>>, vector<256x4xf32>,
    %c1_51 = arith.constant 1 : index
    %c1_52 = arith.constant 1 : index
    %c0_53 = arith.constant 0 : index
    %31 = vector.load %arg7[%c1_51, %c1_52, %c0_53] : memref<18x18x4xf32, #tpu.memory_space<vmem>>, vector<16x16x4xf32>
    %32 = vector.shape_cast %31 : vector<16x16x4xf32> to vector<256x4xf32>
    %c0_54 = arith.constant 0 : index
    %c16 = arith.constant 16 : index
    %33 = vector.load %arg9[%c0_54, %c16] : memref<256x36xf32, #tpu.memory_space<vmem>>, vector<256x4xf32>
    tpu.vector_store %arg9[%c0_54, %c16], %32 {strides = array<i32>} : memref<256x36xf32, #tpu.memory_space<vmem>>, vector<256x4xf32>,
    %c1_55 = arith.constant 1 : index
    %c2_56 = arith.constant 2 : index
    %c0_57 = arith.constant 0 : index
    %34 = vector.load %arg7[%c1_55, %c2_56, %c0_57] : memref<18x18x4xf32, #tpu.memory_space<vmem>>, vector<16x16x4xf32>
    %35 = vector.shape_cast %34 : vector<16x16x4xf32> to vector<256x4xf32>
    %c0_58 = arith.constant 0 : index
    %c20 = arith.constant 20 : index
    %36 = vector.load %arg9[%c0_58, %c20] : memref<256x36xf32, #tpu.memory_space<vmem>>, vector<256x4xf32>
    tpu.vector_store %arg9[%c0_58, %c20], %35 {strides = array<i32>} : memref<256x36xf32, #tpu.memory_space<vmem>>, vector<256x4xf32>,
    %c2_59 = arith.constant 2 : index
    %c0_60 = arith.constant 0 : index
    %c0_61 = arith.constant 0 : index
    %37 = vector.load %arg7[%c2_59, %c0_60, %c0_61] : memref<18x18x4xf32, #tpu.memory_space<vmem>>, vector<16x16x4xf32>
    %38 = vector.shape_cast %37 : vector<16x16x4xf32> to vector<256x4xf32>
    %c0_62 = arith.constant 0 : index
    %c24 = arith.constant 24 : index
    %39 = vector.load %arg9[%c0_62, %c24] : memref<256x36xf32, #tpu.memory_space<vmem>>, vector<256x4xf32>
    tpu.vector_store %arg9[%c0_62, %c24], %38 {strides = array<i32>} : memref<256x36xf32, #tpu.memory_space<vmem>>, vector<256x4xf32>,
    %c2_63 = arith.constant 2 : index
    %c1_64 = arith.constant 1 : index
    %c0_65 = arith.constant 0 : index
    %40 = vector.load %arg7[%c2_63, %c1_64, %c0_65] : memref<18x18x4xf32, #tpu.memory_space<vmem>>, vector<16x16x4xf32>
    %41 = vector.shape_cast %40 : vector<16x16x4xf32> to vector<256x4xf32>
    %c0_66 = arith.constant 0 : index
    %c28 = arith.constant 28 : index
    %42 = vector.load %arg9[%c0_66, %c28] : memref<256x36xf32, #tpu.memory_space<vmem>>, vector<256x4xf32>
    tpu.vector_store %arg9[%c0_66, %c28], %41 {strides = array<i32>} : memref<256x36xf32, #tpu.memory_space<vmem>>, vector<256x4xf32>,
    %c2_67 = arith.constant 2 : index
    %c2_68 = arith.constant 2 : index
    %c0_69 = arith.constant 0 : index
    %43 = vector.load %arg7[%c2_67, %c2_68, %c0_69] : memref<18x18x4xf32, #tpu.memory_space<vmem>>, vector<16x16x4xf32>
    %44 = vector.shape_cast %43 : vector<16x16x4xf32> to vector<256x4xf32>
    %c0_70 = arith.constant 0 : index
    %c32 = arith.constant 32 : index
    %45 = vector.load %arg9[%c0_70, %c32] : memref<256x36xf32, #tpu.memory_space<vmem>>, vector<256x4xf32>
    tpu.vector_store %arg9[%c0_70, %c32], %44 {strides = array<i32>} : memref<256x36xf32, #tpu.memory_space<vmem>>, vector<256x4xf32>,
    %c0_71 = arith.constant 0 : index
    %c0_72 = arith.constant 0 : index
    %46 = vector.load %arg9[%c0_71, %c0_72] : memref<256x36xf32, #tpu.memory_space<vmem>>, vector<256x36xf32>
    %c0_73 = arith.constant 0 : index
    %c0_74 = arith.constant 0 : index
    %47 = vector.load %arg2[%c0_73, %c0_74] : memref<36x32xf32, #tpu.memory_space<vmem>>, vector<36x32xf32>
    %cst_75 = arith.constant dense<0.000000e+00> : vector<256x32xf32>
    %48 = tpu.matmul %46, %47, %cst_75 {dimension_numbers = #tpu.dot_dimension_numbers<[1], [0], [0], [1], [0, 0, 1, 1], [], []>} : vector<256x36xf32>, vector<36x32xf32>, vector<256x32xf32> -> vector<256x32xf32>
    %c0_76 = arith.constant 0 : index
    %c0_77 = arith.constant 0 : index
    %49 = vector.load %arg3[%c0_76, %c0_77] : memref<1x32xf32, #tpu.memory_space<vmem>>, vector<1x32xf32>
    %50 = vector.broadcast %49 : vector<1x32xf32> to vector<256x32xf32>
    %51 = arith.addf %48, %50 : vector<256x32xf32>
    %cst_78 = arith.constant 0.000000e+00 : f32
    %52 = vector.broadcast %cst_78 : f32 to vector<256x32xf32>
    %53 = arith.maximumf %51, %52 : vector<256x32xf32>
    %54 = vector.shape_cast %53 : vector<256x32xf32> to vector<16x16x32xf32>
    %c1_79 = arith.constant 1 : index
    %c1_80 = arith.constant 1 : index
    %c0_81 = arith.constant 0 : index
    %55 = vector.load %arg8[%c1_79, %c1_80, %c0_81] : memref<18x18x32xf32, #tpu.memory_space<vmem>>, vector<16x16x32xf32>
    tpu.vector_store %arg8[%c1_79, %c1_80, %c0_81], %54 {strides = array<i32>} : memref<18x18x32xf32, #tpu.memory_space<vmem>>, vector<16x16x32xf32>,
    %c0_82 = arith.constant 0 : index
    %c0_83 = arith.constant 0 : index
    %c0_84 = arith.constant 0 : index
    %56 = vector.load %arg8[%c0_82, %c0_83, %c0_84] : memref<18x18x32xf32, #tpu.memory_space<vmem>>, vector<16x16x32xf32>
    %57 = vector.shape_cast %56 : vector<16x16x32xf32> to vector<256x32xf32>
    %58 = arith.truncf %57 : vector<256x32xf32> to vector<256x32xbf16>
    %c0_85 = arith.constant 0 : index
    %c0_86 = arith.constant 0 : index
    %59 = vector.load %arg10[%c0_85, %c0_86] : memref<256x288xbf16, #tpu.memory_space<vmem>>, vector<256x32xbf16>
    tpu.vector_store %arg10[%c0_85, %c0_86], %58 {strides = array<i32>} : memref<256x288xbf16, #tpu.memory_space<vmem>>, vector<256x32xbf16>,
    %c0_87 = arith.constant 0 : index
    %c1_88 = arith.constant 1 : index
    %c0_89 = arith.constant 0 : index
    %60 = vector.load %arg8[%c0_87, %c1_88, %c0_89] : memref<18x18x32xf32, #tpu.memory_space<vmem>>, vector<16x16x32xf32>
    %61 = vector.shape_cast %60 : vector<16x16x32xf32> to vector<256x32xf32>
    %62 = arith.truncf %61 : vector<256x32xf32> to vector<256x32xbf16>
    %c0_90 = arith.constant 0 : index
    %c32_91 = arith.constant 32 : index
    %63 = vector.load %arg10[%c0_90, %c32_91] : memref<256x288xbf16, #tpu.memory_space<vmem>>, vector<256x32xbf16>
    tpu.vector_store %arg10[%c0_90, %c32_91], %62 {strides = array<i32>} : memref<256x288xbf16, #tpu.memory_space<vmem>>, vector<256x32xbf16>,
    %c0_92 = arith.constant 0 : index
    %c2_93 = arith.constant 2 : index
    %c0_94 = arith.constant 0 : index
    %64 = vector.load %arg8[%c0_92, %c2_93, %c0_94] : memref<18x18x32xf32, #tpu.memory_space<vmem>>, vector<16x16x32xf32>
    %65 = vector.shape_cast %64 : vector<16x16x32xf32> to vector<256x32xf32>
    %66 = arith.truncf %65 : vector<256x32xf32> to vector<256x32xbf16>
    %c0_95 = arith.constant 0 : index
    %c64 = arith.constant 64 : index
    %67 = vector.load %arg10[%c0_95, %c64] : memref<256x288xbf16, #tpu.memory_space<vmem>>, vector<256x32xbf16>
    tpu.vector_store %arg10[%c0_95, %c64], %66 {strides = array<i32>} : memref<256x288xbf16, #tpu.memory_space<vmem>>, vector<256x32xbf16>,
    %c1_96 = arith.constant 1 : index
    %c0_97 = arith.constant 0 : index
    %c0_98 = arith.constant 0 : index
    %68 = vector.load %arg8[%c1_96, %c0_97, %c0_98] : memref<18x18x32xf32, #tpu.memory_space<vmem>>, vector<16x16x32xf32>
    %69 = vector.shape_cast %68 : vector<16x16x32xf32> to vector<256x32xf32>
    %70 = arith.truncf %69 : vector<256x32xf32> to vector<256x32xbf16>
    %c0_99 = arith.constant 0 : index
    %c96 = arith.constant 96 : index
    %71 = vector.load %arg10[%c0_99, %c96] : memref<256x288xbf16, #tpu.memory_space<vmem>>, vector<256x32xbf16>
    tpu.vector_store %arg10[%c0_99, %c96], %70 {strides = array<i32>} : memref<256x288xbf16, #tpu.memory_space<vmem>>, vector<256x32xbf16>,
    %c1_100 = arith.constant 1 : index
    %c1_101 = arith.constant 1 : index
    %c0_102 = arith.constant 0 : index
    %72 = vector.load %arg8[%c1_100, %c1_101, %c0_102] : memref<18x18x32xf32, #tpu.memory_space<vmem>>, vector<16x16x32xf32>
    %73 = vector.shape_cast %72 : vector<16x16x32xf32> to vector<256x32xf32>
    %74 = arith.truncf %73 : vector<256x32xf32> to vector<256x32xbf16>
    %c0_103 = arith.constant 0 : index
    %c128 = arith.constant 128 : index
    %75 = vector.load %arg10[%c0_103, %c128] : memref<256x288xbf16, #tpu.memory_space<vmem>>, vector<256x32xbf16>
    tpu.vector_store %arg10[%c0_103, %c128], %74 {strides = array<i32>} : memref<256x288xbf16, #tpu.memory_space<vmem>>, vector<256x32xbf16>,
    %c1_104 = arith.constant 1 : index
    %c2_105 = arith.constant 2 : index
    %c0_106 = arith.constant 0 : index
    %76 = vector.load %arg8[%c1_104, %c2_105, %c0_106] : memref<18x18x32xf32, #tpu.memory_space<vmem>>, vector<16x16x32xf32>
    %77 = vector.shape_cast %76 : vector<16x16x32xf32> to vector<256x32xf32>
    %78 = arith.truncf %77 : vector<256x32xf32> to vector<256x32xbf16>
    %c0_107 = arith.constant 0 : index
    %c160 = arith.constant 160 : index
    %79 = vector.load %arg10[%c0_107, %c160] : memref<256x288xbf16, #tpu.memory_space<vmem>>, vector<256x32xbf16>
    tpu.vector_store %arg10[%c0_107, %c160], %78 {strides = array<i32>} : memref<256x288xbf16, #tpu.memory_space<vmem>>, vector<256x32xbf16>,
    %c2_108 = arith.constant 2 : index
    %c0_109 = arith.constant 0 : index
    %c0_110 = arith.constant 0 : index
    %80 = vector.load %arg8[%c2_108, %c0_109, %c0_110] : memref<18x18x32xf32, #tpu.memory_space<vmem>>, vector<16x16x32xf32>
    %81 = vector.shape_cast %80 : vector<16x16x32xf32> to vector<256x32xf32>
    %82 = arith.truncf %81 : vector<256x32xf32> to vector<256x32xbf16>
    %c0_111 = arith.constant 0 : index
    %c192 = arith.constant 192 : index
    %83 = vector.load %arg10[%c0_111, %c192] : memref<256x288xbf16, #tpu.memory_space<vmem>>, vector<256x32xbf16>
    tpu.vector_store %arg10[%c0_111, %c192], %82 {strides = array<i32>} : memref<256x288xbf16, #tpu.memory_space<vmem>>, vector<256x32xbf16>,
    %c2_112 = arith.constant 2 : index
    %c1_113 = arith.constant 1 : index
    %c0_114 = arith.constant 0 : index
    %84 = vector.load %arg8[%c2_112, %c1_113, %c0_114] : memref<18x18x32xf32, #tpu.memory_space<vmem>>, vector<16x16x32xf32>
    %85 = vector.shape_cast %84 : vector<16x16x32xf32> to vector<256x32xf32>
    %86 = arith.truncf %85 : vector<256x32xf32> to vector<256x32xbf16>
    %c0_115 = arith.constant 0 : index
    %c224 = arith.constant 224 : index
    %87 = vector.load %arg10[%c0_115, %c224] : memref<256x288xbf16, #tpu.memory_space<vmem>>, vector<256x32xbf16>
    tpu.vector_store %arg10[%c0_115, %c224], %86 {strides = array<i32>} : memref<256x288xbf16, #tpu.memory_space<vmem>>, vector<256x32xbf16>,
    %c2_116 = arith.constant 2 : index
    %c2_117 = arith.constant 2 : index
    %c0_118 = arith.constant 0 : index
    %88 = vector.load %arg8[%c2_116, %c2_117, %c0_118] : memref<18x18x32xf32, #tpu.memory_space<vmem>>, vector<16x16x32xf32>
    %89 = vector.shape_cast %88 : vector<16x16x32xf32> to vector<256x32xf32>
    %90 = arith.truncf %89 : vector<256x32xf32> to vector<256x32xbf16>
    %c0_119 = arith.constant 0 : index
    %c256 = arith.constant 256 : index
    %91 = vector.load %arg10[%c0_119, %c256] : memref<256x288xbf16, #tpu.memory_space<vmem>>, vector<256x32xbf16>
    tpu.vector_store %arg10[%c0_119, %c256], %90 {strides = array<i32>} : memref<256x288xbf16, #tpu.memory_space<vmem>>, vector<256x32xbf16>,
    %c0_120 = arith.constant 0 : index
    %c0_121 = arith.constant 0 : index
    %92 = vector.load %arg4[%c0_120, %c0_121] : memref<32x288xbf16, #tpu.memory_space<vmem>>, vector<32x288xbf16>
    %c0_122 = arith.constant 0 : index
    %c0_123 = arith.constant 0 : index
    %93 = vector.load %arg10[%c0_122, %c0_123] : memref<256x288xbf16, #tpu.memory_space<vmem>>, vector<256x288xbf16>
    %cst_124 = arith.constant dense<0.000000e+00> : vector<32x256xf32>
    %94 = tpu.matmul %92, %93, %cst_124 {dimension_numbers = #tpu.dot_dimension_numbers<[1], [1], [0], [0], [0, 0, 1, 0], [], []>} : vector<32x288xbf16>, vector<256x288xbf16>, vector<32x256xf32> -> vector<32x256xf32>
    %c0_125 = arith.constant 0 : index
    %c0_126 = arith.constant 0 : index
    %95 = vector.load %arg5[%c0_125, %c0_126] : memref<32x1xf32, #tpu.memory_space<vmem>>, vector<32x1xf32>
    %96 = vector.broadcast %95 : vector<32x1xf32> to vector<32x256xf32>
    %97 = arith.addf %94, %96 : vector<32x256xf32>
    %cst_127 = arith.constant 0.000000e+00 : f32
    %98 = vector.broadcast %cst_127 : f32 to vector<32x256xf32>
    %99 = arith.maximumf %97, %98 : vector<32x256xf32>
    %c0_128 = arith.constant 0 : index
    %c0_129 = arith.constant 0 : index
    %c0_130 = arith.constant 0 : index
    %100 = vector.load %arg6[%c0_128, %c0_129, %c0_130] : memref<1x32x256xf32, #tpu.memory_space<vmem>>, vector<1x32x256xf32>
    %101 = vector.shape_cast %100 : vector<1x32x256xf32> to vector<32x256xf32>
    %102 = vector.shape_cast %99 : vector<32x256xf32> to vector<1x32x256xf32>
    tpu.vector_store %arg6[%c0_128, %c0_129, %c0_130], %102 {strides = array<i32>} : memref<1x32x256xf32, #tpu.memory_space<vmem>>, vector<1x32x256xf32>,
    return
  }
  func.func @transform_0(%arg0: i32) -> (i32, i32, i32, i32) {
    %c0_i32 = arith.constant 0 : i32
    %c0_i32_0 = arith.constant 0 : i32
    %c0_i32_1 = arith.constant 0 : i32
    %c0_i32_2 = arith.constant 0 : i32
    return %arg0, %c0_i32, %c0_i32_0, %c0_i32_1 : i32, i32, i32, i32
  }
  func.func @transform_1(%arg0: i32) -> (i32, i32) {
    %c0_i32 = arith.constant 0 : i32
    %c0_i32_0 = arith.constant 0 : i32
    %c0_i32_1 = arith.constant 0 : i32
    return %c0_i32, %c0_i32_0 : i32, i32
  }
  func.func @transform_2(%arg0: i32) -> (i32, i32) {
    %c0_i32 = arith.constant 0 : i32
    %c0_i32_0 = arith.constant 0 : i32
    %c0_i32_1 = arith.constant 0 : i32
    return %c0_i32, %c0_i32_0 : i32, i32
  }
  func.func @transform_3(%arg0: i32) -> (i32, i32) {
    %c0_i32 = arith.constant 0 : i32
    %c0_i32_0 = arith.constant 0 : i32
    %c0_i32_1 = arith.constant 0 : i32
    return %c0_i32, %c0_i32_0 : i32, i32
  }
  func.func @transform_4(%arg0: i32) -> (i32, i32) {
    %c0_i32 = arith.constant 0 : i32
    %c0_i32_0 = arith.constant 0 : i32
    %c0_i32_1 = arith.constant 0 : i32
    return %c0_i32, %c0_i32_0 : i32, i32
  }
  func.func @transform_5(%arg0: i32) -> (i32, i32, i32) {
    %c0_i32 = arith.constant 0 : i32
    %c0_i32_0 = arith.constant 0 : i32
    %c0_i32_1 = arith.constant 0 : i32
    return %arg0, %c0_i32, %c0_i32_0 : i32, i32, i32
  }
}

</mosaic_0001>

<bundles_post_ra>
// kernel: inconv_forward.1
= control target key start
LH: loop header
LB: loop body
LE: loop exit
PB: predicated region body
PF: predicated region fallthrough
CT: control target
= control target key end

     0   :  { %s4007_s18 = smov 0   ;;  %s5650_s0 = inlined_call_operand.vmem [shape: f32[2,16,16,4], index: 0, kind: input, shape index: {}]   ;;  %s5651_s1 = inlined_call_operand.vmem [shape: f32[36,32], index: 1, kind: input, shape index: {}]   ;;  %s5652_s2 = inlined_call_operand.vmem [shape: f32[1,32], index: 2, kind: input, shape index: {}]   ;;  %s5653_s3 = inlined_call_operand.vmem [shape: bf16[32,288], index: 3, kind: input, shape index: {}]   ;;  %s5654_s4 = inlined_call_operand.vmem [shape: f32[32,1], index: 4, kind: input, shape index: {}]   ;;  %s5655_s5 = inlined_call_operand.vmem [shape: f32[2,32,256], index: 5, kind: output, shape index: {}]  }
   0x1 LB: > { %s3724_s19 = sadd.s32 4294967295, %s3963_s18   ;;  %p3728_p0 = scmp.ge.s32.totalorder %s3963_s18, 1  ;;  %s3963_s18 = sphi %s4007_s18, %s15_s18  }
   0x2   : > { %p187_p1 = scmp.lt.s32.totalorder %s3963_s18, 3 }
   0x4   : > { %p188_p2 = pnand %p3728_p0, %p187_p1 }
   0x5   : > { %vm226_vm0 = vcmask (!%p188_p2), 31744   ;;  %vm229_vm1 = vcmask (!%p188_p2), 25600   ;;  %vm236_vm2 = vcmask (!%p188_p2), 24576   ;;  %v3965_v0 = vmov (!%p188_p2), 0.0   ;;  %p4027_p3 = scmp.lt.s32.totalorder (!%p188_p2), %s3724_s19, 1  ;;  %s3966_s25 = smov (!%p188_p2), 8  }
   0x6   : > { %191 = sbr.rel (%p188_p2) target bundleno = 1263 (0x4ef), region = 40  ;;  %227 = vst.msk [vmem:[#allocation2] sm:$0xff] (!%p188_p2), %vm226_vm0, %v3965_v0  ;;  %228 = vst.msk [vmem:[#allocation2 + $0x8] sm:$0xff] (!%p188_p2), %vm226_vm0, %v3965_v0  ;;  %s3967_s26 = smov (!%p188_p2), 4   ;;  %v2017_v36 = vld [vmem:[%s5651_s1] sm:$0xff] (!%p188_p2)  ;;  %v2018_v37 = vld [vmem:[%s5651_s1 + $0x8] sm:$0xff] (!%p188_p2) }
   0x7   : > { %232 = vst.msk [vmem:[#allocation2 + $0x198] sm:$0xff] (!%p188_p2), %vm226_vm0, %v3965_v0  ;;  %233 = vst.msk [vmem:[#allocation2 + $0x1a0] sm:$0xff] (!%p188_p2), %vm226_vm0, %v3965_v0  ;;  %s3968_s27 = smov (!%p188_p2), 12   ;;  %s3969_s28 = smov (!%p188_p2), 16   ;;  %v3894_v38 = vpack.c.bf16 (!%p188_p2), %v2018_v37, %v2017_v36  ;;  %v2019_v39 = vld [vmem:[%s5651_s1 + $0x10] sm:$0xff] (!%p188_p2)  ;;  %v2020_v40 = vld [vmem:[%s5651_s1 + $0x18] sm:$0xff] (!%p188_p2) }
   0x8   : > { %230 = vst.msk [vmem:[#allocation2 + $0x10] sm:$0x3] (!%p188_p2), %vm229_vm1, %v3965_v0  ;;  %234 = vst.msk [vmem:[#allocation2 + $0x1a8] sm:$0x3] (!%p188_p2), %vm229_vm1, %v3965_v0  ;;  %s3970_s29 = smov (!%p188_p2), 20   ;;  %s3971_s30 = smov (!%p188_p2), 24   ;;  %v3898_v41 = vpack.c.bf16 (!%p188_p2), %v2020_v40, %v2019_v39 }
   0x9   : > { %237 = vst.msk [vmem:[#allocation2 + $0x18] sm:$0x1] (!%p188_p2), %vm236_vm2, %v3965_v0  ;;  %238 = vst.msk [vmem:[#allocation2 + $0x30] sm:$0x1] (!%p188_p2), %vm236_vm2, %v3965_v0  ;;  %s3972_s10 = smov (!%p188_p2), 28   ;;  %3895 = vmatprep.subr.bf16.mxu0 (!%p188_p2), %v3894_v38  ;;  %s3973_s15 = smov (!%p188_p2), 32  }
   0xa   : > { %239 = vst.msk [vmem:[#allocation2 + $0x48] sm:$0x1] (!%p188_p2), %vm236_vm2, %v3965_v0  ;;  %240 = vst.msk [vmem:[#allocation2 + $0x60] sm:$0x1] (!%p188_p2), %vm236_vm2, %v3965_v0  ;;  %3897 = vmatpush3.bf16.msra.mxu0 (!%p188_p2), %v3894_v38  ;;  %v2021_v44 = vld [vmem:[%s5651_s1 + $0x20] sm:$0xf] (!%p188_p2) }
   0xb   : > { %241 = vst.msk [vmem:[#allocation2 + $0x78] sm:$0x1] (!%p188_p2), %vm236_vm2, %v3965_v0  ;;  %242 = vst.msk [vmem:[#allocation2 + $0x90] sm:$0x1] (!%p188_p2), %vm236_vm2, %v3965_v0  ;;  %3899 = vmatprep.subr.bf16.mxu0 (!%p188_p2), %v3898_v41  ;;  %vm2126_vm3 = vcmask (!%p188_p2), 1043456   ;;  %vm600_vm4 = vcmask (!%p188_p2), 64544  }
   0xc   : > { %243 = vst.msk [vmem:[#allocation2 + $0xa8] sm:$0x1] (!%p188_p2), %vm236_vm2, %v3965_v0  ;;  %244 = vst.msk [vmem:[#allocation2 + $0xc0] sm:$0x1] (!%p188_p2), %vm236_vm2, %v3965_v0  ;;  %vm793_vm5 = vcmask (!%p188_p2), 97344   ;;  %vm986_vm6 = vcmask (!%p188_p2), 130144  }
   0xd   : > { %245 = vst.msk [vmem:[#allocation2 + $0xd8] sm:$0x1] %vm236_vm2, %v3965_v0  ;;  %246 = vst.msk [vmem:[#allocation2 + $0xf0] sm:$0x1] %vm236_vm2, %v3965_v0  ;;  %s5658_s19 = smov (!%p4027_p3, %s3724_s19), 1  ;;  %v633_v4 = vld [vmem:[#allocation2 + $0x2] sm:$0xff] }
   0xe   : > { %247 = vst.msk [vmem:[#allocation2 + $0x108] sm:$0x1] %vm236_vm2, %v3965_v0  ;;  %248 = vst.msk [vmem:[#allocation2 + $0x120] sm:$0x1] %vm236_vm2, %v3965_v0  ;;  %s3777_s21 = sshll.u32 %s5658_s19, 8  ;;  %v440_v5 = vld [vmem:[#allocation2 + $0x1] sm:$0xff]  ;;  %697 = vrot.lane.b32.xlu1 %v633_v4, %s3966_s25  ;;  %3901 = vmatpush3.bf16.msra.mxu0 %v3898_v41 }
   0xf   : > { %249 = vst.msk [vmem:[#allocation2 + $0x138] sm:$0x1] %vm236_vm2, %v3965_v0  ;;  %250 = vst.msk [vmem:[#allocation2 + $0x150] sm:$0x1] %vm236_vm2, %v3965_v0  ;;  %s4105_s24 = scalar_lea.vmem %s5650_s0, %s3777_s21  ;;  %v634_v6 = vld [vmem:[#allocation2 + $0xa] sm:$0xff]  ;;  %504 = vrot.lane.b32.xlu0 %v440_v5, %s3967_s26  ;;  %v376_v13 = vld [vmem:[#allocation2] sm:$0xff]  ;;  %3844 = vmatprep.subr.msk.mxu0 %vm2126_vm3, %v2021_v44 }
  0x10   : > { %251 = vst.msk [vmem:[#allocation2 + $0x168] sm:$0x1] %vm236_vm2, %v3965_v0  ;;  %252 = vst.msk [vmem:[#allocation2 + $0x180] sm:$0x1] %vm236_vm2, %v3965_v0  ;;  %v312_v1 = vld [vmem:[%s4105_s24] sm:$0xff]  ;;  %v313_v2 = vld [vmem:[%s4105_s24 + $0x8] sm:$0xff] }
  0x11   : > { %253 = vst.msk [vmem:[#allocation2 + $0x29] sm:$0x1] %vm236_vm2, %v3965_v0  ;;  %254 = vst.msk [vmem:[#allocation2 + $0x41] sm:$0x1] %vm236_vm2, %v3965_v0  ;;  %v314_v3 = vld [vmem:[%s4105_s24 + $0x10] sm:$0xff]  ;;  %v315_v8 = vld [vmem:[%s4105_s24 + $0x18] sm:$0xff] }
  0x12   : > { %255 = vst.msk [vmem:[#allocation2 + $0x59] sm:$0x1] %vm236_vm2, %v3965_v0  ;;  %256 = vst.msk [vmem:[#allocation2 + $0x71] sm:$0x1] %vm236_vm2, %v3965_v0  ;;  %v441_v7 = vld [vmem:[#allocation2 + $0x9] sm:$0xff]  ;;  %v316_v9 = vld [vmem:[%s4105_s24 + $0x20] sm:$0xff]  ;;  %699 = vrot.lane.b32.xlu1 %v634_v6, %s3966_s25  ;;  %3845 = vmatpush3.msk.msra.mxu0 %vm2126_vm3, %v2021_v44 }
  0x13   : > { %257 = vst.msk [vmem:[#allocation2 + $0x89] sm:$0x1] %vm236_vm2, %v3965_v0  ;;  %258 = vst.msk [vmem:[#allocation2 + $0xa1] sm:$0x1] %vm236_vm2, %v3965_v0  ;;  %v317_v10 = vld [vmem:[%s4105_s24 + $0x28] sm:$0xff]  ;;  %v318_v11 = vld [vmem:[%s4105_s24 + $0x30] sm:$0xff]  ;;  %506 = vrot.lane.b32.xlu0 %v441_v7, %s3967_s26 }
  0x14   : > { %259 = vst.msk [vmem:[#allocation2 + $0xb9] sm:$0x1] %vm236_vm2, %v3965_v0  ;;  %260 = vst.msk [vmem:[#allocation2 + $0xd1] sm:$0x1] %vm236_vm2, %v3965_v0  ;;  %v319_v12 = vld [vmem:[%s4105_s24 + $0x38] sm:$0xff]  ;;  %v320_v14 = vld [vmem:[%s4105_s24 + $0x40] sm:$0xff] }
  0x15   : > { %261 = vst.msk [vmem:[#allocation2 + $0xe9] sm:$0x1] %vm236_vm2, %v3965_v0  ;;  %262 = vst.msk [vmem:[#allocation2 + $0x101] sm:$0x1] %vm236_vm2, %v3965_v0  ;;  %v321_v15 = vld [vmem:[%s4105_s24 + $0x48] sm:$0xff]  ;;  %v322_v30 = vld [vmem:[%s4105_s24 + $0x50] sm:$0xff] }
  0x16   : > { %263 = vst.msk [vmem:[#allocation2 + $0x119] sm:$0x1] %vm236_vm2, %v3965_v0  ;;  %264 = vst.msk [vmem:[#allocation2 + $0x131] sm:$0x1] %vm236_vm2, %v3965_v0  ;;  %v377_v16 = vld [vmem:[#allocation2 + $0x8] sm:$0xff]  ;;  %v323_v31 = vld [vmem:[%s4105_s24 + $0x58] sm:$0xff] }
  0x17   : > { %265 = vst.msk [vmem:[#allocation2 + $0x149] sm:$0x1] %vm236_vm2, %v3965_v0  ;;  %266 = vst.msk [vmem:[#allocation2 + $0x161] sm:$0x1] %vm236_vm2, %v3965_v0  ;;  %v324_v45 = vld [vmem:[%s4105_s24 + $0x60] sm:$0xff]  ;;  %v325_v46 = vld [vmem:[%s4105_s24 + $0x68] sm:$0xff] }
  0x18   : > { %267 = vst.msk [vmem:[#allocation2 + $0x179] sm:$0x1] %vm236_vm2, %v3965_v0  ;;  %268 = vst.msk [vmem:[#allocation2 + $0x191] sm:$0x1] %vm236_vm2, %v3965_v0  ;;  %v326_v54 = vld [vmem:[%s4105_s24 + $0x70] sm:$0xff]  ;;  %v327_v55 = vld [vmem:[%s4105_s24 + $0x78] sm:$0xff] }
  0x19   : > { %344 = vst.msk [vmem:[#allocation2 + $0x19] sm:$0xff] %vm226_vm0, %v312_v1  ;;  %345 = vst.msk [vmem:[#allocation2 + $0x21] sm:$0xff] %vm226_vm0, %v313_v2  ;;  %v328_v62 = vld [vmem:[%s4105_s24 + $0x80] sm:$0xff]  ;;  %v329_v63 = vld [vmem:[%s4105_s24 + $0x88] sm:$0xff]  ;;  %vm1179_vm7 = vcmask 162944   ;;  %vm1372_vm8 = vcmask 195744  }
  0x1a   : > { %346 = vst.msk [vmem:[#allocation2 + $0x31] sm:$0xff] %vm226_vm0, %v314_v3  ;;  %347 = vst.msk [vmem:[#allocation2 + $0x39] sm:$0xff] %vm226_vm0, %v315_v8  ;;  %vm1566_vm9 = vcmask 228544   ;;  %vm1759_vm10 = vcmask 261344   ;;  %vm1952_vm11 = vcmask 294144   ;;  %vm2029_vm12 = vcmask 293888  }
  0x1b   : > { %348 = vst.msk [vmem:[#allocation2 + $0x49] sm:$0xff] %vm226_vm0, %v316_v9  ;;  %349 = vst.msk [vmem:[#allocation2 + $0x51] sm:$0xff] %vm226_vm0, %v317_v10  ;;  %vm269_vm13 = vcmask 261120   ;;  %vm279_vm14 = vcmask 253952   ;;  %vm272_vm15 = vcmask 254976   ;;  %s3974_s22 = smov 64  }
  0x1c   : > { %350 = vst.msk [vmem:[#allocation2 + $0x61] sm:$0xff] %vm226_vm0, %v318_v11  ;;  %351 = vst.msk [vmem:[#allocation2 + $0x69] sm:$0xff] %vm226_vm0, %v319_v12  ;;  %s3975_s23 = smov 96   ;;  %vm2724_vm1 = vcmask 785920   ;;  %vm2853_vm2 = vcmask 1048320  }
  0x1d   : > { %408 = vst.msk [vmem:[#allocation4] sm:$0xff] %vm226_vm0, %v376_v13  ;;  %352 = vst.msk [vmem:[#allocation2 + $0x79] sm:$0xff] %vm226_vm0, %v320_v14 }
  0x1e   : > { %353 = vst.msk [vmem:[#allocation2 + $0x81] sm:$0xff] %vm226_vm0, %v321_v15  ;;  %409 = vst.msk [vmem:[#allocation4 + $0x8] sm:$0xff] %vm226_vm0, %v377_v16 }
  0x1f   : > { %354 = vst.msk [vmem:[#allocation2 + $0x91] sm:$0xff] %vm226_vm0, %v322_v30  ;;  %355 = vst.msk [vmem:[#allocation2 + $0x99] sm:$0xff] %vm226_vm0, %v323_v31 }
  0x20   : > { %v827_v17 = vld [vmem:[#allocation2 + $0x20] sm:$0xff]  ;;  %v826_v18 = vld [vmem:[#allocation2 + $0x18] sm:$0xff]  ;;  %356 = vst.msk [vmem:[#allocation2 + $0xa9] sm:$0xff] %vm226_vm0, %v324_v45  ;;  %357 = vst.msk [vmem:[#allocation2 + $0xb1] sm:$0xff] %vm226_vm0, %v325_v46 }
  0x21   : > { %410 = vst.msk [vmem:[#allocation4 + $0x10] sm:$0xff] %vm226_vm0, %v826_v18  ;;  %411 = vst.msk [vmem:[#allocation4 + $0x18] sm:$0xff] %vm226_vm0, %v827_v17  ;;  %892 = vrot.lane.b32.xlu1 %v827_v17, %s3968_s27  ;;  %890 = vrot.lane.b32.xlu0 %v826_v18, %s3968_s27  ;;  %v1406_v19 = vld [vmem:[#allocation2 + $0x30] sm:$0xff]  ;;  %v1407_v20 = vld [vmem:[#allocation2 + $0x38] sm:$0xff] }
  0x22   : > { %v1019_v21 = vld [vmem:[#allocation2 + $0x19] sm:$0xff]  ;;  %412 = vst.msk [vmem:[#allocation4 + $0x20] sm:$0xff] %vm226_vm0, %v1406_v19  ;;  %413 = vst.msk [vmem:[#allocation4 + $0x28] sm:$0xff] %vm226_vm0, %v1407_v20  ;;  %v4139_v22 = vld [vmem:[#allocation2 + $0x48] sm:$0xff] }
  0x23   : > { %v4141_v23 = vld [vmem:[#allocation2 + $0x50] sm:$0xff]  ;;  %414 = vst.msk [vmem:[#allocation4 + $0x30] sm:$0xff] %vm226_vm0, %v4139_v22  ;;  %v4149_v24 = vld [vmem:[#allocation2 + $0x60] sm:$0xff]  ;;  %v4151_v25 = vld [vmem:[#allocation2 + $0x68] sm:$0xff] }
  0x24   : > { %415 = vst.msk [vmem:[#allocation4 + $0x38] sm:$0xff] %vm226_vm0, %v4141_v23  ;;  %v1020_v26 = vld [vmem:[#allocation2 + $0x21] sm:$0xff]  ;;  %416 = vst.msk [vmem:[#allocation4 + $0x40] sm:$0xff] %vm226_vm0, %v4149_v24  ;;  %v4157_v28 = vld [vmem:[#allocation2 + $0x78] sm:$0xff] }
  0x25   : > { %1083 = vrot.lane.b32.xlu0 %v1019_v21, %s3969_s28  ;;  %508 = vrot.lane.b32.xlu1 %v1019_v21, %s3967_s26  ;;  %v1212_v27 = vld [vmem:[#allocation2 + $0x1a] sm:$0xff]  ;;  %417 = vst.msk [vmem:[#allocation4 + $0x48] sm:$0xff] %vm226_vm0, %v4151_v25  ;;  %418 = vst.msk [vmem:[#allocation4 + $0x50] sm:$0xff] %vm226_vm0, %v4157_v28  ;;  %v1213_v32 = vld [vmem:[#allocation2 + $0x22] sm:$0xff] }
  0x26   : > { %v4159_v29 = vld [vmem:[#allocation2 + $0x80] sm:$0xff]  ;;  %v4175_v33 = vld [vmem:[#allocation2 + $0x90] sm:$0xff]  ;;  %v4177_v34 = vld [vmem:[#allocation2 + $0x98] sm:$0xff]  ;;  %358 = vst.msk [vmem:[#allocation2 + $0xc1] sm:$0xff] %vm226_vm0, %v326_v54 }
  0x27   : > { %419 = vst.msk [vmem:[#allocation4 + $0x58] sm:$0xff] %vm226_vm0, %v4159_v29  ;;  %420 = vst.msk [vmem:[#allocation4 + $0x60] sm:$0xff] %vm226_vm0, %v4175_v33  ;;  %v1599_v35 = vld [vmem:[#allocation2 + $0x31] sm:$0xff]  ;;  %v1600_v42 = vld [vmem:[#allocation2 + $0x39] sm:$0xff] }
  0x28   : > { %421 = vst.msk [vmem:[#allocation4 + $0x68] sm:$0xff] %vm226_vm0, %v4177_v34  ;;  %v1792_v43 = vld [vmem:[#allocation2 + $0x32] sm:$0xff]  ;;  %v1793_v47 = vld [vmem:[#allocation2 + $0x3a] sm:$0xff]  ;;  %v4214_v48 = vld [vmem:[#allocation2 + $0xa8] sm:$0xff] }
  0x29   : > { %1085 = vrot.lane.b32.xlu0 %v1020_v26, %s3969_s28  ;;  %1276 = vrot.lane.b32.xlu1 %v1212_v27, %s3970_s29  ;;  %v4216_v49 = vld [vmem:[#allocation2 + $0xb0] sm:$0xff]  ;;  %422 = vst.msk [vmem:[#allocation4 + $0x70] sm:$0xff] %vm226_vm0, %v4214_v48  ;;  %359 = vst.msk [vmem:[#allocation2 + $0xc9] sm:$0xff] %vm226_vm0, %v327_v55  ;;  %v1603_v58 = vld [vmem:[#allocation2 + $0x61] sm:$0xff] }
  0x2a   : > { %423 = vst.msk [vmem:[#allocation4 + $0x78] sm:$0xff] %vm226_vm0, %v4216_v49  ;;  %v1601_v50 = vld [vmem:[#allocation2 + $0x49] sm:$0xff]  ;;  %v1602_v51 = vld [vmem:[#allocation2 + $0x51] sm:$0xff]  ;;  %360 = vst.msk [vmem:[#allocation2 + $0xd9] sm:$0xff] %vm226_vm0, %v328_v62 }
  0x2b   : > { %v1794_v52 = vld [vmem:[#allocation2 + $0x4a] sm:$0xff]  ;;  %v1795_v53 = vld [vmem:[#allocation2 + $0x52] sm:$0xff]  ;;  %v1796_v60 = vld [vmem:[#allocation2 + $0x62] sm:$0xff]  ;;  %361 = vst.msk [vmem:[#allocation2 + $0xe1] sm:$0xff] %vm226_vm0, %v329_v63 }
  0x2c   : > { %v1604_v59 = vld [vmem:[#allocation2 + $0x69] sm:$0xff]  ;;  %v4292_v5 = vld [vmem:[#allocation2 + $0x79] sm:$0xff]  ;;  %v4294_v6 = vld [vmem:[#allocation2 + $0x81] sm:$0xff]  ;;  %270 = vst.msk [vmem:[#allocation3] sm:$0xff] %vm269_vm13, %v3965_v0 }
  0x2d   : > { %510 = vrot.lane.b32.xlu0 %v1020_v26, %s3967_s26  ;;  %701 = vrot.lane.b32.xlu1 %v1212_v27, %s3966_s25  ;;  %v4246_v56 = vld [vmem:[#allocation2 + $0xc0] sm:$0xff]  ;;  %v1797_v61 = vld [vmem:[#allocation2 + $0x6a] sm:$0xff]  ;;  %271 = vst.msk [vmem:[#allocation3 + $0x8] sm:$0xff] %vm269_vm13, %v3965_v0  ;;  %275 = vst.msk [vmem:[#allocation3 + $0x198] sm:$0xff] %vm269_vm13, %v3965_v0 }
  0x2e   : > { %424 = vst.msk [vmem:[#allocation4 + $0x80] sm:$0xff] %vm226_vm0, %v4246_v56  ;;  %v4302_v9 = vld [vmem:[#allocation2 + $0x7a] sm:$0xff]  ;;  %v4309_v12 = vld [vmem:[#allocation2 + $0x82] sm:$0xff]  ;;  %v330_v21 = vld [vmem:[%s4105_s24 + $0x90] sm:$0xff] }
  0x2f   : > { %362 = vst.msk [vmem:[#allocation2 + $0xf1] sm:$0xff] %vm226_vm0, %v330_v21  ;;  %v4358_v30 = vld [vmem:[#allocation2 + $0x99] sm:$0xff] }
  0x30   : > { %v4248_v57 = vld [vmem:[#allocation2 + $0xc8] sm:$0xff]  ;;  %v4374_v38 = vld [vmem:[#allocation2 + $0x9a] sm:$0xff]  ;;  %276 = vst.msk [vmem:[#allocation3 + $0x1a0] sm:$0xff] %vm269_vm13, %v3965_v0 }
  0x31   : > { %1278 = vrot.lane.b32.xlu0 %v1213_v32, %s3970_s29  ;;  %1470 = vrot.lane.b32.xlu1 %v1406_v19, %s3971_s30  ;;  %425 = vst.msk [vmem:[#allocation4 + $0x88] sm:$0xff] %vm226_vm0, %v4248_v57  ;;  %v4279_v3 = vld [vmem:[#allocation2 + $0xd8] sm:$0xff] }
  0x32   : > { %v4281_v4 = vld [vmem:[#allocation2 + $0xe0] sm:$0xff]  ;;  %426 = vst.msk [vmem:[#allocation4 + $0x90] sm:$0xff] %vm226_vm0, %v4279_v3 }
  0x33   : > { %427 = vst.msk [vmem:[#allocation4 + $0x98] sm:$0xff] %vm226_vm0, %v4281_v4 }
  0x34   : > { %297 = vst.msk [vmem:[#allocation3 + $0x41] sm:$0x1] %vm279_vm14, %v3965_v0  ;;  %280 = vst.msk [vmem:[#allocation3 + $0x18] sm:$0x1] %vm279_vm14, %v3965_v0 }
  0x35   : > { %703 = vrot.lane.b32.xlu0 %v1213_v32, %s3966_s25  ;;  %894 = vrot.lane.b32.xlu1 %v1406_v19, %s3968_s27  ;;  %281 = vst.msk [vmem:[#allocation3 + $0x30] sm:$0x1] %vm279_vm14, %v3965_v0  ;;  %282 = vst.msk [vmem:[#allocation3 + $0x48] sm:$0x1] %vm279_vm14, %v3965_v0 }
  0x36   : > { %v4344_v27 = vld [vmem:[#allocation2 + $0xf0] sm:$0xff]  ;;  %283 = vst.msk [vmem:[#allocation3 + $0x60] sm:$0x1] %vm279_vm14, %v3965_v0  ;;  %284 = vst.msk [vmem:[#allocation3 + $0x78] sm:$0x1] %vm279_vm14, %v3965_v0 }
  0x37   : > { %428 = vst.msk [vmem:[#allocation4 + $0xa0] sm:$0xff] %vm226_vm0, %v4344_v27 }
  0x38   : > { %285 = vst.msk [vmem:[#allocation3 + $0x90] sm:$0x1] %vm279_vm14, %v3965_v0  ;;  %286 = vst.msk [vmem:[#allocation3 + $0xa8] sm:$0x1] %vm279_vm14, %v3965_v0 }
  0x39   : > { %1472 = vrot.lane.b32.xlu0 %v1407_v20, %s3971_s30  ;;  %1663 = vrot.lane.b32.xlu1 %v1599_v35, %s3972_s10  ;;  %287 = vst.msk [vmem:[#allocation3 + $0xc0] sm:$0x1] %vm279_vm14, %v3965_v0  ;;  %288 = vst.msk [vmem:[#allocation3 + $0xd8] sm:$0x1] %vm279_vm14, %v3965_v0 }
  0x3a   : > { %289 = vst.msk [vmem:[#allocation3 + $0xf0] sm:$0x1] %vm279_vm14, %v3965_v0  ;;  %290 = vst.msk [vmem:[#allocation3 + $0x108] sm:$0x1] %vm279_vm14, %v3965_v0 }
  0x3b   : > { %291 = vst.msk [vmem:[#allocation3 + $0x120] sm:$0x1] %vm279_vm14, %v3965_v0  ;;  %292 = vst.msk [vmem:[#allocation3 + $0x138] sm:$0x1] %vm279_vm14, %v3965_v0 }
  0x3c   : > { %293 = vst.msk [vmem:[#allocation3 + $0x150] sm:$0x1] %vm279_vm14, %v3965_v0  ;;  %294 = vst.msk [vmem:[#allocation3 + $0x168] sm:$0x1] %vm279_vm14, %v3965_v0 }
  0x3d   : > { %896 = vrot.lane.b32.xlu0 %v1407_v20, %s3968_s27  ;;  %1087 = vrot.lane.b32.xlu1 %v1599_v35, %s3969_s28  ;;  %295 = vst.msk [vmem:[#allocation3 + $0x180] sm:$0x1] %vm279_vm14, %v3965_v0  ;;  %296 = vst.msk [vmem:[#allocation3 + $0x29] sm:$0x1] %vm279_vm14, %v3965_v0 }
  0x3e   : > { %298 = vst.msk [vmem:[#allocation3 + $0x59] sm:$0x1] %vm279_vm14, %v3965_v0  ;;  %299 = vst.msk [vmem:[#allocation3 + $0x71] sm:$0x1] %vm279_vm14, %v3965_v0 }
  0x3f   : > { %300 = vst.msk [vmem:[#allocation3 + $0x89] sm:$0x1] %vm279_vm14, %v3965_v0  ;;  %301 = vst.msk [vmem:[#allocation3 + $0xa1] sm:$0x1] %vm279_vm14, %v3965_v0 }
  0x40   : > { %302 = vst.msk [vmem:[#allocation3 + $0xb9] sm:$0x1] %vm279_vm14, %v3965_v0  ;;  %303 = vst.msk [vmem:[#allocation3 + $0xd1] sm:$0x1] %vm279_vm14, %v3965_v0 }
  0x41   : > { %1665 = vrot.lane.b32.xlu0 %v1600_v42, %s3972_s10  ;;  %1856 = vrot.lane.b32.xlu1 %v1792_v43, %s3973_s15  ;;  %304 = vst.msk [vmem:[#allocation3 + $0xe9] sm:$0x1] %vm279_vm14, %v3965_v0  ;;  %305 = vst.msk [vmem:[#allocation3 + $0x101] sm:$0x1] %vm279_vm14, %v3965_v0 }
  0x42   : > { %306 = vst.msk [vmem:[#allocation3 + $0x119] sm:$0x1] %vm279_vm14, %v3965_v0  ;;  %307 = vst.msk [vmem:[#allocation3 + $0x131] sm:$0x1] %vm279_vm14, %v3965_v0 }
  0x43   : > { %308 = vst.msk [vmem:[#allocation3 + $0x149] sm:$0x1] %vm279_vm14, %v3965_v0  ;;  %309 = vst.msk [vmem:[#allocation3 + $0x161] sm:$0x1] %vm279_vm14, %v3965_v0 }
  0x44   : > { %310 = vst.msk [vmem:[#allocation3 + $0x179] sm:$0x1] %vm279_vm14, %v3965_v0  ;;  %311 = vst.msk [vmem:[#allocation3 + $0x191] sm:$0x1] %vm279_vm14, %v3965_v0 }
  0x45   : > { %1089 = vrot.lane.b32.xlu0 %v1600_v42, %s3969_s28  ;;  %1280 = vrot.lane.b32.xlu1 %v1792_v43, %s3970_s29  ;;  %273 = vst.msk [vmem:[#allocation3 + $0x10] sm:$0x3] %vm272_vm15, %v3965_v0  ;;  %277 = vst.msk [vmem:[#allocation3 + $0x1a8] sm:$0x3] %vm272_vm15, %v3965_v0  ;;  %v4923_v0 = vld [vmem:[%s5652_s2] ss:$0 sm:$0xff] }
  0x49   : > { %1858 = vrot.lane.b32.xlu0 %v1793_v47, %s3973_s15  ;;  %1282 = vrot.lane.b32.xlu1 %v1793_v47, %s3970_s29 }
  0x4d   : > { %1474 = vrot.lane.b32.xlu0 %v4139_v22, %s3971_s30  ;;  %1476 = vrot.lane.b32.xlu1 %v4141_v23, %s3971_s30 }
  0x51   : > { %1667 = vrot.lane.b32.xlu0 %v1601_v50, %s3972_s10  ;;  %1669 = vrot.lane.b32.xlu1 %v1602_v51, %s3972_s10 }
  0x55   : > { %1860 = vrot.lane.b32.xlu0 %v1794_v52, %s3973_s15  ;;  %512 = vrot.lane.b32.xlu1 %v1599_v35, %s3967_s26  ;;  %v4366_v35 = vld [vmem:[#allocation2 + $0x92] sm:$0xff] }
  0x59   : > { %1862 = vrot.lane.b32.xlu0 %v1795_v53, %s3973_s15  ;;  %514 = vrot.lane.b32.xlu1 %v1600_v42, %s3967_s26 }
  0x5d   : > { %705 = vrot.lane.b32.xlu0 %v1792_v43, %s3966_s25  ;;  %707 = vrot.lane.b32.xlu1 %v1793_v47, %s3966_s25 }
  0x61   : > { %898 = vrot.lane.b32.xlu0 %v4139_v22, %s3968_s27  ;;  %900 = vrot.lane.b32.xlu1 %v4141_v23, %s3968_s27  ;;  %v331_v22 = vld [vmem:[%s4105_s24 + $0x98] sm:$0xff] }
  0x62   : > { %363 = vst.msk [vmem:[#allocation2 + $0xf9] sm:$0xff] %vm226_vm0, %v331_v22  ;;  %v4496_v22 = vld [vmem:[#allocation2 + $0xc1] sm:$0xff] }
  0x65   : > { %1091 = vrot.lane.b32.xlu0 %v1601_v50, %s3969_s28  ;;  %1093 = vrot.lane.b32.xlu1 %v1602_v51, %s3969_s28 }
  0x69   : > { %1284 = vrot.lane.b32.xlu0 %v1794_v52, %s3970_s29  ;;  %1286 = vrot.lane.b32.xlu1 %v1795_v53, %s3970_s29 }
  0x6d   : > { %1478 = vrot.lane.b32.xlu0 %v4149_v24, %s3971_s30  ;;  %1480 = vrot.lane.b32.xlu1 %v4151_v25, %s3971_s30 }
  0x71   : > { %1671 = vrot.lane.b32.xlu0 %v1603_v58, %s3972_s10  ;;  %1673 = vrot.lane.b32.xlu1 %v1604_v59, %s3972_s10 }
  0x75   : > { %1864 = vrot.lane.b32.xlu0 %v1796_v60, %s3973_s15  ;;  %516 = vrot.lane.b32.xlu1 %v1601_v50, %s3967_s26 }
  0x79   : > { %1866 = vrot.lane.b32.xlu0 %v1797_v61, %s3973_s15  ;;  %518 = vrot.lane.b32.xlu1 %v1602_v51, %s3967_s26  ;;  %v332_v51 = vld [vmem:[%s4105_s24 + $0xa0] sm:$0xff] }
  0x7a   : > { %364 = vst.msk [vmem:[#allocation2 + $0x109] sm:$0xff] %vm226_vm0, %v332_v51 }
  0x7d   : > { %709 = vrot.lane.b32.xlu0 %v1794_v52, %s3966_s25  ;;  %711 = vrot.lane.b32.xlu1 %v1795_v53, %s3966_s25  ;;  %v333_v52 = vld [vmem:[%s4105_s24 + $0xa8] sm:$0xff] }
  0x7e   : > { %365 = vst.msk [vmem:[#allocation2 + $0x111] sm:$0xff] %vm226_vm0, %v333_v52  ;;  %v4566_v52 = vld [vmem:[#allocation2 + $0xd9] sm:$0xff] }
  0x80   : > { %v698_v1 = vpop.permute.xlu1 %697 }
  0x81   : > { %902 = vrot.lane.b32.xlu0 %v4149_v24, %s3968_s27  ;;  %904 = vrot.lane.b32.xlu1 %v4151_v25, %s3968_s27  ;;  %v505_v2 = vpop.permute.xlu0 %504  ;;  %v4414_v55 = vld [vmem:[#allocation2 + $0x108] sm:$0xff] }
  0x82   : > { %601 = vst.msk [vmem:[#allocation4] sm:$0xff] %vm600_vm4, %v505_v2 }
  0x83   : > { %794 = vst.msk [vmem:[#allocation4] sm:$0xff] %vm793_vm5, %v698_v1  ;;  %v4437_v1 = vld [vmem:[#allocation2 + $0xaa] sm:$0xff] }
  0x84   : > { %v700_v7 = vpop.permute.xlu1 %699  ;;  %430 = vst.msk [vmem:[#allocation4 + $0xb0] sm:$0xff] %vm226_vm0, %v4414_v55 }
  0x85   : > { %1095 = vrot.lane.b32.xlu0 %v1603_v58, %s3969_s28  ;;  %1097 = vrot.lane.b32.xlu1 %v1604_v59, %s3969_s28  ;;  %v507_v8 = vpop.permute.xlu0 %506 }
  0x86   : > { %602 = vst.msk [vmem:[#allocation4 + $0x8] sm:$0xff] %vm600_vm4, %v507_v8 }
  0x87   : > { %795 = vst.msk [vmem:[#allocation4 + $0x8] sm:$0xff] %vm793_vm5, %v700_v7  ;;  %v4446_v7 = vld [vmem:[#allocation2 + $0xb2] sm:$0xff] }
  0x89   : > { %1288 = vrot.lane.b32.xlu0 %v1796_v60, %s3970_s29  ;;  %1290 = vrot.lane.b32.xlu1 %v1797_v61, %s3970_s29 }
  0x8d   : > { %1482 = vrot.lane.b32.xlu0 %v4157_v28, %s3971_s30  ;;  %1484 = vrot.lane.b32.xlu1 %v4159_v29, %s3971_s30 }
  0x91   : > { %1675 = vrot.lane.b32.xlu0 %v4292_v5, %s3972_s10  ;;  %1677 = vrot.lane.b32.xlu1 %v4294_v6, %s3972_s10 }
  0x93   : > { %v893_v10 = vpop.permute.xlu1 %892  ;;  %v891_v11 = vpop.permute.xlu0 %890 }
  0x94   : > { %988 = vst.msk [vmem:[#allocation4 + $0x8] sm:$0xff] %vm986_vm6, %v893_v10  ;;  %987 = vst.msk [vmem:[#allocation4] sm:$0xff] %vm986_vm6, %v891_v11 }
  0x95   : > { %1868 = vrot.lane.b32.xlu0 %v4302_v9, %s3973_s15  ;;  %520 = vrot.lane.b32.xlu1 %v1603_v58, %s3967_s26  ;;  %v4416_v58 = vld [vmem:[#allocation2 + $0x110] sm:$0xff] }
  0x96   : > { %431 = vst.msk [vmem:[#allocation4 + $0xb8] sm:$0xff] %vm226_vm0, %v4416_v58 }
  0x97   : > { %v1084_v13 = vpop.permute.xlu0 %1083  ;;  %v509_v14 = vpop.permute.xlu1 %508 }
  0x98   : > { %1180 = vst.msk [vmem:[#allocation4] sm:$0xff] %vm1179_vm7, %v1084_v13 }
  0x99   : > { %603 = vst.msk [vmem:[#allocation4 + $0x10] sm:$0xff] %vm600_vm4, %v509_v14  ;;  %1870 = vrot.lane.b32.xlu0 %v4309_v12, %s3973_s15  ;;  %522 = vrot.lane.b32.xlu1 %v1604_v59, %s3967_s26  ;;  %v4426_v59 = vld [vmem:[#allocation2 + $0xa9] sm:$0xff] }
  0x9b   : > { %v1086_v15 = vpop.permute.xlu0 %1085  ;;  %v1277_v16 = vpop.permute.xlu1 %1276 }
  0x9c   : > { %1181 = vst.msk [vmem:[#allocation4 + $0x8] sm:$0xff] %vm1179_vm7, %v1086_v15 }
  0x9d   : > { %1373 = vst.msk [vmem:[#allocation4] sm:$0xff] %vm1372_vm8, %v1277_v16  ;;  %713 = vrot.lane.b32.xlu0 %v1796_v60, %s3966_s25  ;;  %715 = vrot.lane.b32.xlu1 %v1797_v61, %s3966_s25  ;;  %v4428_v60 = vld [vmem:[#allocation2 + $0xb1] sm:$0xff] }
  0x9e   : > { %v334_v16 = vld [vmem:[%s4105_s24 + $0xb0] sm:$0xff] }
  0x9f   : > { %v511_v17 = vpop.permute.xlu0 %510  ;;  %v702_v18 = vpop.permute.xlu1 %701  ;;  %366 = vst.msk [vmem:[#allocation2 + $0x121] sm:$0xff] %vm226_vm0, %v334_v16 }
  0xa0   : > { %604 = vst.msk [vmem:[#allocation4 + $0x18] sm:$0xff] %vm600_vm4, %v511_v17  ;;  %v335_v17 = vld [vmem:[%s4105_s24 + $0xb8] sm:$0xff] }
  0xa1   : > { %796 = vst.msk [vmem:[#allocation4 + $0x10] sm:$0xff] %vm793_vm5, %v702_v18  ;;  %906 = vrot.lane.b32.xlu0 %v4157_v28, %s3968_s27  ;;  %908 = vrot.lane.b32.xlu1 %v4159_v29, %s3968_s27  ;;  %v4346_v28 = vld [vmem:[#allocation2 + $0xf8] sm:$0xff] }
  0xa2   : > { %429 = vst.msk [vmem:[#allocation4 + $0xa8] sm:$0xff] %vm226_vm0, %v4346_v28  ;;  %v4356_v29 = vld [vmem:[#allocation2 + $0x91] sm:$0xff]  ;;  %367 = vst.msk [vmem:[#allocation2 + $0x129] sm:$0xff] %vm226_vm0, %v335_v17 }
  0xa3   : > { %v1279_v19 = vpop.permute.xlu0 %1278  ;;  %v1471_v20 = vpop.permute.xlu1 %1470  ;;  %v4704_v17 = vld [vmem:[#allocation2 + $0xf1] sm:$0xff] }
  0xa4   : > { %1374 = vst.msk [vmem:[#allocation4 + $0x8] sm:$0xff] %vm1372_vm8, %v1279_v19 }
  0xa5   : > { %1567 = vst.msk [vmem:[#allocation4] sm:$0xff] %vm1566_vm9, %v1471_v20  ;;  %1099 = vrot.lane.b32.xlu0 %v4292_v5, %s3969_s28  ;;  %1101 = vrot.lane.b32.xlu1 %v4294_v6, %s3969_s28 }
  0xa6   : > { %v4484_v20 = vld [vmem:[#allocation2 + $0x120] sm:$0xff] }
  0xa7   : > { %v704_v23 = vpop.permute.xlu0 %703  ;;  %v895_v24 = vpop.permute.xlu1 %894  ;;  %432 = vst.msk [vmem:[#allocation4 + $0xc0] sm:$0xff] %vm226_vm0, %v4484_v20 }
  0xa8   : > { %797 = vst.msk [vmem:[#allocation4 + $0x18] sm:$0xff] %vm793_vm5, %v704_v23  ;;  %v4498_v23 = vld [vmem:[#allocation2 + $0xc9] sm:$0xff] }
  0xa9   : > { %989 = vst.msk [vmem:[#allocation4 + $0x10] sm:$0xff] %vm986_vm6, %v895_v24  ;;  %1292 = vrot.lane.b32.xlu0 %v4302_v9, %s3970_s29  ;;  %1294 = vrot.lane.b32.xlu1 %v4309_v12, %s3970_s29  ;;  %v4486_v21 = vld [vmem:[#allocation2 + $0x128] sm:$0xff] }
  0xaa   : > { %433 = vst.msk [vmem:[#allocation4 + $0xc8] sm:$0xff] %vm226_vm0, %v4486_v21 }
  0xab   : > { %v1473_v25 = vpop.permute.xlu0 %1472  ;;  %v1664_v26 = vpop.permute.xlu1 %1663 }
  0xac   : > { %1568 = vst.msk [vmem:[#allocation4 + $0x8] sm:$0xff] %vm1566_vm9, %v1473_v25 }
  0xad   : > { %1760 = vst.msk [vmem:[#allocation4] sm:$0xff] %vm1759_vm10, %v1664_v26  ;;  %1486 = vrot.lane.b32.xlu0 %v4175_v33, %s3971_s30  ;;  %1488 = vrot.lane.b32.xlu1 %v4177_v34, %s3971_s30 }
  0xaf   : > { %v897_v31 = vpop.permute.xlu0 %896  ;;  %v1088_v32 = vpop.permute.xlu1 %1087 }
  0xb0   : > { %990 = vst.msk [vmem:[#allocation4 + $0x18] sm:$0xff] %vm986_vm6, %v897_v31 }
  0xb1   : > { %1182 = vst.msk [vmem:[#allocation4 + $0x10] sm:$0xff] %vm1179_vm7, %v1088_v32  ;;  %1679 = vrot.lane.b32.xlu0 %v4356_v29, %s3972_s10  ;;  %1681 = vrot.lane.b32.xlu1 %v4358_v30, %s3972_s10 }
  0xb3   : > { %v1666_v36 = vpop.permute.xlu0 %1665  ;;  %v1857_v37 = vpop.permute.xlu1 %1856 }
  0xb4   : > { %1761 = vst.msk [vmem:[#allocation4 + $0x8] sm:$0xff] %vm1759_vm10, %v1666_v36 }
  0xb5   : > { %1953 = vst.msk [vmem:[#allocation4] sm:$0xff] %vm1952_vm11, %v1857_v37  ;;  %1872 = vrot.lane.b32.xlu0 %v4366_v35, %s3973_s15  ;;  %524 = vrot.lane.b32.xlu1 %v4292_v5, %s3967_s26 }
  0xb7   : > { %v1090_v39 = vpop.permute.xlu0 %1089  ;;  %v1281_v40 = vpop.permute.xlu1 %1280 }
  0xb8   : > { %1183 = vst.msk [vmem:[#allocation4 + $0x18] sm:$0xff] %vm1179_vm7, %v1090_v39 }
  0xb9   : > { %1375 = vst.msk [vmem:[#allocation4 + $0x10] sm:$0xff] %vm1372_vm8, %v1281_v40  ;;  %1874 = vrot.lane.b32.xlu0 %v4374_v38, %s3973_s15  ;;  %526 = vrot.lane.b32.xlu1 %v4294_v6, %s3967_s26 }
  0xbb   : > { %v1859_v41 = vpop.permute.xlu0 %1858  ;;  %v1283_v42 = vpop.permute.xlu1 %1282 }
  0xbc   : > { %v1985_v43 = vld [vmem:[#allocation4] sm:$0xff]  ;;  %1954 = vst.msk [vmem:[#allocation4 + $0x8] sm:$0xff] %vm1952_vm11, %v1859_v41 }
  0xbd   : > { %1376 = vst.msk [vmem:[#allocation4 + $0x18] sm:$0xff] %vm1372_vm8, %v1283_v42  ;;  %3846 = vmatprep.mubr.msk.f32.mxu0 %vm2029_vm12, %v1985_v43  ;;  %717 = vrot.lane.b32.xlu0 %v4302_v9, %s3966_s25 }
  0xbe   : > { %719 = vrot.lane.b32.xlu1 %v4309_v12, %s3966_s25 }
  0xbf   : > { %v1475_v44 = vpop.permute.xlu0 %1474  ;;  %v1477_v45 = vpop.permute.xlu1 %1476 }
  0xc0   : > { %1569 = vst.msk [vmem:[#allocation4 + $0x10] sm:$0xff] %vm1566_vm9, %v1475_v44  ;;  %1570 = vst.msk [vmem:[#allocation4 + $0x18] sm:$0xff] %vm1566_vm9, %v1477_v45  ;;  %v336_v44 = vld [vmem:[%s4105_s24 + $0xc0] sm:$0xff]  ;;  %v337_v45 = vld [vmem:[%s4105_s24 + $0xc8] sm:$0xff] }
  0xc1   : > { %910 = vrot.lane.b32.xlu0 %v4175_v33, %s3968_s27  ;;  %368 = vst.msk [vmem:[#allocation2 + $0x139] sm:$0xff] %vm226_vm0, %v336_v44  ;;  %369 = vst.msk [vmem:[#allocation2 + $0x141] sm:$0xff] %vm226_vm0, %v337_v45  ;;  %v4774_v45 = vld [vmem:[#allocation2 + $0x109] sm:$0xff] }
  0xc2   : > { %912 = vrot.lane.b32.xlu1 %v4177_v34, %s3968_s27 }
  0xc3   : > { %v1668_v46 = vpop.permute.xlu0 %1667  ;;  %v1670_v47 = vpop.permute.xlu1 %1669  ;;  %v1986_v50 = vld [vmem:[#allocation4 + $0x8] sm:$0xff] }
  0xc4   : > { %1762 = vst.msk [vmem:[#allocation4 + $0x10] sm:$0xff] %vm1759_vm10, %v1668_v46  ;;  %1763 = vst.msk [vmem:[#allocation4 + $0x18] sm:$0xff] %vm1759_vm10, %v1670_v47  ;;  %3847 = vmatmul.mubr.msk.f32.vlgmr.msra.gmra.mrb[0].mxu0 %vm2029_vm12, %v1986_v50 }
  0xc5   : > { %1103 = vrot.lane.b32.xlu0 %v4356_v29, %s3969_s28 }
  0xc6   : > { %1105 = vrot.lane.b32.xlu1 %v4358_v30, %s3969_s28 }
  0xc7   : > { %v1861_v33 = vpop.permute.xlu0 %1860  ;;  %v513_v34 = vpop.permute.xlu1 %512 }
  0xc8   : > { %1955 = vst.msk [vmem:[#allocation4 + $0x10] sm:$0xff] %vm1952_vm11, %v1861_v33  ;;  %v4554_v50 = vld [vmem:[#allocation2 + $0x138] sm:$0xff]  ;;  %v4556_v51 = vld [vmem:[#allocation2 + $0x140] sm:$0xff] }
  0xc9   : > { %605 = vst.msk [vmem:[#allocation4 + $0x20] sm:$0xff] %vm600_vm4, %v513_v34  ;;  %1296 = vrot.lane.b32.xlu0 %v4366_v35, %s3970_s29  ;;  %v4568_v33 = vld [vmem:[#allocation2 + $0xe1] sm:$0xff] }
  0xca   : > { %1298 = vrot.lane.b32.xlu1 %v4374_v38, %s3970_s29  ;;  %434 = vst.msk [vmem:[#allocation4 + $0xd0] sm:$0xff] %vm226_vm0, %v4554_v50  ;;  %435 = vst.msk [vmem:[#allocation4 + $0xd8] sm:$0xff] %vm226_vm0, %v4556_v51 }
  0xcb   : > { %v1863_v53 = vpop.permute.xlu0 %1862  ;;  %v515_v54 = vpop.permute.xlu1 %514 }
  0xcc   : > { %1956 = vst.msk [vmem:[#allocation4 + $0x18] sm:$0xff] %vm1952_vm11, %v1863_v53 }
  0xcd   : > { %606 = vst.msk [vmem:[#allocation4 + $0x28] sm:$0xff] %vm600_vm4, %v515_v54  ;;  %1490 = vrot.lane.b32.xlu0 %v4214_v48, %s3971_s30 }
  0xce   : > { %1492 = vrot.lane.b32.xlu1 %v4216_v49, %s3971_s30 }
  0xcf   : > { %v706_v61 = vpop.permute.xlu0 %705  ;;  %v708_v62 = vpop.permute.xlu1 %707  ;;  %v1987_v63 = vld [vmem:[#allocation4 + $0x10] sm:$0xff] }
  0xd0   : > { %798 = vst.msk [vmem:[#allocation4 + $0x20] sm:$0xff] %vm793_vm5, %v706_v61  ;;  %799 = vst.msk [vmem:[#allocation4 + $0x28] sm:$0xff] %vm793_vm5, %v708_v62  ;;  %3849 = vmatprep.mubr.msk.f32.mxu0 %vm2029_vm12, %v1987_v63  ;;  %v4586_v63 = vld [vmem:[#allocation2 + $0xe2] sm:$0xff] }
  0xd1   : > { %1683 = vrot.lane.b32.xlu0 %v4426_v59, %s3972_s10 }
  0xd2   : > { %1685 = vrot.lane.b32.xlu1 %v4428_v60, %s3972_s10 }
  0xd3   : > { %v899_v2 = vpop.permute.xlu0 %898  ;;  %v901_v5 = vpop.permute.xlu1 %900  ;;  %v1988_v6 = vld [vmem:[#allocation4 + $0x18] sm:$0xff] }
  0xd4   : > { %991 = vst.msk [vmem:[#allocation4 + $0x20] sm:$0xff] %vm986_vm6, %v899_v2  ;;  %992 = vst.msk [vmem:[#allocation4 + $0x28] sm:$0xff] %vm986_vm6, %v901_v5  ;;  %3850 = vmatmul.mubr.msk.f32.gmra.mrb[2].mxu0 %vm2029_vm12, %v1988_v6 }
  0xd5   : > { %1876 = vrot.lane.b32.xlu0 %v4437_v1, %s3973_s15 }
  0xd6   : > { %528 = vrot.lane.b32.xlu1 %v4356_v29, %s3967_s26  ;;  %v4507_v29 = vld [vmem:[#allocation2 + $0xc2] sm:$0xff] }
  0xd7   : > { %v1092_v8 = vpop.permute.xlu0 %1091  ;;  %v1094_v9 = vpop.permute.xlu1 %1093 }
  0xd8   : > { %1184 = vst.msk [vmem:[#allocation4 + $0x20] sm:$0xff] %vm1179_vm7, %v1092_v8  ;;  %1185 = vst.msk [vmem:[#allocation4 + $0x28] sm:$0xff] %vm1179_vm7, %v1094_v9 }
  0xd9   : > { %1878 = vrot.lane.b32.xlu0 %v4446_v7, %s3973_s15 }
  0xda   : > { %530 = vrot.lane.b32.xlu1 %v4358_v30, %s3967_s26 }
  0xdb   : > { %v1285_v10 = vpop.permute.xlu0 %1284  ;;  %v1287_v11 = vpop.permute.xlu1 %1286 }
  0xdc   : > { %1377 = vst.msk [vmem:[#allocation4 + $0x20] sm:$0xff] %vm1372_vm8, %v1285_v10  ;;  %1378 = vst.msk [vmem:[#allocation4 + $0x28] sm:$0xff] %vm1372_vm8, %v1287_v11  ;;  %v338_v11 = vld [vmem:[%s4105_s24 + $0xd0] sm:$0xff] }
  0xdd   : > { %721 = vrot.lane.b32.xlu0 %v4366_v35, %s3966_s25  ;;  %v4516_v35 = vld [vmem:[#allocation2 + $0xca] sm:$0xff]  ;;  %370 = vst.msk [vmem:[#allocation2 + $0x151] sm:$0xff] %vm226_vm0, %v338_v11 }
  0xde   : > { %723 = vrot.lane.b32.xlu1 %v4374_v38, %s3966_s25  ;;  %v4842_v11 = vld [vmem:[#allocation2 + $0x129] sm:$0xff] }
  0xdf   : > { %v1479_v12 = vpop.permute.xlu0 %1478  ;;  %v1481_v13 = vpop.permute.xlu1 %1480 }
  0xe0   : > { %1571 = vst.msk [vmem:[#allocation4 + $0x20] sm:$0xff] %vm1566_vm9, %v1479_v12  ;;  %1572 = vst.msk [vmem:[#allocation4 + $0x28] sm:$0xff] %vm1566_vm9, %v1481_v13  ;;  %v339_v12 = vld [vmem:[%s4105_s24 + $0xd8] sm:$0xff] }
  0xe1   : > { %914 = vrot.lane.b32.xlu0 %v4214_v48, %s3968_s27  ;;  %371 = vst.msk [vmem:[#allocation2 + $0x159] sm:$0xff] %vm226_vm0, %v339_v12 }
  0xe2   : > { %916 = vrot.lane.b32.xlu1 %v4216_v49, %s3968_s27 }
  0xe3   : > { %v1672_v14 = vpop.permute.xlu0 %1671  ;;  %v1674_v15 = vpop.permute.xlu1 %1673 }
  0xe4   : > { %1764 = vst.msk [vmem:[#allocation4 + $0x20] sm:$0xff] %vm1759_vm10, %v1672_v14  ;;  %1765 = vst.msk [vmem:[#allocation4 + $0x28] sm:$0xff] %vm1759_vm10, %v1674_v15  ;;  %v4700_v15 = vld [vmem:[#allocation2 + $0x150] sm:$0xff] }
  0xe5   : > { %1107 = vrot.lane.b32.xlu0 %v4426_v59, %s3969_s28  ;;  %436 = vst.msk [vmem:[#allocation4 + $0xe0] sm:$0xff] %vm226_vm0, %v4700_v15 }
  0xe6   : > { %1109 = vrot.lane.b32.xlu1 %v4428_v60, %s3969_s28 }
  0xe7   : > { %v1865_v48 = vpop.permute.xlu0 %1864  ;;  %v517_v49 = vpop.permute.xlu1 %516 }
  0xe8   : > { %1957 = vst.msk [vmem:[#allocation4 + $0x20] sm:$0xff] %vm1952_vm11, %v1865_v48  ;;  %v4702_v16 = vld [vmem:[#allocation2 + $0x158] sm:$0xff] }
  0xe9   : > { %607 = vst.msk [vmem:[#allocation4 + $0x30] sm:$0xff] %vm600_vm4, %v517_v49  ;;  %1300 = vrot.lane.b32.xlu0 %v4437_v1, %s3970_s29  ;;  %v4706_v48 = vld [vmem:[#allocation2 + $0xf9] sm:$0xff] }
  0xea   : > { %1302 = vrot.lane.b32.xlu1 %v4446_v7, %s3970_s29  ;;  %437 = vst.msk [vmem:[#allocation4 + $0xe8] sm:$0xff] %vm226_vm0, %v4702_v16 }
  0xeb   : > { %v1867_v18 = vpop.permute.xlu0 %1866  ;;  %v519_v19 = vpop.permute.xlu1 %518 }
  0xec   : > { %1958 = vst.msk [vmem:[#allocation4 + $0x28] sm:$0xff] %vm1952_vm11, %v1867_v18 }
  0xed   : > { %608 = vst.msk [vmem:[#allocation4 + $0x38] sm:$0xff] %vm600_vm4, %v519_v19  ;;  %1494 = vrot.lane.b32.xlu0 %v4246_v56, %s3971_s30 }
  0xee   : > { %1496 = vrot.lane.b32.xlu1 %v4248_v57, %s3971_s30 }
  0xef   : > { %v710_v24 = vpop.permute.xlu0 %709  ;;  %v712_v25 = vpop.permute.xlu1 %711  ;;  %v1989_v26 = vld [vmem:[#allocation4 + $0x20] sm:$0xff] }
  0xf0   : > { %800 = vst.msk [vmem:[#allocation4 + $0x30] sm:$0xff] %vm793_vm5, %v710_v24  ;;  %801 = vst.msk [vmem:[#allocation4 + $0x38] sm:$0xff] %vm793_vm5, %v712_v25  ;;  %3852 = vmatprep.mubr.msk.f32.mxu0 %vm2029_vm12, %v1989_v26  ;;  %v4728_v26 = vld [vmem:[#allocation2 + $0xfa] sm:$0xff] }
  0xf1   : > { %1687 = vrot.lane.b32.xlu0 %v4496_v22, %s3972_s10 }
  0xf2   : > { %1689 = vrot.lane.b32.xlu1 %v4498_v23, %s3972_s10 }
  0xf3   : > { %v903_v30 = vpop.permute.xlu0 %902  ;;  %v905_v31 = vpop.permute.xlu1 %904  ;;  %v1990_v32 = vld [vmem:[#allocation4 + $0x28] sm:$0xff] }
  0xf4   : > { %993 = vst.msk [vmem:[#allocation4 + $0x30] sm:$0xff] %vm986_vm6, %v903_v30  ;;  %994 = vst.msk [vmem:[#allocation4 + $0x38] sm:$0xff] %vm986_vm6, %v905_v31  ;;  %3853 = vmatmul.mubr.msk.f32.gmra.mrb[4].mxu0 %vm2029_vm12, %v1990_v32 }
  0xf5   : > { %1880 = vrot.lane.b32.xlu0 %v4507_v29, %s3973_s15 }
  0xf6   : > { %532 = vrot.lane.b32.xlu1 %v4426_v59, %s3967_s26  ;;  %v4577_v59 = vld [vmem:[#allocation2 + $0xda] sm:$0xff] }
  0xf7   : > { %v1096_v36 = vpop.permute.xlu0 %1095  ;;  %v1098_v37 = vpop.permute.xlu1 %1097 }
  0xf8   : > { %1186 = vst.msk [vmem:[#allocation4 + $0x30] sm:$0xff] %vm1179_vm7, %v1096_v36  ;;  %1187 = vst.msk [vmem:[#allocation4 + $0x38] sm:$0xff] %vm1179_vm7, %v1098_v37 }
  0xf9   : > { %1882 = vrot.lane.b32.xlu0 %v4516_v35, %s3973_s15 }
  0xfa   : > { %534 = vrot.lane.b32.xlu1 %v4428_v60, %s3967_s26 }
  0xfb   : > { %v1289_v38 = vpop.permute.xlu0 %1288  ;;  %v1291_v39 = vpop.permute.xlu1 %1290 }
  0xfc   : > { %1379 = vst.msk [vmem:[#allocation4 + $0x30] sm:$0xff] %vm1372_vm8, %v1289_v38  ;;  %1380 = vst.msk [vmem:[#allocation4 + $0x38] sm:$0xff] %vm1372_vm8, %v1291_v39  ;;  %v340_v39 = vld [vmem:[%s4105_s24 + $0xe0] sm:$0xff] }
  0xfd   : > { %725 = vrot.lane.b32.xlu0 %v4437_v1, %s3966_s25  ;;  %372 = vst.msk [vmem:[#allocation2 + $0x169] sm:$0xff] %vm226_vm0, %v340_v39  ;;  %v4911_v39 = vld [vmem:[#allocation2 + $0x13a] sm:$0xff] }
  0xfe   : > { %727 = vrot.lane.b32.xlu1 %v4446_v7, %s3966_s25 }
  0xff   : > { %v1483_v40 = vpop.permute.xlu0 %1482  ;;  %v1485_v41 = vpop.permute.xlu1 %1484 }
 0x100   : > { %1573 = vst.msk [vmem:[#allocation4 + $0x30] sm:$0xff] %vm1566_vm9, %v1483_v40  ;;  %1574 = vst.msk [vmem:[#allocation4 + $0x38] sm:$0xff] %vm1566_vm9, %v1485_v41  ;;  %v341_v40 = vld [vmem:[%s4105_s24 + $0xe8] sm:$0xff] }
 0x101   : > { %918 = vrot.lane.b32.xlu0 %v4246_v56, %s3968_s27  ;;  %373 = vst.msk [vmem:[#allocation2 + $0x171] sm:$0xff] %vm226_vm0, %v341_v40 }
 0x102   : > { %920 = vrot.lane.b32.xlu1 %v4248_v57, %s3968_s27 }
 0x103   : > { %v1676_v42 = vpop.permute.xlu0 %1675  ;;  %v1678_v43 = vpop.permute.xlu1 %1677 }
 0x104   : > { %1766 = vst.msk [vmem:[#allocation4 + $0x30] sm:$0xff] %vm1759_vm10, %v1676_v42  ;;  %1767 = vst.msk [vmem:[#allocation4 + $0x38] sm:$0xff] %vm1759_vm10, %v1678_v43  ;;  %v4770_v43 = vld [vmem:[#allocation2 + $0x168] sm:$0xff] }
 0x105   : > { %1111 = vrot.lane.b32.xlu0 %v4496_v22, %s3969_s28  ;;  %438 = vst.msk [vmem:[#allocation4 + $0xf0] sm:$0xff] %vm226_vm0, %v4770_v43 }
 0x106   : > { %1113 = vrot.lane.b32.xlu1 %v4498_v23, %s3969_s28 }
 0x107   : > { %v1869_v56 = vpop.permute.xlu0 %1868  ;;  %v521_v57 = vpop.permute.xlu1 %520 }
 0x108   : > { %1959 = vst.msk [vmem:[#allocation4 + $0x30] sm:$0xff] %vm1952_vm11, %v1869_v56  ;;  %v4772_v44 = vld [vmem:[#allocation2 + $0x170] sm:$0xff] }
 0x109   : > { %609 = vst.msk [vmem:[#allocation4 + $0x40] sm:$0xff] %vm600_vm4, %v521_v57  ;;  %1304 = vrot.lane.b32.xlu0 %v4507_v29, %s3970_s29  ;;  %v4776_v56 = vld [vmem:[#allocation2 + $0x111] sm:$0xff] }
 0x10a   : > { %1306 = vrot.lane.b32.xlu1 %v4516_v35, %s3970_s29  ;;  %439 = vst.msk [vmem:[#allocation4 + $0xf8] sm:$0xff] %vm226_vm0, %v4772_v44 }
 0x10b   : > { %v1871_v46 = vpop.permute.xlu0 %1870  ;;  %v523_v47 = vpop.permute.xlu1 %522 }
 0x10c   : > { %1960 = vst.msk [vmem:[#allocation4 + $0x38] sm:$0xff] %vm1952_vm11, %v1871_v46 }
 0x10d   : > { %610 = vst.msk [vmem:[#allocation4 + $0x48] sm:$0xff] %vm600_vm4, %v523_v47  ;;  %1498 = vrot.lane.b32.xlu0 %v4279_v3, %s3971_s30 }
 0x10e   : > { %1500 = vrot.lane.b32.xlu1 %v4281_v4, %s3971_s30 }
 0x10f   : > { %v714_v34 = vpop.permute.xlu0 %713  ;;  %v716_v53 = vpop.permute.xlu1 %715  ;;  %v1991_v54 = vld [vmem:[#allocation4 + $0x30] sm:$0xff] }
 0x110   : > { %802 = vst.msk [vmem:[#allocation4 + $0x40] sm:$0xff] %vm793_vm5, %v714_v34  ;;  %803 = vst.msk [vmem:[#allocation4 + $0x48] sm:$0xff] %vm793_vm5, %v716_v53  ;;  %3855 = vmatprep.mubr.msk.f32.mxu0 %vm2029_vm12, %v1991_v54  ;;  %v4798_v54 = vld [vmem:[#allocation2 + $0x112] sm:$0xff] }
 0x111   : > { %1691 = vrot.lane.b32.xlu0 %v4566_v52, %s3972_s10 }
 0x112   : > { %1693 = vrot.lane.b32.xlu1 %v4568_v33, %s3972_s10 }
 0x113   : > { %v907_v60 = vpop.permute.xlu0 %906  ;;  %v909_v61 = vpop.permute.xlu1 %908  ;;  %v1992_v62 = vld [vmem:[#allocation4 + $0x38] sm:$0xff] }
 0x114   : > { %995 = vst.msk [vmem:[#allocation4 + $0x40] sm:$0xff] %vm986_vm6, %v907_v60  ;;  %996 = vst.msk [vmem:[#allocation4 + $0x48] sm:$0xff] %vm986_vm6, %v909_v61  ;;  %3856 = vmatmul.mubr.msk.f32.gmra.mrb[6].mxu0 %vm2029_vm12, %v1992_v62 }
 0x115   : > { %1884 = vrot.lane.b32.xlu0 %v4577_v59, %s3973_s15 }
 0x116   : > { %536 = vrot.lane.b32.xlu1 %v4496_v22, %s3967_s26  ;;  %v4719_v22 = vld [vmem:[#allocation2 + $0xf2] sm:$0xff] }
 0x117   : > { %v1100_v1 = vpop.permute.xlu0 %1099  ;;  %v1102_v2 = vpop.permute.xlu1 %1101 }
 0x118   : > { %1188 = vst.msk [vmem:[#allocation4 + $0x40] sm:$0xff] %vm1179_vm7, %v1100_v1  ;;  %1189 = vst.msk [vmem:[#allocation4 + $0x48] sm:$0xff] %vm1179_vm7, %v1102_v2 }
 0x119   : > { %1886 = vrot.lane.b32.xlu0 %v4586_v63, %s3973_s15 }
 0x11a   : > { %538 = vrot.lane.b32.xlu1 %v4498_v23, %s3967_s26 }
 0x11b   : > { %v1293_v5 = vpop.permute.xlu0 %1292  ;;  %v1295_v6 = vpop.permute.xlu1 %1294 }
 0x11c   : > { %1381 = vst.msk [vmem:[#allocation4 + $0x40] sm:$0xff] %vm1372_vm8, %v1293_v5  ;;  %1382 = vst.msk [vmem:[#allocation4 + $0x48] sm:$0xff] %vm1372_vm8, %v1295_v6  ;;  %v342_v6 = vld [vmem:[%s4105_s24 + $0xf0] sm:$0xff] }
 0x11d   : > { %729 = vrot.lane.b32.xlu0 %v4507_v29, %s3966_s25  ;;  %374 = vst.msk [vmem:[#allocation2 + $0x181] sm:$0xff] %vm226_vm0, %v342_v6 }
 0x11e   : > { %731 = vrot.lane.b32.xlu1 %v4516_v35, %s3966_s25 }
 0x11f   : > { %v1487_v7 = vpop.permute.xlu0 %1486  ;;  %v1489_v8 = vpop.permute.xlu1 %1488 }
 0x120   : > { %1575 = vst.msk [vmem:[#allocation4 + $0x40] sm:$0xff] %vm1566_vm9, %v1487_v7  ;;  %1576 = vst.msk [vmem:[#allocation4 + $0x48] sm:$0xff] %vm1566_vm9, %v1489_v8  ;;  %v343_v7 = vld [vmem:[%s4105_s24 + $0xf8] sm:$0xff] }
 0x121   : > { %922 = vrot.lane.b32.xlu0 %v4279_v3, %s3968_s27  ;;  %375 = vst.msk [vmem:[#allocation2 + $0x189] sm:$0xff] %vm226_vm0, %v343_v7  ;;  %vm2595_vm0 = vcmask 523520  }
 0x122   : > { %924 = vrot.lane.b32.xlu1 %v4281_v4, %s3968_s27 }
 0x123   : > { %v1680_v9 = vpop.permute.xlu0 %1679  ;;  %v1682_v10 = vpop.permute.xlu1 %1681 }
 0x124   : > { %1768 = vst.msk [vmem:[#allocation4 + $0x40] sm:$0xff] %vm1759_vm10, %v1680_v9  ;;  %1769 = vst.msk [vmem:[#allocation4 + $0x48] sm:$0xff] %vm1759_vm10, %v1682_v10  ;;  %v4840_v10 = vld [vmem:[#allocation2 + $0x121] sm:$0xff] }
 0x125   : > { %1115 = vrot.lane.b32.xlu0 %v4566_v52, %s3969_s28 }
 0x126   : > { %1117 = vrot.lane.b32.xlu1 %v4568_v33, %s3969_s28 }
 0x127   : > { %v1873_v3 = vpop.permute.xlu0 %1872  ;;  %v525_v4 = vpop.permute.xlu1 %524 }
 0x128   : > { %1961 = vst.msk [vmem:[#allocation4 + $0x40] sm:$0xff] %vm1952_vm11, %v1873_v3 }
 0x129   : > { %611 = vst.msk [vmem:[#allocation4 + $0x50] sm:$0xff] %vm600_vm4, %v525_v4  ;;  %1308 = vrot.lane.b32.xlu0 %v4577_v59, %s3970_s29 }
 0x12a   : > { %1310 = vrot.lane.b32.xlu1 %v4586_v63, %s3970_s29 }
 0x12b   : > { %v1875_v13 = vpop.permute.xlu0 %1874  ;;  %v527_v14 = vpop.permute.xlu1 %526 }
 0x12c   : > { %1962 = vst.msk [vmem:[#allocation4 + $0x48] sm:$0xff] %vm1952_vm11, %v1875_v13  ;;  %v4851_v13 = vld [vmem:[#allocation2 + $0x122] sm:$0xff] }
 0x12d   : > { %612 = vst.msk [vmem:[#allocation4 + $0x58] sm:$0xff] %vm600_vm4, %v527_v14  ;;  %1502 = vrot.lane.b32.xlu0 %v4344_v27, %s3971_s30 }
 0x12e   : > { %1504 = vrot.lane.b32.xlu1 %v4346_v28, %s3971_s30 }
 0x12f   : > { %v718_v49 = vpop.permute.xlu0 %717  ;;  %v1993_v19 = vld [vmem:[#allocation4 + $0x40] sm:$0xff] }
 0x130   : > { %v720_v18 = vpop.permute.xlu1 %719  ;;  %804 = vst.msk [vmem:[#allocation4 + $0x50] sm:$0xff] %vm793_vm5, %v718_v49  ;;  %3858 = vmatprep.mubr.msk.f32.mxu0 %vm2029_vm12, %v1993_v19  ;;  %v4860_v49 = vld [vmem:[#allocation2 + $0x12a] sm:$0xff] }
 0x131   : > { %805 = vst.msk [vmem:[#allocation4 + $0x58] sm:$0xff] %vm793_vm5, %v720_v18  ;;  %1695 = vrot.lane.b32.xlu0 %v4704_v17, %s3972_s10 }
 0x132   : > { %1697 = vrot.lane.b32.xlu1 %v4706_v48, %s3972_s10 }
 0x133   : > { %v911_v23 = vpop.permute.xlu0 %910  ;;  %v1994_v25 = vld [vmem:[#allocation4 + $0x48] sm:$0xff] }
 0x134   : > { %v913_v24 = vpop.permute.xlu1 %912  ;;  %997 = vst.msk [vmem:[#allocation4 + $0x50] sm:$0xff] %vm986_vm6, %v911_v23  ;;  %3859 = vmatmul.mubr.msk.f32.gmra.mrb[8].mxu0 %vm2029_vm12, %v1994_v25 }
 0x135   : > { %998 = vst.msk [vmem:[#allocation4 + $0x58] sm:$0xff] %vm986_vm6, %v913_v24  ;;  %1888 = vrot.lane.b32.xlu0 %v4719_v22, %s3973_s15 }
 0x136   : > { %540 = vrot.lane.b32.xlu1 %v4566_v52, %s3967_s26  ;;  %v4789_v52 = vld [vmem:[#allocation2 + $0x10a] sm:$0xff] }
 0x137   : > { %v1104_v29 = vpop.permute.xlu0 %1103 }
 0x138   : > { %v1106_v30 = vpop.permute.xlu1 %1105  ;;  %1190 = vst.msk [vmem:[#allocation4 + $0x50] sm:$0xff] %vm1179_vm7, %v1104_v29 }
 0x139   : > { %1191 = vst.msk [vmem:[#allocation4 + $0x58] sm:$0xff] %vm1179_vm7, %v1106_v30  ;;  %1890 = vrot.lane.b32.xlu0 %v4728_v26, %s3973_s15 }
 0x13a   : > { %542 = vrot.lane.b32.xlu1 %v4568_v33, %s3967_s26 }
 0x13b   : > { %v1297_v31 = vpop.permute.xlu0 %1296 }
 0x13c   : > { %v1299_v32 = vpop.permute.xlu1 %1298  ;;  %1383 = vst.msk [vmem:[#allocation4 + $0x50] sm:$0xff] %vm1372_vm8, %v1297_v31 }
 0x13d   : > { %1384 = vst.msk [vmem:[#allocation4 + $0x58] sm:$0xff] %vm1372_vm8, %v1299_v32  ;;  %733 = vrot.lane.b32.xlu0 %v4577_v59, %s3966_s25  ;;  %v4898_v32 = vld [vmem:[#allocation2 + $0x139] sm:$0xff] }
 0x13e   : > { %735 = vrot.lane.b32.xlu1 %v4586_v63, %s3966_s25 }
 0x13f   : > { %v1491_v35 = vpop.permute.xlu0 %1490 }
 0x140   : > { %v1493_v36 = vpop.permute.xlu1 %1492  ;;  %1577 = vst.msk [vmem:[#allocation4 + $0x50] sm:$0xff] %vm1566_vm9, %v1491_v35  ;;  %v4900_v35 = vld [vmem:[#allocation2 + $0x141] sm:$0xff] }
 0x141   : > { %1578 = vst.msk [vmem:[#allocation4 + $0x58] sm:$0xff] %vm1566_vm9, %v1493_v36  ;;  %926 = vrot.lane.b32.xlu0 %v4344_v27, %s3968_s27 }
 0x142   : > { %928 = vrot.lane.b32.xlu1 %v4346_v28, %s3968_s27 }
 0x143   : > { %v1684_v37 = vpop.permute.xlu0 %1683 }
 0x144   : > { %v1686_v38 = vpop.permute.xlu1 %1685  ;;  %1770 = vst.msk [vmem:[#allocation4 + $0x50] sm:$0xff] %vm1759_vm10, %v1684_v37 }
 0x145   : > { %1771 = vst.msk [vmem:[#allocation4 + $0x58] sm:$0xff] %vm1759_vm10, %v1686_v38  ;;  %1119 = vrot.lane.b32.xlu0 %v4704_v17, %s3969_s28 }
 0x146   : > { %1121 = vrot.lane.b32.xlu1 %v4706_v48, %s3969_s28 }
 0x147   : > { %v1877_v27 = vpop.permute.xlu0 %1876 }
 0x148   : > { %v529_v28 = vpop.permute.xlu1 %528  ;;  %1963 = vst.msk [vmem:[#allocation4 + $0x50] sm:$0xff] %vm1952_vm11, %v1877_v27 }
 0x149   : > { %613 = vst.msk [vmem:[#allocation4 + $0x60] sm:$0xff] %vm600_vm4, %v529_v28  ;;  %1312 = vrot.lane.b32.xlu0 %v4719_v22, %s3970_s29 }
 0x14a   : > { %1314 = vrot.lane.b32.xlu1 %v4728_v26, %s3970_s29 }
 0x14b   : > { %v1879_v41 = vpop.permute.xlu0 %1878 }
 0x14c   : > { %v531_v42 = vpop.permute.xlu1 %530  ;;  %1964 = vst.msk [vmem:[#allocation4 + $0x58] sm:$0xff] %vm1952_vm11, %v1879_v41  ;;  %v4925_v41 = vld [vmem:[#allocation2 + $0x142] sm:$0xff] }
 0x14d   : > { %614 = vst.msk [vmem:[#allocation4 + $0x68] sm:$0xff] %vm600_vm4, %v531_v42  ;;  %1506 = vrot.lane.b32.xlu0 %v4414_v55, %s3971_s30 }
 0x14e   : > { %1508 = vrot.lane.b32.xlu1 %v4416_v58, %s3971_s30 }
 0x14f   : > { %v722_v57 = vpop.permute.xlu0 %721  ;;  %v1995_v47 = vld [vmem:[#allocation4 + $0x50] sm:$0xff] }
 0x150   : > { %v724_v46 = vpop.permute.xlu1 %723  ;;  %806 = vst.msk [vmem:[#allocation4 + $0x60] sm:$0xff] %vm793_vm5, %v722_v57  ;;  %3861 = vmatprep.mubr.msk.f32.mxu0 %vm2029_vm12, %v1995_v47 }
 0x151   : > { %807 = vst.msk [vmem:[#allocation4 + $0x68] sm:$0xff] %vm793_vm5, %v724_v46  ;;  %1699 = vrot.lane.b32.xlu0 %v4774_v45, %s3972_s10 }
 0x152   : > { %1701 = vrot.lane.b32.xlu1 %v4776_v56, %s3972_s10 }
 0x153   : > { %v915_v33 = vpop.permute.xlu0 %914  ;;  %v1996_v53 = vld [vmem:[#allocation4 + $0x58] sm:$0xff] }
 0x154   : > { %v917_v34 = vpop.permute.xlu1 %916  ;;  %999 = vst.msk [vmem:[#allocation4 + $0x60] sm:$0xff] %vm986_vm6, %v915_v33  ;;  %3862 = vmatmul.mubr.msk.f32.gmra.mrb[10].mxu0 %vm2029_vm12, %v1996_v53 }
 0x155   : > { %1000 = vst.msk [vmem:[#allocation4 + $0x68] sm:$0xff] %vm986_vm6, %v917_v34  ;;  %1892 = vrot.lane.b32.xlu0 %v4789_v52, %s3973_s15 }
 0x156   : > { %544 = vrot.lane.b32.xlu1 %v4704_v17, %s3967_s26 }
 0x157   : > { %v1108_v59 = vpop.permute.xlu0 %1107 }
 0x158   : > { %v1110_v60 = vpop.permute.xlu1 %1109  ;;  %1192 = vst.msk [vmem:[#allocation4 + $0x60] sm:$0xff] %vm1179_vm7, %v1108_v59 }
 0x159   : > { %1193 = vst.msk [vmem:[#allocation4 + $0x68] sm:$0xff] %vm1179_vm7, %v1110_v60  ;;  %1894 = vrot.lane.b32.xlu0 %v4798_v54, %s3973_s15 }
 0x15a   : > { %546 = vrot.lane.b32.xlu1 %v4706_v48, %s3967_s26 }
 0x15b   : > { %v1301_v61 = vpop.permute.xlu0 %1300 }
 0x15c   : > { %v1303_v62 = vpop.permute.xlu1 %1302  ;;  %1385 = vst.msk [vmem:[#allocation4 + $0x60] sm:$0xff] %vm1372_vm8, %v1301_v61 }
 0x15d   : > { %1386 = vst.msk [vmem:[#allocation4 + $0x68] sm:$0xff] %vm1372_vm8, %v1303_v62  ;;  %737 = vrot.lane.b32.xlu0 %v4719_v22, %s3966_s25 }
 0x15e   : > { %739 = vrot.lane.b32.xlu1 %v4728_v26, %s3966_s25 }
 0x15f   : > { %v1495_v63 = vpop.permute.xlu0 %1494 }
 0x160   : > { %v1497_v1 = vpop.permute.xlu1 %1496  ;;  %1579 = vst.msk [vmem:[#allocation4 + $0x60] sm:$0xff] %vm1566_vm9, %v1495_v63 }
 0x161   : > { %1580 = vst.msk [vmem:[#allocation4 + $0x68] sm:$0xff] %vm1566_vm9, %v1497_v1  ;;  %930 = vrot.lane.b32.xlu0 %v4414_v55, %s3968_s27 }
 0x162   : > { %932 = vrot.lane.b32.xlu1 %v4416_v58, %s3968_s27 }
 0x163   : > { %v1688_v2 = vpop.permute.xlu0 %1687 }
 0x164   : > { %v1690_v5 = vpop.permute.xlu1 %1689  ;;  %1772 = vst.msk [vmem:[#allocation4 + $0x60] sm:$0xff] %vm1759_vm10, %v1688_v2 }
 0x165   : > { %1773 = vst.msk [vmem:[#allocation4 + $0x68] sm:$0xff] %vm1759_vm10, %v1690_v5  ;;  %1123 = vrot.lane.b32.xlu0 %v4774_v45, %s3969_s28 }
 0x166   : > { %1125 = vrot.lane.b32.xlu1 %v4776_v56, %s3969_s28 }
 0x167   : > { %v1881_v55 = vpop.permute.xlu0 %1880 }
 0x168   : > { %v533_v58 = vpop.permute.xlu1 %532  ;;  %1965 = vst.msk [vmem:[#allocation4 + $0x60] sm:$0xff] %vm1952_vm11, %v1881_v55 }
 0x169   : > { %615 = vst.msk [vmem:[#allocation4 + $0x70] sm:$0xff] %vm600_vm4, %v533_v58  ;;  %1316 = vrot.lane.b32.xlu0 %v4789_v52, %s3970_s29 }
 0x16a   : > { %1318 = vrot.lane.b32.xlu1 %v4798_v54, %s3970_s29 }
 0x16b   : > { %v1883_v8 = vpop.permute.xlu0 %1882 }
 0x16c   : > { %v535_v9 = vpop.permute.xlu1 %534  ;;  %1966 = vst.msk [vmem:[#allocation4 + $0x68] sm:$0xff] %vm1952_vm11, %v1883_v8 }
 0x16d   : > { %616 = vst.msk [vmem:[#allocation4 + $0x78] sm:$0xff] %vm600_vm4, %v535_v9  ;;  %1510 = vrot.lane.b32.xlu0 %v4484_v20, %s3971_s30 }
 0x16e   : > { %1512 = vrot.lane.b32.xlu1 %v4486_v21, %s3971_s30 }
 0x16f   : > { %v726_v12 = vpop.permute.xlu0 %725  ;;  %v1997_v4 = vld [vmem:[#allocation4 + $0x60] sm:$0xff] }
 0x170   : > { %v728_v3 = vpop.permute.xlu1 %727  ;;  %808 = vst.msk [vmem:[#allocation4 + $0x70] sm:$0xff] %vm793_vm5, %v726_v12  ;;  %3864 = vmatprep.mubr.msk.f32.mxu0 %vm2029_vm12, %v1997_v4  ;;  %v4981_v4 = vld [vmem:[#allocation2 + $0x159] sm:$0xff] }
 0x171   : > { %809 = vst.msk [vmem:[#allocation4 + $0x78] sm:$0xff] %vm793_vm5, %v728_v3  ;;  %1703 = vrot.lane.b32.xlu0 %v4840_v10, %s3972_s10  ;;  %v4979_v3 = vld [vmem:[#allocation2 + $0x151] sm:$0xff] }
 0x172   : > { %1705 = vrot.lane.b32.xlu1 %v4842_v11, %s3972_s10 }
 0x173   : > { %v919_v14 = vpop.permute.xlu0 %918  ;;  %v1998_v48 = vld [vmem:[#allocation4 + $0x68] sm:$0xff] }
 0x174   : > { %v921_v17 = vpop.permute.xlu1 %920  ;;  %1001 = vst.msk [vmem:[#allocation4 + $0x70] sm:$0xff] %vm986_vm6, %v919_v14  ;;  %3865 = vmatmul.mubr.msk.f32.gmra.mrb[12].mxu0 %vm2029_vm12, %v1998_v48  ;;  %v4990_v48 = vld [vmem:[#allocation2 + $0x152] sm:$0xff] }
 0x175   : > { %1002 = vst.msk [vmem:[#allocation4 + $0x78] sm:$0xff] %vm986_vm6, %v921_v17  ;;  %1896 = vrot.lane.b32.xlu0 %v4851_v13, %s3973_s15 }
 0x176   : > { %548 = vrot.lane.b32.xlu1 %v4774_v45, %s3967_s26 }
 0x177   : > { %v1112_v18 = vpop.permute.xlu0 %1111 }
 0x178   : > { %v1114_v19 = vpop.permute.xlu1 %1113  ;;  %1194 = vst.msk [vmem:[#allocation4 + $0x70] sm:$0xff] %vm1179_vm7, %v1112_v18 }
 0x179   : > { %1195 = vst.msk [vmem:[#allocation4 + $0x78] sm:$0xff] %vm1179_vm7, %v1114_v19  ;;  %1898 = vrot.lane.b32.xlu0 %v4860_v49, %s3973_s15 }
 0x17a   : > { %550 = vrot.lane.b32.xlu1 %v4776_v56, %s3967_s26 }
 0x17b   : > { %v1305_v22 = vpop.permute.xlu0 %1304 }
 0x17c   : > { %v1307_v23 = vpop.permute.xlu1 %1306  ;;  %1387 = vst.msk [vmem:[#allocation4 + $0x70] sm:$0xff] %vm1372_vm8, %v1305_v22 }
 0x17d   : > { %1388 = vst.msk [vmem:[#allocation4 + $0x78] sm:$0xff] %vm1372_vm8, %v1307_v23  ;;  %741 = vrot.lane.b32.xlu0 %v4789_v52, %s3966_s25 }
 0x17e   : > { %743 = vrot.lane.b32.xlu1 %v4798_v54, %s3966_s25 }
 0x17f   : > { %v1499_v24 = vpop.permute.xlu0 %1498 }
 0x180   : > { %v1501_v25 = vpop.permute.xlu1 %1500  ;;  %1581 = vst.msk [vmem:[#allocation4 + $0x70] sm:$0xff] %vm1566_vm9, %v1499_v24 }
 0x181   : > { %1582 = vst.msk [vmem:[#allocation4 + $0x78] sm:$0xff] %vm1566_vm9, %v1501_v25  ;;  %934 = vrot.lane.b32.xlu0 %v4484_v20, %s3968_s27 }
 0x182   : > { %936 = vrot.lane.b32.xlu1 %v4486_v21, %s3968_s27 }
 0x183   : > { %v1692_v26 = vpop.permute.xlu0 %1691 }
 0x184   : > { %v1694_v29 = vpop.permute.xlu1 %1693  ;;  %1774 = vst.msk [vmem:[#allocation4 + $0x70] sm:$0xff] %vm1759_vm10, %v1692_v26 }
 0x185   : > { %1775 = vst.msk [vmem:[#allocation4 + $0x78] sm:$0xff] %vm1759_vm10, %v1694_v29  ;;  %1127 = vrot.lane.b32.xlu0 %v4840_v10, %s3969_s28 }
 0x186   : > { %1129 = vrot.lane.b32.xlu1 %v4842_v11, %s3969_s28 }
 0x187   : > { %v1885_v30 = vpop.permute.xlu0 %1884 }
 0x188   : > { %v537_v31 = vpop.permute.xlu1 %536  ;;  %1967 = vst.msk [vmem:[#allocation4 + $0x70] sm:$0xff] %vm1952_vm11, %v1885_v30 }
 0x189   : > { %617 = vst.msk [vmem:[#allocation4 + $0x80] sm:$0xff] %vm600_vm4, %v537_v31  ;;  %1320 = vrot.lane.b32.xlu0 %v4851_v13, %s3970_s29 }
 0x18a   : > { %1322 = vrot.lane.b32.xlu1 %v4860_v49, %s3970_s29 }
 0x18b   : > { %v1887_v20 = vpop.permute.xlu0 %1886 }
 0x18c   : > { %v539_v21 = vpop.permute.xlu1 %538  ;;  %1968 = vst.msk [vmem:[#allocation4 + $0x78] sm:$0xff] %vm1952_vm11, %v1887_v20  ;;  %v5003_v20 = vld [vmem:[#allocation2 + $0x15a] sm:$0xff] }
 0x18d   : > { %618 = vst.msk [vmem:[#allocation4 + $0x88] sm:$0xff] %vm600_vm4, %v539_v21  ;;  %1514 = vrot.lane.b32.xlu0 %v4554_v50, %s3971_s30 }
 0x18e   : > { %1516 = vrot.lane.b32.xlu1 %v4556_v51, %s3971_s30 }
 0x18f   : > { %v730_v36 = vpop.permute.xlu0 %729  ;;  %v1999_v38 = vld [vmem:[#allocation4 + $0x70] sm:$0xff] }
 0x190   : > { %v732_v37 = vpop.permute.xlu1 %731  ;;  %810 = vst.msk [vmem:[#allocation4 + $0x80] sm:$0xff] %vm793_vm5, %v730_v36  ;;  %3867 = vmatprep.mubr.msk.f32.mxu0 %vm2029_vm12, %v1999_v38 }
 0x191   : > { %811 = vst.msk [vmem:[#allocation4 + $0x88] sm:$0xff] %vm793_vm5, %v732_v37  ;;  %1707 = vrot.lane.b32.xlu0 %v4898_v32, %s3972_s10 }
 0x192   : > { %1709 = vrot.lane.b32.xlu1 %v4900_v35, %s3972_s10 }
 0x193   : > { %v923_v40 = vpop.permute.xlu0 %922  ;;  %v2000_v28 = vld [vmem:[#allocation4 + $0x78] sm:$0xff] }
 0x194   : > { %v925_v27 = vpop.permute.xlu1 %924  ;;  %1003 = vst.msk [vmem:[#allocation4 + $0x80] sm:$0xff] %vm986_vm6, %v923_v40  ;;  %3868 = vmatmul.mubr.msk.f32.gmra.mrb[14].mxu0 %vm2029_vm12, %v2000_v28 }
 0x195   : > { %1004 = vst.msk [vmem:[#allocation4 + $0x88] sm:$0xff] %vm986_vm6, %v925_v27  ;;  %1900 = vrot.lane.b32.xlu0 %v4911_v39, %s3973_s15 }
 0x196   : > { %552 = vrot.lane.b32.xlu1 %v4840_v10, %s3967_s26 }
 0x197   : > { %v1116_v42 = vpop.permute.xlu0 %1115  ;;  %v3848_v45 = vpop.f32.mrb[0].mxu0 }
 0x198   : > { %1196 = vst.msk [vmem:[#allocation4 + $0x80] sm:$0xff] %vm1179_vm7, %v1116_v42  ;;  %v2202_v56 = vadd.f32 %v3848_v45, %v4923_v0  ;;  %v1118_v57 = vpop.permute.xlu1 %1117  ;;  %v2196_v46 = vpop.f32.mrb[1].mxu0 }
 0x199   : > { %1197 = vst.msk [vmem:[#allocation4 + $0x88] sm:$0xff] %vm1179_vm7, %v1118_v57  ;;  %v2197_v47 = vadd.f32 %v4923_v0, %v2196_v46  ;;  %1902 = vrot.lane.b32.xlu0 %v4925_v41, %s3973_s15 }
 0x19a   : > { %554 = vrot.lane.b32.xlu1 %v4842_v11, %s3967_s26  ;;  %v2356_v52 = vmax.f32 %v2202_v56, 0.0 }
 0x19b   : > { %v2355_v33 = vmax.f32 %v2197_v47, 0.0  ;;  %v1309_v34 = vpop.permute.xlu0 %1308 }
 0x19c   : > { %2388 = vst.msk [vmem:[#allocation3 + $0x21] sm:$0xff] %vm269_vm13, %v2356_v52  ;;  %v1311_v53 = vpop.permute.xlu1 %1310  ;;  %v5053_v52 = vld [vmem:[#allocation2 + $0x169] sm:$0xff] }
 0x19d   : > { %1389 = vst.msk [vmem:[#allocation4 + $0x80] sm:$0xff] %vm1372_vm8, %v1309_v34  ;;  %1390 = vst.msk [vmem:[#allocation4 + $0x88] sm:$0xff] %vm1372_vm8, %v1311_v53  ;;  %745 = vrot.lane.b32.xlu0 %v4851_v13, %s3966_s25 }
 0x19e   : > { %2387 = vst.msk [vmem:[#allocation3 + $0x19] sm:$0xff] %vm269_vm13, %v2355_v33  ;;  %747 = vrot.lane.b32.xlu1 %v4860_v49, %s3966_s25  ;;  %v5055_v33 = vld [vmem:[#allocation2 + $0x171] sm:$0xff] }
 0x19f   : > { %v1503_v54 = vpop.permute.xlu0 %1502 }
 0x1a0   : > { %1583 = vst.msk [vmem:[#allocation4 + $0x80] sm:$0xff] %vm1566_vm9, %v1503_v54  ;;  %v1505_v59 = vpop.permute.xlu1 %1504 }
 0x1a1   : > { %1584 = vst.msk [vmem:[#allocation4 + $0x88] sm:$0xff] %vm1566_vm9, %v1505_v59  ;;  %938 = vrot.lane.b32.xlu0 %v4554_v50, %s3968_s27  ;;  %v5064_v59 = vld [vmem:[#allocation2 + $0x16a] sm:$0xff] }
 0x1a2   : > { %940 = vrot.lane.b32.xlu1 %v4556_v51, %s3968_s27 }
 0x1a3   : > { %v1696_v60 = vpop.permute.xlu0 %1695  ;;  %v2486_v61 = vld [vmem:[#allocation3 + $0x21] sm:$0xff] }
 0x1a4   : > { %1776 = vst.msk [vmem:[#allocation4 + $0x80] sm:$0xff] %vm1759_vm10, %v1696_v60  ;;  %v1698_v62 = vpop.permute.xlu1 %1697 }
 0x1a5   : > { %v2741_v63 = vld [vmem:[#allocation3 + $0x18] sm:$0xff]  ;;  %v2742_v1 = vld [vmem:[#allocation3 + $0x20] sm:$0xff]  ;;  %1777 = vst.msk [vmem:[#allocation4 + $0x88] sm:$0xff] %vm1759_vm10, %v1698_v62  ;;  %1131 = vrot.lane.b32.xlu0 %v4898_v32, %s3969_s28 }
 0x1a6   : > { %1133 = vrot.lane.b32.xlu1 %v4900_v35, %s3969_s28  ;;  %v4955_v2 = vpack.c.bf16 %v2742_v1, %v2741_v63  ;;  %v2485_v50 = vld [vmem:[#allocation3 + $0x19] sm:$0xff] }
 0x1a7   : > { %v4957_v5 = vpack.c.bf16 %v2486_v61, %v2485_v50  ;;  %v1889_v51 = vpop.permute.xlu0 %1888  ;;  %v3851_v6 = vpop.f32.mrb[2].mxu0 }
 0x1a8   : > { %2468 = vst.msk [vmem:[#allocation5 + $0x18] sm:$0xff] %vm269_vm13, %v4955_v2  ;;  %v541_v7 = vpop.permute.xlu1 %540  ;;  %v2212_v55 = vadd.f32 %v3851_v6, %v4923_v0  ;;  %v2206_v58 = vpop.f32.mrb[3].mxu0 }
 0x1a9   : > { %1969 = vst.msk [vmem:[#allocation4 + $0x80] sm:$0xff] %vm1952_vm11, %v1889_v51  ;;  %v2207_v8 = vadd.f32 %v4923_v0, %v2206_v58  ;;  %1324 = vrot.lane.b32.xlu0 %v4911_v39, %s3970_s29 }
 0x1aa   : > { %2918 = vst.msk [vmem:[#allocation5 + $0x8] sm:$0xff] %vm269_vm13, %v4957_v5  ;;  %1326 = vrot.lane.b32.xlu1 %v4925_v41, %s3970_s29  ;;  %v2358_v9 = vmax.f32 %v2212_v55, 0.0 }
 0x1ab   : > { %619 = vst.msk [vmem:[#allocation4 + $0x90] sm:$0xff] %vm600_vm4, %v541_v7  ;;  %v2357_v10 = vmax.f32 %v2207_v8, 0.0  ;;  %v1891_v11 = vpop.permute.xlu0 %1890  ;;  %v5077_v8 = vld [vmem:[#allocation2 + $0x172] sm:$0xff] }
 0x1ac   : > { %2390 = vst.msk [vmem:[#allocation3 + $0x39] sm:$0xff] %vm269_vm13, %v2358_v9  ;;  %v543_v12 = vpop.permute.xlu1 %542 }
 0x1ad   : > { %1970 = vst.msk [vmem:[#allocation4 + $0x88] sm:$0xff] %vm1952_vm11, %v1891_v11  ;;  %1518 = vrot.lane.b32.xlu0 %v4700_v15, %s3971_s30 }
 0x1ae   : > { %2389 = vst.msk [vmem:[#allocation3 + $0x31] sm:$0xff] %vm269_vm13, %v2357_v10  ;;  %1520 = vrot.lane.b32.xlu1 %v4702_v16, %s3971_s30 }
 0x1af   : > { %620 = vst.msk [vmem:[#allocation4 + $0x98] sm:$0xff] %vm600_vm4, %v543_v12  ;;  %v734_v13 = vpop.permute.xlu0 %733 }
 0x1b0   : > { %v2001_v14 = vld [vmem:[#allocation4 + $0x80] sm:$0xff]  ;;  %812 = vst.msk [vmem:[#allocation4 + $0x90] sm:$0xff] %vm793_vm5, %v734_v13  ;;  %v736_v17 = vpop.permute.xlu1 %735 }
 0x1b1   : > { %3870 = vmatprep.mubr.msk.f32.mxu0 %vm2029_vm12, %v2001_v14  ;;  %813 = vst.msk [vmem:[#allocation4 + $0x98] sm:$0xff] %vm793_vm5, %v736_v17  ;;  %1711 = vrot.lane.b32.xlu0 %v4979_v3, %s3972_s10 }
 0x1b2   : > { %1713 = vrot.lane.b32.xlu1 %v4981_v4, %s3972_s10 }
 0x1b3   : > { %v3320_v49 = vld [vmem:[#allocation3 + $0x3a] sm:$0xff]  ;;  %v927_v18 = vpop.permute.xlu0 %926 }
 0x1b4   : > { %v2002_v19 = vld [vmem:[#allocation4 + $0x88] sm:$0xff]  ;;  %1005 = vst.msk [vmem:[#allocation4 + $0x90] sm:$0xff] %vm986_vm6, %v927_v18  ;;  %v929_v24 = vpop.permute.xlu1 %928 }
 0x1b5   : > { %v3192_v22 = vld [vmem:[#allocation3 + $0x39] sm:$0xff]  ;;  %3871 = vmatmul.mubr.msk.f32.gmra.mrb[16].mxu0 %vm2029_vm12, %v2002_v19  ;;  %v3063_v25 = vld [vmem:[#allocation3 + $0x30] sm:$0xff]  ;;  %1006 = vst.msk [vmem:[#allocation4 + $0x98] sm:$0xff] %vm986_vm6, %v929_v24  ;;  %1904 = vrot.lane.b32.xlu0 %v4990_v48, %s3973_s15 }
 0x1b6   : > { %v3319_v23 = vld [vmem:[#allocation3 + $0x32] sm:$0xff]  ;;  %556 = vrot.lane.b32.xlu1 %v4898_v32, %s3967_s26 }
 0x1b7   : > { %v3064_v26 = vld [vmem:[#allocation3 + $0x38] sm:$0xff]  ;;  %v4994_v29 = vpack.c.bf16 %v3320_v49, %v3319_v23  ;;  %v1120_v36 = vpop.permute.xlu0 %1119  ;;  %v1434_v23 = vld [vmem:[#allocation2 + $0x180] sm:$0xff] }
 0x1b8   : > { %v5001_v30 = vpack.c.bf16 %v3064_v26, %v3063_v25  ;;  %v3191_v31 = vld [vmem:[#allocation3 + $0x31] sm:$0xff]  ;;  %1198 = vst.msk [vmem:[#allocation4 + $0x90] sm:$0xff] %vm1179_vm7, %v1120_v36  ;;  %v1122_v37 = vpop.permute.xlu1 %1121  ;;  %v1628_v36 = vld [vmem:[#allocation2 + $0x189] sm:$0xff] }
 0x1b9   : > { %v5005_v21 = vpack.c.bf16 %v3192_v22, %v3191_v31  ;;  %3367 = vst.msk [vmem:[#allocation5 + $0x10] sm:$0xff] %vm269_vm13, %v4994_v29  ;;  %1906 = vrot.lane.b32.xlu0 %v5003_v20, %s3973_s15  ;;  %v1435_v24 = vld [vmem:[#allocation2 + $0x188] sm:$0xff] }
 0x1ba   : > { %2469 = vst.msk [vmem:[#allocation5 + $0x30] sm:$0xff] %vm269_vm13, %v5001_v30  ;;  %558 = vrot.lane.b32.xlu1 %v4900_v35, %s3967_s26 }
 0x1bb   : > { %2919 = vst.msk [vmem:[#allocation5 + $0x20] sm:$0xff] %vm269_vm13, %v5005_v21  ;;  %v1313_v32 = vpop.permute.xlu0 %1312 }
 0x1bc   : > { %1199 = vst.msk [vmem:[#allocation4 + $0x98] sm:$0xff] %vm1179_vm7, %v1122_v37  ;;  %v1315_v38 = vpop.permute.xlu1 %1314 }
 0x1bd   : > { %1391 = vst.msk [vmem:[#allocation4 + $0x90] sm:$0xff] %vm1372_vm8, %v1313_v32  ;;  %1392 = vst.msk [vmem:[#allocation4 + $0x98] sm:$0xff] %vm1372_vm8, %v1315_v38  ;;  %749 = vrot.lane.b32.xlu0 %v4911_v39, %s3966_s25 }
 0x1be   : > { %751 = vrot.lane.b32.xlu1 %v4925_v41, %s3966_s25 }
 0x1bf   : > { %v1507_v40 = vpop.permute.xlu0 %1506 }
 0x1c0   : > { %1585 = vst.msk [vmem:[#allocation4 + $0x90] sm:$0xff] %vm1566_vm9, %v1507_v40  ;;  %v1509_v27 = vpop.permute.xlu1 %1508  ;;  %v1820_v40 = vld [vmem:[#allocation2 + $0x182] sm:$0xff] }
 0x1c1   : > { %1586 = vst.msk [vmem:[#allocation4 + $0x98] sm:$0xff] %vm1566_vm9, %v1509_v27  ;;  %942 = vrot.lane.b32.xlu0 %v4700_v15, %s3968_s27 }
 0x1c2   : > { %944 = vrot.lane.b32.xlu1 %v4702_v16, %s3968_s27 }
 0x1c3   : > { %v1700_v35 = vpop.permute.xlu0 %1699 }
 0x1c4   : > { %1778 = vst.msk [vmem:[#allocation4 + $0x90] sm:$0xff] %vm1759_vm10, %v1700_v35  ;;  %v1702_v28 = vpop.permute.xlu1 %1701 }
 0x1c5   : > { %1779 = vst.msk [vmem:[#allocation4 + $0x98] sm:$0xff] %vm1759_vm10, %v1702_v28  ;;  %1135 = vrot.lane.b32.xlu0 %v4979_v3, %s3969_s28 }
 0x1c6   : > { %1137 = vrot.lane.b32.xlu1 %v4981_v4, %s3969_s28 }
 0x1c7   : > { %v1893_v39 = vpop.permute.xlu0 %1892  ;;  %v3854_v41 = vpop.f32.mrb[4].mxu0 }
 0x1c8   : > { %1971 = vst.msk [vmem:[#allocation4 + $0x90] sm:$0xff] %vm1952_vm11, %v1893_v39  ;;  %v545_v15 = vpop.permute.xlu1 %544  ;;  %v2222_v42 = vadd.f32 %v3854_v41, %v4923_v0  ;;  %v2216_v16 = vpop.f32.mrb[5].mxu0 }
 0x1c9   : > { %621 = vst.msk [vmem:[#allocation4 + $0xa0] sm:$0xff] %vm600_vm4, %v545_v15  ;;  %v2217_v45 = vadd.f32 %v4923_v0, %v2216_v16  ;;  %1328 = vrot.lane.b32.xlu0 %v4990_v48, %s3970_s29 }
 0x1ca   : > { %1330 = vrot.lane.b32.xlu1 %v5003_v20, %s3970_s29  ;;  %v2360_v56 = vmax.f32 %v2222_v42, 0.0 }
 0x1cb   : > { %v2359_v57 = vmax.f32 %v2217_v45, 0.0  ;;  %v1895_v46 = vpop.permute.xlu0 %1894 }
 0x1cc   : > { %2392 = vst.msk [vmem:[#allocation3 + $0x51] sm:$0xff] %vm269_vm13, %v2360_v56  ;;  %v547_v47 = vpop.permute.xlu1 %546 }
 0x1cd   : > { %1972 = vst.msk [vmem:[#allocation4 + $0x98] sm:$0xff] %vm1952_vm11, %v1895_v46  ;;  %1522 = vrot.lane.b32.xlu0 %v4770_v43, %s3971_s30  ;;  %v1821_v46 = vld [vmem:[#allocation2 + $0x18a] sm:$0xff] }
 0x1ce   : > { %2391 = vst.msk [vmem:[#allocation3 + $0x49] sm:$0xff] %vm269_vm13, %v2359_v57  ;;  %1524 = vrot.lane.b32.xlu1 %v4772_v44, %s3971_s30 }
 0x1cf   : > { %622 = vst.msk [vmem:[#allocation4 + $0xa8] sm:$0xff] %vm600_vm4, %v547_v47  ;;  %v738_v34 = vpop.permute.xlu0 %737  ;;  %v2003_v53 = vld [vmem:[#allocation4 + $0x90] sm:$0xff] }
 0x1d0   : > { %814 = vst.msk [vmem:[#allocation4 + $0xa0] sm:$0xff] %vm793_vm5, %v738_v34  ;;  %v740_v54 = vpop.permute.xlu1 %739  ;;  %3873 = vmatprep.mubr.msk.f32.mxu0 %vm2029_vm12, %v2003_v53 }
 0x1d1   : > { %815 = vst.msk [vmem:[#allocation4 + $0xa8] sm:$0xff] %vm793_vm5, %v740_v54  ;;  %1715 = vrot.lane.b32.xlu0 %v5053_v52, %s3972_s10 }
 0x1d2   : > { %1717 = vrot.lane.b32.xlu1 %v5055_v33, %s3972_s10 }
 0x1d3   : > { %v3322_v60 = vld [vmem:[#allocation3 + $0x52] sm:$0xff]  ;;  %v931_v61 = vpop.permute.xlu0 %930 }
 0x1d4   : > { %v2004_v62 = vld [vmem:[#allocation4 + $0x98] sm:$0xff]  ;;  %v3194_v63 = vld [vmem:[#allocation3 + $0x51] sm:$0xff]  ;;  %1007 = vst.msk [vmem:[#allocation4 + $0xa0] sm:$0xff] %vm986_vm6, %v931_v61  ;;  %v933_v50 = vpop.permute.xlu1 %932 }
 0x1d5   : > { %v3321_v1 = vld [vmem:[#allocation3 + $0x4a] sm:$0xff]  ;;  %3874 = vmatmul.mubr.msk.f32.gmra.mrb[18].mxu0 %vm2029_vm12, %v2004_v62  ;;  %1008 = vst.msk [vmem:[#allocation4 + $0xa8] sm:$0xff] %vm986_vm6, %v933_v50  ;;  %1908 = vrot.lane.b32.xlu0 %v5064_v59, %s3973_s15 }
 0x1d6   : > { %v3065_v51 = vld [vmem:[#allocation3 + $0x48] sm:$0xff]  ;;  %v3066_v6 = vld [vmem:[#allocation3 + $0x50] sm:$0xff]  ;;  %v5068_v7 = vpack.c.bf16 %v3322_v60, %v3321_v1  ;;  %560 = vrot.lane.b32.xlu1 %v4979_v3, %s3967_s26 }
 0x1d7   : > { %v5075_v55 = vpack.c.bf16 %v3066_v6, %v3065_v51  ;;  %v3193_v58 = vld [vmem:[#allocation3 + $0x49] sm:$0xff]  ;;  %v1124_v10 = vpop.permute.xlu0 %1123 }
 0x1d8   : > { %v5079_v9 = vpack.c.bf16 %v3194_v63, %v3193_v58  ;;  %3368 = vst.msk [vmem:[#allocation5 + $0x28] sm:$0xff] %vm269_vm13, %v5068_v7  ;;  %v1126_v11 = vpop.permute.xlu1 %1125 }
 0x1d9   : > { %2470 = vst.msk [vmem:[#allocation5 + $0x48] sm:$0xff] %vm269_vm13, %v5075_v55  ;;  %1910 = vrot.lane.b32.xlu0 %v5077_v8, %s3973_s15 }
 0x1da   : > { %1200 = vst.msk [vmem:[#allocation4 + $0xa0] sm:$0xff] %vm1179_vm7, %v1124_v10  ;;  %1201 = vst.msk [vmem:[#allocation4 + $0xa8] sm:$0xff] %vm1179_vm7, %v1126_v11  ;;  %562 = vrot.lane.b32.xlu1 %v4981_v4, %s3967_s26  ;;  %v1437_v10 = vld [vmem:[#allocation2 + $0x1a0] sm:$0xff] }
 0x1db   : > { %2920 = vst.msk [vmem:[#allocation5 + $0x38] sm:$0xff] %vm269_vm13, %v5079_v9  ;;  %v1317_v12 = vpop.permute.xlu0 %1316 }
 0x1dc   : > { %1393 = vst.msk [vmem:[#allocation4 + $0xa0] sm:$0xff] %vm1372_vm8, %v1317_v12  ;;  %v1319_v3 = vpop.permute.xlu1 %1318 }
 0x1dd   : > { %1394 = vst.msk [vmem:[#allocation4 + $0xa8] sm:$0xff] %vm1372_vm8, %v1319_v3  ;;  %753 = vrot.lane.b32.xlu0 %v4990_v48, %s3966_s25 }
 0x1de   : > { %755 = vrot.lane.b32.xlu1 %v5003_v20, %s3966_s25  ;;  %v1627_v20 = vld [vmem:[#allocation2 + $0x181] sm:$0xff] }
 0x1df   : > { %v1511_v13 = vpop.permute.xlu0 %1510 }
 0x1e0   : > { %1587 = vst.msk [vmem:[#allocation4 + $0xa0] sm:$0xff] %vm1566_vm9, %v1511_v13  ;;  %v1513_v14 = vpop.permute.xlu1 %1512  ;;  %v1629_v13 = vld [vmem:[#allocation2 + $0x199] sm:$0xff] }
 0x1e1   : > { %1588 = vst.msk [vmem:[#allocation4 + $0xa8] sm:$0xff] %vm1566_vm9, %v1513_v14  ;;  %946 = vrot.lane.b32.xlu0 %v4770_v43, %s3968_s27  ;;  %v1630_v14 = vld [vmem:[#allocation2 + $0x1a1] sm:$0xff] }
 0x1e2   : > { %948 = vrot.lane.b32.xlu1 %v4772_v44, %s3968_s27 }
 0x1e3   : > { %v1704_v4 = vpop.permute.xlu0 %1703 }
 0x1e4   : > { %1780 = vst.msk [vmem:[#allocation4 + $0xa0] sm:$0xff] %vm1759_vm10, %v1704_v4  ;;  %v1706_v17 = vpop.permute.xlu1 %1705 }
 0x1e5   : > { %1781 = vst.msk [vmem:[#allocation4 + $0xa8] sm:$0xff] %vm1759_vm10, %v1706_v17  ;;  %1139 = vrot.lane.b32.xlu0 %v5053_v52, %s3969_s28 }
 0x1e6   : > { %1141 = vrot.lane.b32.xlu1 %v5055_v33, %s3969_s28 }
 0x1e7   : > { %v1897_v48 = vpop.permute.xlu0 %1896  ;;  %v3857_v49 = vpop.f32.mrb[6].mxu0 }
 0x1e8   : > { %1973 = vst.msk [vmem:[#allocation4 + $0xa0] sm:$0xff] %vm1952_vm11, %v1897_v48  ;;  %v549_v43 = vpop.permute.xlu1 %548  ;;  %v2232_v18 = vadd.f32 %v3857_v49, %v4923_v0  ;;  %v2226_v44 = vpop.f32.mrb[7].mxu0  ;;  %v2419_v48 = vld [vmem:[#allocation3] sm:$0xff]  ;;  %v2420_v49 = vld [vmem:[#allocation3 + $0x8] sm:$0xff] }
 0x1e9   : > { %623 = vst.msk [vmem:[#allocation4 + $0xb0] sm:$0xff] %vm600_vm4, %v549_v43  ;;  %v2227_v19 = vadd.f32 %v4923_v0, %v2226_v44  ;;  %1332 = vrot.lane.b32.xlu0 %v5064_v59, %s3970_s29  ;;  %v1822_v44 = vld [vmem:[#allocation2 + $0x19a] sm:$0xff] }
 0x1ea   : > { %1334 = vrot.lane.b32.xlu1 %v5077_v8, %s3970_s29  ;;  %v2362_v22 = vmax.f32 %v2232_v18, 0.0  ;;  %v2451_v18 = vpack.c.bf16 %v2420_v49, %v2419_v48 }
 0x1eb   : > { %v2361_v25 = vmax.f32 %v2227_v19, 0.0  ;;  %v1899_v26 = vpop.permute.xlu0 %1898  ;;  %v1823_v19 = vld [vmem:[#allocation2 + $0x1a2] sm:$0xff] }
 0x1ec   : > { %2394 = vst.msk [vmem:[#allocation3 + $0x69] sm:$0xff] %vm269_vm13, %v2362_v22  ;;  %v551_v31 = vpop.permute.xlu1 %550  ;;  %v2483_v22 = vld [vmem:[#allocation3 + $0x1] sm:$0xff]  ;;  %2467 = vst.msk [vmem:[#allocation5] sm:$0xff] %vm269_vm13, %v2451_v18 }
 0x1ed   : > { %1974 = vst.msk [vmem:[#allocation4 + $0xa8] sm:$0xff] %vm1952_vm11, %v1899_v26  ;;  %1526 = vrot.lane.b32.xlu0 %v1434_v23, %s3971_s30 }
 0x1ee   : > { %2393 = vst.msk [vmem:[#allocation3 + $0x61] sm:$0xff] %vm269_vm13, %v2361_v25  ;;  %1528 = vrot.lane.b32.xlu1 %v1435_v24, %s3971_s30  ;;  %v2484_v25 = vld [vmem:[#allocation3 + $0x9] sm:$0xff] }
 0x1ef   : > { %624 = vst.msk [vmem:[#allocation4 + $0xb8] sm:$0xff] %vm600_vm4, %v551_v31  ;;  %v742_v37 = vpop.permute.xlu0 %741  ;;  %v2005_v32 = vld [vmem:[#allocation4 + $0xa0] sm:$0xff] }
 0x1f0   : > { %816 = vst.msk [vmem:[#allocation4 + $0xb0] sm:$0xff] %vm793_vm5, %v742_v37  ;;  %v744_v38 = vpop.permute.xlu1 %743  ;;  %3876 = vmatprep.mubr.msk.f32.mxu0 %vm2029_vm12, %v2005_v32 }
 0x1f1   : > { %817 = vst.msk [vmem:[#allocation4 + $0xb8] sm:$0xff] %vm793_vm5, %v744_v38  ;;  %1719 = vrot.lane.b32.xlu0 %v1627_v20, %s3972_s10 }
 0x1f2   : > { %1721 = vrot.lane.b32.xlu1 %v1628_v36, %s3972_s10 }
 0x1f3   : > { %v3324_v27 = vld [vmem:[#allocation3 + $0x6a] sm:$0xff]  ;;  %v935_v35 = vpop.permute.xlu0 %934 }
 0x1f4   : > { %v2006_v28 = vld [vmem:[#allocation4 + $0xa8] sm:$0xff]  ;;  %v3196_v39 = vld [vmem:[#allocation3 + $0x69] sm:$0xff]  ;;  %1009 = vst.msk [vmem:[#allocation4 + $0xb0] sm:$0xff] %vm986_vm6, %v935_v35  ;;  %v937_v15 = vpop.permute.xlu1 %936  ;;  %v2515_v35 = vpack.c.bf16 %v2484_v25, %v2483_v22 }
 0x1f5   : > { %v3323_v41 = vld [vmem:[#allocation3 + $0x62] sm:$0xff]  ;;  %3877 = vmatmul.mubr.msk.f32.gmra.mrb[20].mxu0 %vm2029_vm12, %v2006_v28  ;;  %1010 = vst.msk [vmem:[#allocation4 + $0xb8] sm:$0xff] %vm986_vm6, %v937_v15  ;;  %1912 = vrot.lane.b32.xlu0 %v1820_v40, %s3973_s15  ;;  %v2613_v15 = vld [vmem:[#allocation3 + $0xa] sm:$0xff] }
 0x1f6   : > { %v3067_v42 = vld [vmem:[#allocation3 + $0x60] sm:$0xff]  ;;  %v3068_v16 = vld [vmem:[#allocation3 + $0x68] sm:$0xff]  ;;  %v5132_v45 = vpack.c.bf16 %v3324_v27, %v3323_v41  ;;  %564 = vrot.lane.b32.xlu1 %v5053_v52, %s3967_s26 }
 0x1f7   : > { %v5138_v56 = vpack.c.bf16 %v3068_v16, %v3067_v42  ;;  %v3195_v57 = vld [vmem:[#allocation3 + $0x61] sm:$0xff]  ;;  %v1128_v34 = vpop.permute.xlu0 %1127 }
 0x1f8   : > { %v5140_v47 = vpack.c.bf16 %v3196_v39, %v3195_v57  ;;  %3369 = vst.msk [vmem:[#allocation5 + $0x40] sm:$0xff] %vm269_vm13, %v5132_v45  ;;  %v1130_v53 = vpop.permute.xlu1 %1129  ;;  %v2612_v41 = vld [vmem:[#allocation3 + $0x2] sm:$0xff] }
 0x1f9   : > { %2471 = vst.msk [vmem:[#allocation5 + $0x60] sm:$0xff] %vm269_vm13, %v5138_v56  ;;  %1914 = vrot.lane.b32.xlu0 %v1821_v46, %s3973_s15 }
 0x1fa   : > { %1202 = vst.msk [vmem:[#allocation4 + $0xb0] sm:$0xff] %vm1179_vm7, %v1128_v34  ;;  %1203 = vst.msk [vmem:[#allocation4 + $0xb8] sm:$0xff] %vm1179_vm7, %v1130_v53  ;;  %566 = vrot.lane.b32.xlu1 %v5055_v33, %s3967_s26  ;;  %v2644_v34 = vpack.c.bf16 %v2613_v15, %v2612_v41 }
 0x1fb   : > { %2921 = vst.msk [vmem:[#allocation5 + $0x50] sm:$0xff] %vm269_vm13, %v5140_v47  ;;  %v1321_v52 = vpop.permute.xlu0 %1320 }
 0x1fc   : > { %1395 = vst.msk [vmem:[#allocation4 + $0xb0] sm:$0xff] %vm1372_vm8, %v1321_v52  ;;  %v1323_v54 = vpop.permute.xlu1 %1322 }
 0x1fd   : > { %1396 = vst.msk [vmem:[#allocation4 + $0xb8] sm:$0xff] %vm1372_vm8, %v1323_v54  ;;  %757 = vrot.lane.b32.xlu0 %v5064_v59, %s3966_s25 }
 0x1fe   : > { %759 = vrot.lane.b32.xlu1 %v5077_v8, %s3966_s25  ;;  %v1436_v8 = vld [vmem:[#allocation2 + $0x198] sm:$0xff] }
 0x1ff   : > { %v1515_v60 = vpop.permute.xlu0 %1514 }
 0x200   : > { %1589 = vst.msk [vmem:[#allocation4 + $0xb0] sm:$0xff] %vm1566_vm9, %v1515_v60  ;;  %v1517_v61 = vpop.permute.xlu1 %1516 }
 0x201   : > { %1590 = vst.msk [vmem:[#allocation4 + $0xb8] sm:$0xff] %vm1566_vm9, %v1517_v61  ;;  %950 = vrot.lane.b32.xlu0 %v1434_v23, %s3968_s27  ;;  %v2934_v23 = vld [vmem:[#allocation3 + $0x1a] sm:$0xff] }
 0x202   : > { %952 = vrot.lane.b32.xlu1 %v1435_v24, %s3968_s27  ;;  %v2935_v24 = vld [vmem:[#allocation3 + $0x22] sm:$0xff] }
 0x203   : > { %v1708_v33 = vpop.permute.xlu0 %1707  ;;  %v2966_v57 = vpack.c.bf16 %v2935_v24, %v2934_v23 }
 0x204   : > { %1782 = vst.msk [vmem:[#allocation4 + $0xb0] sm:$0xff] %vm1759_vm10, %v1708_v33  ;;  %v1710_v62 = vpop.permute.xlu1 %1709 }
 0x205   : > { %1783 = vst.msk [vmem:[#allocation4 + $0xb8] sm:$0xff] %vm1759_vm10, %v1710_v62  ;;  %1143 = vrot.lane.b32.xlu0 %v1627_v20, %s3969_s28 }
 0x206   : > { %1145 = vrot.lane.b32.xlu1 %v1628_v36, %s3969_s28 }
 0x207   : > { %v1901_v59 = vpop.permute.xlu0 %1900  ;;  %v3860_v63 = vpop.f32.mrb[8].mxu0 }
 0x208   : > { %1975 = vst.msk [vmem:[#allocation4 + $0xb0] sm:$0xff] %vm1952_vm11, %v1901_v59  ;;  %v553_v1 = vpop.permute.xlu1 %552  ;;  %v2242_v50 = vadd.f32 %v3860_v63, %v4923_v0  ;;  %v2236_v51 = vpop.f32.mrb[9].mxu0 }
 0x209   : > { %625 = vst.msk [vmem:[#allocation4 + $0xc0] sm:$0xff] %vm600_vm4, %v553_v1  ;;  %v2237_v6 = vadd.f32 %v4923_v0, %v2236_v51  ;;  %1336 = vrot.lane.b32.xlu0 %v1820_v40, %s3970_s29 }
 0x20a   : > { %1338 = vrot.lane.b32.xlu1 %v1821_v46, %s3970_s29  ;;  %v2364_v58 = vmax.f32 %v2242_v50, 0.0 }
 0x20b   : > { %v2363_v11 = vmax.f32 %v2237_v6, 0.0  ;;  %v1903_v12 = vpop.permute.xlu0 %1902 }
 0x20c   : > { %2396 = vst.msk [vmem:[#allocation3 + $0x81] sm:$0xff] %vm269_vm13, %v2364_v58  ;;  %v555_v3 = vpop.permute.xlu1 %554 }
 0x20d   : > { %1976 = vst.msk [vmem:[#allocation4 + $0xb8] sm:$0xff] %vm1952_vm11, %v1903_v12  ;;  %1530 = vrot.lane.b32.xlu0 %v1436_v8, %s3971_s30 }
 0x20e   : > { %2395 = vst.msk [vmem:[#allocation3 + $0x79] sm:$0xff] %vm269_vm13, %v2363_v11  ;;  %1532 = vrot.lane.b32.xlu1 %v1437_v10, %s3971_s30 }
 0x20f   : > { %626 = vst.msk [vmem:[#allocation4 + $0xc8] sm:$0xff] %vm600_vm4, %v555_v3  ;;  %v746_v4 = vpop.permute.xlu0 %745  ;;  %v2007_v17 = vld [vmem:[#allocation4 + $0xb0] sm:$0xff] }
 0x210   : > { %818 = vst.msk [vmem:[#allocation4 + $0xc0] sm:$0xff] %vm793_vm5, %v746_v4  ;;  %v748_v43 = vpop.permute.xlu1 %747  ;;  %3879 = vmatprep.mubr.msk.f32.mxu0 %vm2029_vm12, %v2007_v17 }
 0x211   : > { %819 = vst.msk [vmem:[#allocation4 + $0xc8] sm:$0xff] %vm793_vm5, %v748_v43  ;;  %1723 = vrot.lane.b32.xlu0 %v1629_v13, %s3972_s10 }
 0x212   : > { %1725 = vrot.lane.b32.xlu1 %v1630_v14, %s3972_s10 }
 0x213   : > { %v3326_v26 = vld [vmem:[#allocation3 + $0x82] sm:$0xff]  ;;  %v939_v31 = vpop.permute.xlu0 %938 }
 0x214   : > { %v2008_v20 = vld [vmem:[#allocation4 + $0xb8] sm:$0xff]  ;;  %1011 = vst.msk [vmem:[#allocation4 + $0xc0] sm:$0xff] %vm986_vm6, %v939_v31  ;;  %v941_v32 = vpop.permute.xlu1 %940 }
 0x215   : > { %v3198_v36 = vld [vmem:[#allocation3 + $0x81] sm:$0xff]  ;;  %3880 = vmatmul.mubr.msk.f32.gmra.mrb[22].mxu0 %vm2029_vm12, %v2008_v20  ;;  %v3069_v38 = vld [vmem:[#allocation3 + $0x78] sm:$0xff]  ;;  %1012 = vst.msk [vmem:[#allocation4 + $0xc8] sm:$0xff] %vm986_vm6, %v941_v32  ;;  %1916 = vrot.lane.b32.xlu0 %v1822_v44, %s3973_s15 }
 0x216   : > { %v3325_v37 = vld [vmem:[#allocation3 + $0x7a] sm:$0xff]  ;;  %1918 = vrot.lane.b32.xlu1 %v1823_v19, %s3973_s15 }
 0x217   : > { %v3070_v40 = vld [vmem:[#allocation3 + $0x80] sm:$0xff]  ;;  %v5187_v27 = vpack.c.bf16 %v3326_v26, %v3325_v37  ;;  %v1132_v16 = vpop.permute.xlu0 %1131 }
 0x218   : > { %v5192_v28 = vpack.c.bf16 %v3070_v40, %v3069_v38  ;;  %v3197_v39 = vld [vmem:[#allocation3 + $0x79] sm:$0xff]  ;;  %1204 = vst.msk [vmem:[#allocation4 + $0xc0] sm:$0xff] %vm1179_vm7, %v1132_v16  ;;  %v1134_v46 = vpop.permute.xlu1 %1133 }
 0x219   : > { %v5194_v42 = vpack.c.bf16 %v3198_v36, %v3197_v39  ;;  %3370 = vst.msk [vmem:[#allocation5 + $0x58] sm:$0xff] %vm269_vm13, %v5187_v27  ;;  %2998 = vrot.lane.b32.xlu0 %v2966_v57, %s3973_s15 }
 0x21a   : > { %2472 = vst.msk [vmem:[#allocation5 + $0x78] sm:$0xff] %vm269_vm13, %v5192_v28  ;;  %2547 = vrot.lane.b32.xlu1 %v2515_v35, %s3973_s15 }
 0x21b   : > { %2922 = vst.msk [vmem:[#allocation5 + $0x68] sm:$0xff] %vm269_vm13, %v5194_v42  ;;  %v1325_v53 = vpop.permute.xlu0 %1324 }
 0x21c   : > { %1205 = vst.msk [vmem:[#allocation4 + $0xc8] sm:$0xff] %vm1179_vm7, %v1134_v46  ;;  %v1327_v52 = vpop.permute.xlu1 %1326 }
 0x21d   : > { %1397 = vst.msk [vmem:[#allocation4 + $0xc0] sm:$0xff] %vm1372_vm8, %v1325_v53  ;;  %1398 = vst.msk [vmem:[#allocation4 + $0xc8] sm:$0xff] %vm1372_vm8, %v1327_v52  ;;  %3127 = vrot.lane.b32.xlu0 %v5001_v30, %s3974_s22 }
 0x21e   : > { %2676 = vrot.lane.b32.xlu1 %v2644_v34, %s3974_s22 }
 0x21f   : > { %v1519_v54 = vpop.permute.xlu0 %1518 }
 0x220   : > { %1591 = vst.msk [vmem:[#allocation4 + $0xc0] sm:$0xff] %vm1566_vm9, %v1519_v54  ;;  %v1521_v60 = vpop.permute.xlu1 %1520 }
 0x221   : > { %1592 = vst.msk [vmem:[#allocation4 + $0xc8] sm:$0xff] %vm1566_vm9, %v1521_v60  ;;  %3255 = vrot.lane.b32.xlu0 %v5005_v21, %s3975_s23 }
 0x222   : > { %2805 = vrot.lane.b32.xlu1 %v4955_v2, %s3975_s23 }
 0x223   : > { %v1712_v61 = vpop.permute.xlu0 %1711 }
 0x224   : > { %1784 = vst.msk [vmem:[#allocation4 + $0xc0] sm:$0xff] %vm1759_vm10, %v1712_v61  ;;  %v1714_v33 = vpop.permute.xlu1 %1713 }
 0x225   : > { %1785 = vst.msk [vmem:[#allocation4 + $0xc8] sm:$0xff] %vm1759_vm10, %v1714_v33  ;;  %3000 = vrot.lane.b32.xlu0 %v4994_v29, %s3973_s15 }
 0x226   : > { %2549 = vrot.lane.b32.xlu1 %v4957_v5, %s3973_s15 }
 0x227   : > { %v1905_v62 = vpop.permute.xlu0 %1904  ;;  %v3863_v59 = vpop.f32.mrb[10].mxu0 }
 0x228   : > { %1977 = vst.msk [vmem:[#allocation4 + $0xc0] sm:$0xff] %vm1952_vm11, %v1905_v62  ;;  %v557_v2 = vpop.permute.xlu1 %556  ;;  %v2252_v63 = vadd.f32 %v3863_v59, %v4923_v0  ;;  %v2246_v1 = vpop.f32.mrb[11].mxu0 }
 0x229   : > { %627 = vst.msk [vmem:[#allocation4 + $0xd0] sm:$0xff] %vm600_vm4, %v557_v2  ;;  %v2247_v50 = vadd.f32 %v4923_v0, %v2246_v1  ;;  %3129 = vrot.lane.b32.xlu0 %v5075_v55, %s3974_s22 }
 0x22a   : > { %2678 = vrot.lane.b32.xlu1 %v2966_v57, %s3974_s22  ;;  %v2366_v5 = vmax.f32 %v2252_v63, 0.0 }
 0x22b   : > { %v2365_v51 = vmax.f32 %v2247_v50, 0.0  ;;  %v1907_v6 = vpop.permute.xlu0 %1906  ;;  %v5344_v50 = vld [vmem:[%s5652_s2] ss:$0 sm:$0xff] }
 0x22c   : > { %2398 = vst.msk [vmem:[#allocation3 + $0x99] sm:$0xff] %vm269_vm13, %v2366_v5  ;;  %v559_v58 = vpop.permute.xlu1 %558 }
 0x22d   : > { %1978 = vst.msk [vmem:[#allocation4 + $0xc8] sm:$0xff] %vm1952_vm11, %v1907_v6  ;;  %3257 = vrot.lane.b32.xlu0 %v5079_v9, %s3975_s23 }
 0x22e   : > { %2397 = vst.msk [vmem:[#allocation3 + $0x91] sm:$0xff] %vm269_vm13, %v2365_v51  ;;  %2807 = vrot.lane.b32.xlu1 %v5001_v30, %s3975_s23 }
 0x22f   : > { %628 = vst.msk [vmem:[#allocation4 + $0xd8] sm:$0xff] %vm600_vm4, %v559_v58  ;;  %v750_v8 = vpop.permute.xlu0 %749  ;;  %v2009_v10 = vld [vmem:[#allocation4 + $0xc0] sm:$0xff] }
 0x230   : > { %820 = vst.msk [vmem:[#allocation4 + $0xd0] sm:$0xff] %vm793_vm5, %v750_v8  ;;  %v752_v11 = vpop.permute.xlu1 %751  ;;  %3882 = vmatprep.mubr.msk.f32.mxu0 %vm2029_vm12, %v2009_v10 }
 0x231   : > { %821 = vst.msk [vmem:[#allocation4 + $0xd8] sm:$0xff] %vm793_vm5, %v752_v11  ;;  %3002 = vrot.lane.b32.xlu0 %v5068_v7, %s3973_s15 }
 0x232   : > { %2551 = vrot.lane.b32.xlu1 %v5005_v21, %s3973_s15 }
 0x233   : > { %v3328_v12 = vld [vmem:[#allocation3 + $0x9a] sm:$0xff]  ;;  %v943_v3 = vpop.permute.xlu0 %942 }
 0x234   : > { %v2010_v13 = vld [vmem:[#allocation4 + $0xc8] sm:$0xff]  ;;  %1013 = vst.msk [vmem:[#allocation4 + $0xd0] sm:$0xff] %vm986_vm6, %v943_v3  ;;  %v945_v4 = vpop.permute.xlu1 %944 }
 0x235   : > { %v3200_v14 = vld [vmem:[#allocation3 + $0x99] sm:$0xff]  ;;  %3883 = vmatmul.mubr.msk.f32.gmra.mrb[24].mxu0 %vm2029_vm12, %v2010_v13  ;;  %v3071_v17 = vld [vmem:[#allocation3 + $0x90] sm:$0xff]  ;;  %1014 = vst.msk [vmem:[#allocation4 + $0xd8] sm:$0xff] %vm986_vm6, %v945_v4  ;;  %3131 = vrot.lane.b32.xlu0 %v5138_v56, %s3974_s22 }
 0x236   : > { %v3327_v30 = vld [vmem:[#allocation3 + $0x92] sm:$0xff]  ;;  %2680 = vrot.lane.b32.xlu1 %v4994_v29, %s3974_s22 }
 0x237   : > { %v3072_v48 = vld [vmem:[#allocation3 + $0x98] sm:$0xff]  ;;  %v5247_v49 = vpack.c.bf16 %v3328_v12, %v3327_v30  ;;  %v1136_v44 = vpop.permute.xlu0 %1135 }
 0x238   : > { %v5254_v21 = vpack.c.bf16 %v3072_v48, %v3071_v17  ;;  %v3199_v43 = vld [vmem:[#allocation3 + $0x91] sm:$0xff]  ;;  %1206 = vst.msk [vmem:[#allocation4 + $0xd0] sm:$0xff] %vm1179_vm7, %v1136_v44  ;;  %v1138_v19 = vpop.permute.xlu1 %1137 }
 0x239   : > { %v5256_v18 = vpack.c.bf16 %v3200_v14, %v3199_v43  ;;  %3371 = vst.msk [vmem:[#allocation5 + $0x70] sm:$0xff] %vm269_vm13, %v5247_v49  ;;  %3259 = vrot.lane.b32.xlu0 %v5140_v47, %s3975_s23 }
 0x23a   : > { %2473 = vst.msk [vmem:[#allocation5 + $0x90] sm:$0xff] %vm269_vm13, %v5254_v21  ;;  %2809 = vrot.lane.b32.xlu1 %v5075_v55, %s3975_s23 }
 0x23b   : > { %2923 = vst.msk [vmem:[#allocation5 + $0x80] sm:$0xff] %vm269_vm13, %v5256_v18  ;;  %v1329_v29 = vpop.permute.xlu0 %1328 }
 0x23c   : > { %1207 = vst.msk [vmem:[#allocation4 + $0xd8] sm:$0xff] %vm1179_vm7, %v1138_v19  ;;  %v1331_v22 = vpop.permute.xlu1 %1330 }
 0x23d   : > { %1399 = vst.msk [vmem:[#allocation4 + $0xd0] sm:$0xff] %vm1372_vm8, %v1329_v29  ;;  %1400 = vst.msk [vmem:[#allocation4 + $0xd8] sm:$0xff] %vm1372_vm8, %v1331_v22  ;;  %3004 = vrot.lane.b32.xlu0 %v5132_v45, %s3973_s15 }
 0x23e   : > { %2553 = vrot.lane.b32.xlu1 %v5079_v9, %s3973_s15 }
 0x23f   : > { %v1523_v23 = vpop.permute.xlu0 %1522 }
 0x240   : > { %1593 = vst.msk [vmem:[#allocation4 + $0xd0] sm:$0xff] %vm1566_vm9, %v1523_v23  ;;  %v1525_v24 = vpop.permute.xlu1 %1524 }
 0x241   : > { %1594 = vst.msk [vmem:[#allocation4 + $0xd8] sm:$0xff] %vm1566_vm9, %v1525_v24  ;;  %3133 = vrot.lane.b32.xlu0 %v5192_v28, %s3974_s22 }
 0x242   : > { %2682 = vrot.lane.b32.xlu1 %v5068_v7, %s3974_s22 }
 0x243   : > { %v1716_v55 = vpop.permute.xlu0 %1715 }
 0x244   : > { %1786 = vst.msk [vmem:[#allocation4 + $0xd0] sm:$0xff] %vm1759_vm10, %v1716_v55  ;;  %v1718_v25 = vpop.permute.xlu1 %1717 }
 0x245   : > { %1787 = vst.msk [vmem:[#allocation4 + $0xd8] sm:$0xff] %vm1759_vm10, %v1718_v25  ;;  %3261 = vrot.lane.b32.xlu0 %v5194_v42, %s3975_s23 }
 0x246   : > { %2811 = vrot.lane.b32.xlu1 %v5138_v56, %s3975_s23 }
 0x247   : > { %v1909_v9 = vpop.permute.xlu0 %1908  ;;  %v3866_v26 = vpop.f32.mrb[12].mxu0 }
 0x248   : > { %1979 = vst.msk [vmem:[#allocation4 + $0xd0] sm:$0xff] %vm1952_vm11, %v1909_v9  ;;  %v561_v31 = vpop.permute.xlu1 %560  ;;  %v2262_v20 = vadd.f32 %v3866_v26, %v4923_v0  ;;  %v2256_v7 = vpop.f32.mrb[13].mxu0 }
 0x249   : > { %629 = vst.msk [vmem:[#allocation4 + $0xe0] sm:$0xff] %vm600_vm4, %v561_v31  ;;  %v2257_v36 = vadd.f32 %v4923_v0, %v2256_v7  ;;  %3006 = vrot.lane.b32.xlu0 %v5187_v27, %s3973_s15 }
 0x24a   : > { %2555 = vrot.lane.b32.xlu1 %v5140_v47, %s3973_s15  ;;  %v2368_v37 = vmax.f32 %v2262_v20, 0.0 }
 0x24b   : > { %v2367_v56 = vmax.f32 %v2257_v36, 0.0  ;;  %v1911_v32 = vpop.permute.xlu0 %1910 }
 0x24c   : > { %2400 = vst.msk [vmem:[#allocation3 + $0xb1] sm:$0xff] %vm269_vm13, %v2368_v37  ;;  %v563_v38 = vpop.permute.xlu1 %562 }
 0x24d   : > { %1980 = vst.msk [vmem:[#allocation4 + $0xd8] sm:$0xff] %vm1952_vm11, %v1911_v32  ;;  %3135 = vrot.lane.b32.xlu0 %v5254_v21, %s3974_s22 }
 0x24e   : > { %2399 = vst.msk [vmem:[#allocation3 + $0xa9] sm:$0xff] %vm269_vm13, %v2367_v56  ;;  %2684 = vrot.lane.b32.xlu1 %v5132_v45, %s3974_s22 }
 0x24f   : > { %630 = vst.msk [vmem:[#allocation4 + $0xe8] sm:$0xff] %vm600_vm4, %v563_v38  ;;  %v754_v0 = vpop.permute.xlu0 %753  ;;  %v2011_v47 = vld [vmem:[#allocation4 + $0xd0] sm:$0xff] }
 0x250   : > { %822 = vst.msk [vmem:[#allocation4 + $0xe0] sm:$0xff] %vm793_vm5, %v754_v0  ;;  %v756_v40 = vpop.permute.xlu1 %755  ;;  %3885 = vmatprep.mubr.msk.f32.mxu0 %vm2029_vm12, %v2011_v47 }
 0x251   : > { %823 = vst.msk [vmem:[#allocation4 + $0xe8] sm:$0xff] %vm793_vm5, %v756_v40  ;;  %3263 = vrot.lane.b32.xlu0 %v5256_v18, %s3975_s23 }
 0x252   : > { %2813 = vrot.lane.b32.xlu1 %v5192_v28, %s3975_s23 }
 0x253   : > { %v3330_v35 = vld [vmem:[#allocation3 + $0xb2] sm:$0xff]  ;;  %v947_v39 = vpop.permute.xlu0 %946 }
 0x254   : > { %v2012_v41 = vld [vmem:[#allocation4 + $0xd8] sm:$0xff]  ;;  %v3202_v15 = vld [vmem:[#allocation3 + $0xb1] sm:$0xff]  ;;  %1015 = vst.msk [vmem:[#allocation4 + $0xe0] sm:$0xff] %vm986_vm6, %v947_v39  ;;  %v949_v16 = vpop.permute.xlu1 %948 }
 0x255   : > { %v3329_v45 = vld [vmem:[#allocation3 + $0xaa] sm:$0xff]  ;;  %3886 = vmatmul.mubr.msk.f32.gmra.mrb[26].mxu0 %vm2029_vm12, %v2012_v41  ;;  %1016 = vst.msk [vmem:[#allocation4 + $0xe8] sm:$0xff] %vm986_vm6, %v949_v16  ;;  %3008 = vrot.lane.b32.xlu0 %v5247_v49, %s3973_s15 }
 0x256   : > { %v3073_v57 = vld [vmem:[#allocation3 + $0xa8] sm:$0xff]  ;;  %v3074_v46 = vld [vmem:[#allocation3 + $0xb0] sm:$0xff]  ;;  %v3356_v34 = vpack.c.bf16 %v3330_v35, %v3329_v45  ;;  %2557 = vrot.lane.b32.xlu1 %v5194_v42, %s3973_s15 }
 0x257   : > { %v3100_v28 = vpack.c.bf16 %v3074_v46, %v3073_v57  ;;  %v3201_v53 = vld [vmem:[#allocation3 + $0xa9] sm:$0xff]  ;;  %v1140_v54 = vpop.permute.xlu0 %1139 }
 0x258   : > { %v3228_v52 = vpack.c.bf16 %v3202_v15, %v3201_v53  ;;  %3372 = vst.msk [vmem:[#allocation5 + $0x88] sm:$0xff] %vm269_vm13, %v3356_v34  ;;  %v1142_v60 = vpop.permute.xlu1 %1141 }
 0x259   : > { %2474 = vst.msk [vmem:[#allocation5 + $0xa8] sm:$0xff] %vm269_vm13, %v3100_v28  ;;  %3137 = vrot.lane.b32.xlu0 %v3100_v28, %s3974_s22 }
 0x25a   : > { %1208 = vst.msk [vmem:[#allocation4 + $0xe0] sm:$0xff] %vm1179_vm7, %v1140_v54  ;;  %1209 = vst.msk [vmem:[#allocation4 + $0xe8] sm:$0xff] %vm1179_vm7, %v1142_v60  ;;  %2686 = vrot.lane.b32.xlu1 %v5187_v27, %s3974_s22 }
 0x25b   : > { %2924 = vst.msk [vmem:[#allocation5 + $0x98] sm:$0xff] %vm269_vm13, %v3228_v52  ;;  %v1333_v42 = vpop.permute.xlu0 %1332 }
 0x25c   : > { %1401 = vst.msk [vmem:[#allocation4 + $0xe0] sm:$0xff] %vm1372_vm8, %v1333_v42  ;;  %v1335_v61 = vpop.permute.xlu1 %1334 }
 0x25d   : > { %1402 = vst.msk [vmem:[#allocation4 + $0xe8] sm:$0xff] %vm1372_vm8, %v1335_v61  ;;  %3265 = vrot.lane.b32.xlu0 %v3228_v52, %s3975_s23 }
 0x25e   : > { %2815 = vrot.lane.b32.xlu1 %v5254_v21, %s3975_s23 }
 0x25f   : > { %v1527_v33 = vpop.permute.xlu0 %1526 }
 0x260   : > { %1595 = vst.msk [vmem:[#allocation4 + $0xe0] sm:$0xff] %vm1566_vm9, %v1527_v33  ;;  %v1529_v62 = vpop.permute.xlu1 %1528 }
 0x261   : > { %1596 = vst.msk [vmem:[#allocation4 + $0xe8] sm:$0xff] %vm1566_vm9, %v1529_v62  ;;  %3010 = vrot.lane.b32.xlu0 %v3356_v34, %s3973_s15 }
 0x262   : > { %2559 = vrot.lane.b32.xlu1 %v5256_v18, %s3973_s15 }
 0x263   : > { %v1720_v27 = vpop.permute.xlu0 %1719 }
 0x264   : > { %1788 = vst.msk [vmem:[#allocation4 + $0xe0] sm:$0xff] %vm1759_vm10, %v1720_v27  ;;  %v1722_v59 = vpop.permute.xlu1 %1721 }
 0x265   : > { %1789 = vst.msk [vmem:[#allocation4 + $0xe8] sm:$0xff] %vm1759_vm10, %v1722_v59 }
 0x266   : > { %2688 = vrot.lane.b32.xlu1 %v5247_v49, %s3974_s22 }
 0x267   : > { %v1913_v2 = vpop.permute.xlu0 %1912  ;;  %v3869_v63 = vpop.f32.mrb[14].mxu0 }
 0x268   : > { %1981 = vst.msk [vmem:[#allocation4 + $0xe0] sm:$0xff] %vm1952_vm11, %v1913_v2  ;;  %v565_v1 = vpop.permute.xlu1 %564  ;;  %v2272_v5 = vadd.f32 %v5344_v50, %v3869_v63  ;;  %v2266_v51 = vpop.f32.mrb[15].mxu0 }
 0x269   : > { %631 = vst.msk [vmem:[#allocation4 + $0xf0] sm:$0xff] %vm600_vm4, %v565_v1  ;;  %v2267_v6 = vadd.f32 %v5344_v50, %v2266_v51 }
 0x26a   : > { %2817 = vrot.lane.b32.xlu1 %v3100_v28, %s3975_s23  ;;  %v2370_v58 = vmax.f32 %v2272_v5, 0.0 }
 0x26b   : > { %v2369_v8 = vmax.f32 %v2267_v6, 0.0  ;;  %v1915_v10 = vpop.permute.xlu0 %1914 }
 0x26c   : > { %2402 = vst.msk [vmem:[#allocation3 + $0xc9] sm:$0xff] %vm269_vm13, %v2370_v58  ;;  %v567_v11 = vpop.permute.xlu1 %566 }
 0x26d   : > { %1982 = vst.msk [vmem:[#allocation4 + $0xe8] sm:$0xff] %vm1952_vm11, %v1915_v10 }
 0x26e   : > { %2401 = vst.msk [vmem:[#allocation3 + $0xc1] sm:$0xff] %vm269_vm13, %v2369_v8  ;;  %2561 = vrot.lane.b32.xlu1 %v3228_v52, %s3973_s15 }
 0x26f   : > { %632 = vst.msk [vmem:[#allocation4 + $0xf8] sm:$0xff] %vm600_vm4, %v567_v11  ;;  %v758_v12 = vpop.permute.xlu0 %757  ;;  %v2013_v3 = vld [vmem:[#allocation4 + $0xe0] sm:$0xff] }
 0x270   : > { %824 = vst.msk [vmem:[#allocation4 + $0xf0] sm:$0xff] %vm793_vm5, %v758_v12  ;;  %v760_v13 = vpop.permute.xlu1 %759  ;;  %3888 = vmatprep.mubr.msk.f32.mxu0 %vm2029_vm12, %v2013_v3 }
 0x271   : > { %825 = vst.msk [vmem:[#allocation4 + $0xf8] sm:$0xff] %vm793_vm5, %v760_v13 }
 0x272   : > { %2690 = vrot.lane.b32.xlu1 %v3356_v34, %s3974_s22 }
 0x273   : > { %v3332_v14 = vld [vmem:[#allocation3 + $0xca] sm:$0xff]  ;;  %v951_v30 = vpop.permute.xlu0 %950 }
 0x274   : > { %v2014_v4 = vld [vmem:[#allocation4 + $0xe8] sm:$0xff]  ;;  %v3204_v17 = vld [vmem:[#allocation3 + $0xc9] sm:$0xff]  ;;  %1017 = vst.msk [vmem:[#allocation4 + $0xf0] sm:$0xff] %vm986_vm6, %v951_v30  ;;  %v953_v49 = vpop.permute.xlu1 %952 }
 0x275   : > { %v3331_v48 = vld [vmem:[#allocation3 + $0xc2] sm:$0xff]  ;;  %3889 = vmatmul.mubr.msk.f32.gmra.mrb[28].mxu0 %vm2029_vm12, %v2014_v4  ;;  %1018 = vst.msk [vmem:[#allocation4 + $0xf8] sm:$0xff] %vm986_vm6, %v953_v49 }
 0x276   : > { %v3075_v21 = vld [vmem:[#allocation3 + $0xc0] sm:$0xff]  ;;  %v3076_v43 = vld [vmem:[#allocation3 + $0xc8] sm:$0xff]  ;;  %v3357_v18 = vpack.c.bf16 %v3332_v14, %v3331_v48 }
 0x277   : > { %v3101_v44 = vpack.c.bf16 %v3076_v43, %v3075_v21  ;;  %v3203_v19 = vld [vmem:[#allocation3 + $0xc1] sm:$0xff]  ;;  %v1144_v22 = vpop.permute.xlu0 %1143 }
 0x278   : > { %v3229_v29 = vpack.c.bf16 %v3204_v17, %v3203_v19  ;;  %3373 = vst.msk [vmem:[#allocation5 + $0xa0] sm:$0xff] %vm269_vm13, %v3357_v18  ;;  %v1146_v23 = vpop.permute.xlu1 %1145 }
 0x279   : > { %3139 = vrot.lane.b32.xlu0 %v3101_v44, %s3974_s22  ;;  %2819 = vrot.lane.b32.xlu1 %v3101_v44, %s3975_s23  ;;  %2475 = vst.msk [vmem:[#allocation5 + $0xc0] sm:$0xff] %vm269_vm13, %v3101_v44 }
 0x27a   : > { %1210 = vst.msk [vmem:[#allocation4 + $0xf0] sm:$0xff] %vm1179_vm7, %v1144_v22  ;;  %1211 = vst.msk [vmem:[#allocation4 + $0xf8] sm:$0xff] %vm1179_vm7, %v1146_v23 }
 0x27b   : > { %2925 = vst.msk [vmem:[#allocation5 + $0xb0] sm:$0xff] %vm269_vm13, %v3229_v29  ;;  %v1337_v24 = vpop.permute.xlu0 %1336 }
 0x27c   : > { %1403 = vst.msk [vmem:[#allocation4 + $0xf0] sm:$0xff] %vm1372_vm8, %v1337_v24  ;;  %v1339_v55 = vpop.permute.xlu1 %1338 }
 0x27d   : > { %3267 = vrot.lane.b32.xlu0 %v3229_v29, %s3975_s23  ;;  %2563 = vrot.lane.b32.xlu1 %v3229_v29, %s3973_s15  ;;  %1404 = vst.msk [vmem:[#allocation4 + $0xf8] sm:$0xff] %vm1372_vm8, %v1339_v55 }
 0x27f   : > { %v1531_v25 = vpop.permute.xlu0 %1530 }
 0x280   : > { %1597 = vst.msk [vmem:[#allocation4 + $0xf0] sm:$0xff] %vm1566_vm9, %v1531_v25  ;;  %v1533_v9 = vpop.permute.xlu1 %1532 }
 0x281   : > { %3012 = vrot.lane.b32.xlu0 %v3357_v18, %s3973_s15  ;;  %2692 = vrot.lane.b32.xlu1 %v3357_v18, %s3974_s22  ;;  %1598 = vst.msk [vmem:[#allocation4 + $0xf8] sm:$0xff] %vm1566_vm9, %v1533_v9 }
 0x283   : > { %v1724_v26 = vpop.permute.xlu0 %1723 }
 0x284   : > { %1790 = vst.msk [vmem:[#allocation4 + $0xf0] sm:$0xff] %vm1759_vm10, %v1724_v26  ;;  %v1726_v31 = vpop.permute.xlu1 %1725 }
 0x285   : > { %1791 = vst.msk [vmem:[#allocation4 + $0xf8] sm:$0xff] %vm1759_vm10, %v1726_v31 }
 0x287   : > { %v1917_v20 = vpop.permute.xlu0 %1916 }
 0x288   : > { %v3872_v7 = vpop.f32.mrb[16].mxu0  ;;  %1983 = vst.msk [vmem:[#allocation4 + $0xf0] sm:$0xff] %vm1952_vm11, %v1917_v20  ;;  %v1919_v36 = vpop.permute.xlu1 %1918 }
 0x289   : > { %v2282_v37 = vadd.f32 %v5344_v50, %v3872_v7  ;;  %v2276_v56 = vpop.f32.mrb[17].mxu0  ;;  %1984 = vst.msk [vmem:[#allocation4 + $0xf8] sm:$0xff] %vm1952_vm11, %v1919_v36 }
 0x28a   : > { %v2277_v32 = vadd.f32 %v5344_v50, %v2276_v56 }
 0x28b   : > { %v2372_v38 = vmax.f32 %v2282_v37, 0.0  ;;  %v2999_v47 = vpop.permute.xlu0 %2998  ;;  %v3393_v37 = vld [vmem:[#allocation5 + $0x10] sm:$0xff] }
 0x28c   : > { %v2371_v0 = vmax.f32 %v2277_v32, 0.0  ;;  %3046 = vst.msk [vmem:[#allocation5 + $0x8] sm:$0xff] %vm2595_vm0, %v2999_v47  ;;  %v2548_v40 = vpop.permute.xlu1 %2547  ;;  %v3500_v47 = vsel %vm269_vm13, %v3393_v37, 0 }
 0x28d   : > { %2404 = vst.msk [vmem:[#allocation3 + $0xe1] sm:$0xff] %vm269_vm13, %v2372_v38 }
 0x28e   : > { %2403 = vst.msk [vmem:[#allocation3 + $0xd9] sm:$0xff] %vm269_vm13, %v2371_v0 }
 0x28f   : > { %2596 = vst.msk [vmem:[#allocation5] sm:$0xff] %vm2595_vm0, %v2548_v40  ;;  %v3128_v35 = vpop.permute.xlu0 %3127  ;;  %v2015_v39 = vld [vmem:[#allocation4 + $0xf0] sm:$0xff] }
 0x290   : > { %v2677_v41 = vpop.permute.xlu1 %2676  ;;  %3175 = vst.msk [vmem:[#allocation5 + $0x8] sm:$0xff] %vm2724_vm1, %v3128_v35  ;;  %3891 = vmatprep.mubr.msk.f32.mxu0 %vm2029_vm12, %v2015_v39  ;;  %v2016_v15 = vld [vmem:[#allocation4 + $0xf8] sm:$0xff] }
 0x291   : > { %2725 = vst.msk [vmem:[#allocation5] sm:$0xff] %vm2724_vm1, %v2677_v41  ;;  %3892 = vmatmul.mubr.msk.f32.gmra.mrb[30].mxu0 %vm2029_vm12, %v2016_v15 }
 0x293   : > { %v3256_v16 = vpop.permute.xlu0 %3255 }
 0x294   : > { %v3334_v45 = vld [vmem:[#allocation3 + $0xe2] sm:$0xff]  ;;  %v2806_v34 = vpop.permute.xlu1 %2805  ;;  %3303 = vst.msk [vmem:[#allocation5 + $0x8] sm:$0xff] %vm2853_vm2, %v3256_v16 }
 0x295   : > { %v3206_v57 = vld [vmem:[#allocation3 + $0xe1] sm:$0xff]  ;;  %v3077_v28 = vld [vmem:[#allocation3 + $0xd8] sm:$0xff]  ;;  %2854 = vst.msk [vmem:[#allocation5] sm:$0xff] %vm2853_vm2, %v2806_v34 }
 0x296   : > { %v3333_v46 = vld [vmem:[#allocation3 + $0xda] sm:$0xff] }
 0x297   : > { %v3078_v53 = vld [vmem:[#allocation3 + $0xe0] sm:$0xff]  ;;  %v3358_v52 = vpack.c.bf16 %v3334_v45, %v3333_v46  ;;  %v3001_v61 = vpop.permute.xlu0 %3000 }
 0x298   : > { %v3102_v54 = vpack.c.bf16 %v3078_v53, %v3077_v28  ;;  %v3205_v60 = vld [vmem:[#allocation3 + $0xd9] sm:$0xff]  ;;  %v2550_v33 = vpop.permute.xlu1 %2549  ;;  %3047 = vst.msk [vmem:[#allocation5 + $0x20] sm:$0xff] %vm2595_vm0, %v3001_v61 }
 0x299   : > { %v3230_v42 = vpack.c.bf16 %v3206_v57, %v3205_v60  ;;  %3374 = vst.msk [vmem:[#allocation5 + $0xb8] sm:$0xff] %vm269_vm13, %v3358_v52 }
 0x29a   : > { %3141 = vrot.lane.b32.xlu0 %v3102_v54, %s3974_s22  ;;  %2821 = vrot.lane.b32.xlu1 %v3102_v54, %s3975_s23  ;;  %2476 = vst.msk [vmem:[#allocation5 + $0xd8] sm:$0xff] %vm269_vm13, %v3102_v54 }
 0x29b   : > { %2926 = vst.msk [vmem:[#allocation5 + $0xc8] sm:$0xff] %vm269_vm13, %v3230_v42  ;;  %v3130_v62 = vpop.permute.xlu0 %3129  ;;  %v3392_v27 = vld [vmem:[#allocation5 + $0x8] sm:$0xff] }
 0x29c   : > { %2597 = vst.msk [vmem:[#allocation5 + $0x18] sm:$0xff] %vm2595_vm0, %v2550_v33  ;;  %v2679_v59 = vpop.permute.xlu1 %2678  ;;  %3547 = vmatprep.subr.bf16.mxu1 %v3392_v27  ;;  %v3391_v2 = vld [vmem:[#allocation5] sm:$0xff] }
 0x29d   : > { %3176 = vst.msk [vmem:[#allocation5 + $0x20] sm:$0xff] %vm2724_vm1, %v3130_v62  ;;  %2726 = vst.msk [vmem:[#allocation5 + $0x18] sm:$0xff] %vm2724_vm1, %v2679_v59  ;;  %3548 = vmatpush1.bf16.xpose.msra.mxu1 %v3391_v2 }
 0x29e   : > { %3269 = vrot.lane.b32.xlu0 %v3230_v42, %s3975_s23  ;;  %2565 = vrot.lane.b32.xlu1 %v3230_v42, %s3973_s15 }
 0x29f   : > { %v3258_v63 = vpop.permute.xlu0 %3257 }
 0x2a0   : > { %3304 = vst.msk [vmem:[#allocation5 + $0x20] sm:$0xff] %vm2853_vm2, %v3258_v63  ;;  %v2808_v1 = vpop.permute.xlu1 %2807 }
 0x2a1   : > { %2855 = vst.msk [vmem:[#allocation5 + $0x18] sm:$0xff] %vm2853_vm2, %v2808_v1 }
 0x2a2   : > { %3014 = vrot.lane.b32.xlu0 %v3358_v52, %s3973_s15  ;;  %2694 = vrot.lane.b32.xlu1 %v3358_v52, %s3974_s22 }
 0x2a3   : > { %v3003_v5 = vpop.permute.xlu0 %3002 }
 0x2a4   : > { %3048 = vst.msk [vmem:[#allocation5 + $0x38] sm:$0xff] %vm2595_vm0, %v3003_v5  ;;  %v2552_v51 = vpop.permute.xlu1 %2551 }
 0x2a5   : > { %2598 = vst.msk [vmem:[#allocation5 + $0x30] sm:$0xff] %vm2595_vm0, %v2552_v51 }
 0x2a7   : > { %v3132_v58 = vpop.permute.xlu0 %3131  ;;  %v3395_v8 = vld [vmem:[#allocation5 + $0x20] sm:$0xff] }
 0x2a8   : > { %v3875_v6 = vpop.f32.mrb[18].mxu0  ;;  %3177 = vst.msk [vmem:[#allocation5 + $0x38] sm:$0xff] %vm2724_vm1, %v3132_v58  ;;  %v2681_v11 = vpop.permute.xlu1 %2680  ;;  %3549 = vmatprep.subr.bf16.mxu1 %v3395_v8  ;;  %v3394_v3 = vld [vmem:[#allocation5 + $0x18] sm:$0xff] }
 0x2a9   : > { %v2292_v10 = vadd.f32 %v5344_v50, %v3875_v6  ;;  %v2286_v12 = vpop.f32.mrb[19].mxu0  ;;  %2727 = vst.msk [vmem:[#allocation5 + $0x30] sm:$0xff] %vm2724_vm1, %v2681_v11  ;;  %3550 = vmatpush1.bf16.xpose.msra.mxu1 %v3394_v3  ;;  %v3396_v3 = vld [vmem:[#allocation5 + $0x28] sm:$0xff] }
 0x2aa   : > { %v2287_v13 = vadd.f32 %v5344_v50, %v2286_v12 }
 0x2ab   : > { %v2374_v14 = vmax.f32 %v2292_v10, 0.0  ;;  %v3260_v4 = vpop.permute.xlu0 %3259 }
 0x2ac   : > { %v2373_v30 = vmax.f32 %v2287_v13, 0.0  ;;  %3305 = vst.msk [vmem:[#allocation5 + $0x38] sm:$0xff] %vm2853_vm2, %v3260_v4  ;;  %v2810_v17 = vpop.permute.xlu1 %2809 }
 0x2ad   : > { %2406 = vst.msk [vmem:[#allocation3 + $0xf9] sm:$0xff] %vm269_vm13, %v2374_v14  ;;  %v3503_v14 = vsel %vm269_vm13, %v3396_v3, 0 }
 0x2ae   : > { %2405 = vst.msk [vmem:[#allocation3 + $0xf1] sm:$0xff] %vm269_vm13, %v2373_v30 }
 0x2af   : > { %2856 = vst.msk [vmem:[#allocation5 + $0x30] sm:$0xff] %vm2853_vm2, %v2810_v17  ;;  %v3005_v48 = vpop.permute.xlu0 %3004 }
 0x2b0   : > { %3049 = vst.msk [vmem:[#allocation5 + $0x50] sm:$0xff] %vm2595_vm0, %v3005_v48  ;;  %v2554_v49 = vpop.permute.xlu1 %2553 }
 0x2b1   : > { %2599 = vst.msk [vmem:[#allocation5 + $0x48] sm:$0xff] %vm2595_vm0, %v2554_v49 }
 0x2b3   : > { %v3134_v43 = vpop.permute.xlu0 %3133  ;;  %v3398_v18 = vld [vmem:[#allocation5 + $0x38] sm:$0xff] }
 0x2b4   : > { %v3336_v21 = vld [vmem:[#allocation3 + $0xfa] sm:$0xff]  ;;  %3178 = vst.msk [vmem:[#allocation5 + $0x50] sm:$0xff] %vm2724_vm1, %v3134_v43  ;;  %v2683_v29 = vpop.permute.xlu1 %2682  ;;  %3551 = vmatprep.subr.bf16.mxu1 %v3398_v18 }
 0x2b5   : > { %v3208_v44 = vld [vmem:[#allocation3 + $0xf9] sm:$0xff]  ;;  %v3079_v23 = vld [vmem:[#allocation3 + $0xf0] sm:$0xff]  ;;  %2728 = vst.msk [vmem:[#allocation5 + $0x48] sm:$0xff] %vm2724_vm1, %v2683_v29 }
 0x2b6   : > { %v3335_v19 = vld [vmem:[#allocation3 + $0xf2] sm:$0xff]  ;;  %v3397_v22 = vld [vmem:[#allocation5 + $0x30] sm:$0xff] }
 0x2b7   : > { %v3359_v24 = vpack.c.bf16 %v3336_v21, %v3335_v19  ;;  %3552 = vmatpush1.bf16.xpose.msra.mxu1 %v3397_v22  ;;  %v3080_v55 = vld [vmem:[#allocation3 + $0xf8] sm:$0xff]  ;;  %v3262_v31 = vpop.permute.xlu0 %3261 }
 0x2b8   : > { %v3207_v25 = vld [vmem:[#allocation3 + $0xf1] sm:$0xff]  ;;  %v3103_v9 = vpack.c.bf16 %v3080_v55, %v3079_v23  ;;  %3306 = vst.msk [vmem:[#allocation5 + $0x50] sm:$0xff] %vm2853_vm2, %v3262_v31  ;;  %v2812_v20 = vpop.permute.xlu1 %2811 }
 0x2b9   : > { %v3231_v26 = vpack.c.bf16 %v3208_v44, %v3207_v25  ;;  %3375 = vst.msk [vmem:[#allocation5 + $0xd0] sm:$0xff] %vm269_vm13, %v3359_v24 }
 0x2ba   : > { %3143 = vrot.lane.b32.xlu0 %v3103_v9, %s3974_s22  ;;  %2823 = vrot.lane.b32.xlu1 %v3103_v9, %s3975_s23  ;;  %2477 = vst.msk [vmem:[#allocation5 + $0xf0] sm:$0xff] %vm269_vm13, %v3103_v9 }
 0x2bb   : > { %2927 = vst.msk [vmem:[#allocation5 + $0xe0] sm:$0xff] %vm269_vm13, %v3231_v26  ;;  %v3007_v7 = vpop.permute.xlu0 %3006 }
 0x2bc   : > { %2857 = vst.msk [vmem:[#allocation5 + $0x48] sm:$0xff] %vm2853_vm2, %v2812_v20  ;;  %v2556_v36 = vpop.permute.xlu1 %2555 }
 0x2bd   : > { %3050 = vst.msk [vmem:[#allocation5 + $0x68] sm:$0xff] %vm2595_vm0, %v3007_v7  ;;  %2600 = vst.msk [vmem:[#allocation5 + $0x60] sm:$0xff] %vm2595_vm0, %v2556_v36 }
 0x2be   : > { %3271 = vrot.lane.b32.xlu0 %v3231_v26, %s3975_s23  ;;  %2567 = vrot.lane.b32.xlu1 %v3231_v26, %s3973_s15 }
 0x2bf   : > { %v3136_v32 = vpop.permute.xlu0 %3135  ;;  %v3401_v38 = vld [vmem:[#allocation5 + $0x50] sm:$0xff] }
 0x2c0   : > { %v3417_v56 = vld [vmem:[#allocation5 + $0xd0] sm:$0xff]  ;;  %3179 = vst.msk [vmem:[#allocation5 + $0x68] sm:$0xff] %vm2724_vm1, %v3136_v32  ;;  %v2685_v0 = vpop.permute.xlu1 %2684  ;;  %3553 = vmatprep.subr.bf16.mxu1 %v3401_v38 }
 0x2c1   : > { %3918 = vmatprep.subr.msk.bf16.mxu0 %vm269_vm13, %v3417_v56  ;;  %2729 = vst.msk [vmem:[#allocation5 + $0x60] sm:$0xff] %vm2724_vm1, %v2685_v0  ;;  %v3349_v38 = vld [vmem:[#allocation3 + $0x19a] sm:$0xff]  ;;  %v3350_v0 = vld [vmem:[#allocation3 + $0x1a2] sm:$0xff] }
 0x2c2   : > { %3016 = vrot.lane.b32.xlu0 %v3359_v24, %s3973_s15  ;;  %2696 = vrot.lane.b32.xlu1 %v3359_v24, %s3974_s22 }
 0x2c3   : > { %v3400_v40 = vld [vmem:[#allocation5 + $0x48] sm:$0xff]  ;;  %3817 = vmatpush3.bf16.xpose.msra.mxu0 %v3500_v47  ;;  %v3264_v35 = vpop.permute.xlu0 %3263  ;;  %v3366_v47 = vpack.c.bf16 %v3350_v0, %v3349_v38 }
 0x2c4   : > { %3554 = vmatpush1.bf16.xpose.msra.mxu1 %v3400_v40  ;;  %3307 = vst.msk [vmem:[#allocation5 + $0x68] sm:$0xff] %vm2853_vm2, %v3264_v35  ;;  %v2814_v39 = vpop.permute.xlu1 %2813  ;;  %v3399_v40 = vld [vmem:[#allocation5 + $0x40] sm:$0xff] }
 0x2c5   : > { %2858 = vst.msk [vmem:[#allocation5 + $0x60] sm:$0xff] %vm2853_vm2, %v2814_v39  ;;  %v3506_v39 = vsel %vm269_vm13, %v3399_v40, 0 }
 0x2c6   : > { %3382 = vst.msk [vmem:[#allocation5 + $0x178] sm:$0xff] %vm269_vm13, %v3366_v47 }
 0x2c7   : > { %v3009_v15 = vpop.permute.xlu0 %3008 }
 0x2c8   : > { %v3878_v41 = vpop.f32.mrb[20].mxu0  ;;  %3051 = vst.msk [vmem:[#allocation5 + $0x80] sm:$0xff] %vm2595_vm0, %v3009_v15  ;;  %v2558_v16 = vpop.permute.xlu1 %2557 }
 0x2c9   : > { %v2302_v45 = vadd.f32 %v5344_v50, %v3878_v41  ;;  %v2296_v57 = vpop.f32.mrb[21].mxu0  ;;  %2601 = vst.msk [vmem:[#allocation5 + $0x78] sm:$0xff] %vm2595_vm0, %v2558_v16 }
 0x2ca   : > { %v2297_v46 = vadd.f32 %v5344_v50, %v2296_v57 }
 0x2cb   : > { %v2376_v34 = vmax.f32 %v2302_v45, 0.0  ;;  %v3138_v53 = vpop.permute.xlu0 %3137  ;;  %v3404_v52 = vld [vmem:[#allocation5 + $0x68] sm:$0xff] }
 0x2cc   : > { %v2375_v28 = vmax.f32 %v2297_v46, 0.0  ;;  %3180 = vst.msk [vmem:[#allocation5 + $0x80] sm:$0xff] %vm2724_vm1, %v3138_v53  ;;  %v2687_v54 = vpop.permute.xlu1 %2686  ;;  %3555 = vmatprep.subr.bf16.mxu1 %v3404_v52  ;;  %v3403_v60 = vld [vmem:[#allocation5 + $0x60] sm:$0xff] }
 0x2cd   : > { %2408 = vst.msk [vmem:[#allocation3 + $0x111] sm:$0xff] %vm269_vm13, %v2376_v34  ;;  %3556 = vmatpush1.bf16.xpose.msra.mxu1 %v3403_v60 }
 0x2ce   : > { %2407 = vst.msk [vmem:[#allocation3 + $0x109] sm:$0xff] %vm269_vm13, %v2375_v28 }
 0x2cf   : > { %2730 = vst.msk [vmem:[#allocation5 + $0x78] sm:$0xff] %vm2724_vm1, %v2687_v54  ;;  %v3266_v42 = vpop.permute.xlu0 %3265 }
 0x2d0   : > { %3308 = vst.msk [vmem:[#allocation5 + $0x80] sm:$0xff] %vm2853_vm2, %v3266_v42  ;;  %v2816_v61 = vpop.permute.xlu1 %2815 }
 0x2d1   : > { %2859 = vst.msk [vmem:[#allocation5 + $0x78] sm:$0xff] %vm2853_vm2, %v2816_v61 }
 0x2d3   : > { %v3011_v62 = vpop.permute.xlu0 %3010 }
 0x2d4   : > { %v3338_v33 = vld [vmem:[#allocation3 + $0x112] sm:$0xff]  ;;  %3052 = vst.msk [vmem:[#allocation5 + $0x98] sm:$0xff] %vm2595_vm0, %v3011_v62  ;;  %v2560_v2 = vpop.permute.xlu1 %2559 }
 0x2d5   : > { %v3210_v27 = vld [vmem:[#allocation3 + $0x111] sm:$0xff]  ;;  %v3081_v63 = vld [vmem:[#allocation3 + $0x108] sm:$0xff]  ;;  %2602 = vst.msk [vmem:[#allocation5 + $0x90] sm:$0xff] %vm2595_vm0, %v2560_v2 }
 0x2d6   : > { %v3337_v59 = vld [vmem:[#allocation3 + $0x10a] sm:$0xff] }
 0x2d7   : > { %v3082_v1 = vld [vmem:[#allocation3 + $0x110] sm:$0xff]  ;;  %v3360_v5 = vpack.c.bf16 %v3338_v33, %v3337_v59 }
 0x2d8   : > { %v3104_v51 = vpack.c.bf16 %v3082_v1, %v3081_v63  ;;  %v3209_v6 = vld [vmem:[#allocation3 + $0x109] sm:$0xff]  ;;  %v2689_v10 = vpop.permute.xlu1 %2688 }
 0x2d9   : > { %v3232_v58 = vpack.c.bf16 %v3210_v27, %v3209_v6  ;;  %3376 = vst.msk [vmem:[#allocation5 + $0xe8] sm:$0xff] %vm269_vm13, %v3360_v5  ;;  %v3407_v8 = vld [vmem:[#allocation5 + $0x80] sm:$0xff]  ;;  %v3406_v11 = vld [vmem:[#allocation5 + $0x78] sm:$0xff] }
 0x2da   : > { %3145 = vrot.lane.b32.xlu0 %v3104_v51, %s3974_s22  ;;  %2825 = vrot.lane.b32.xlu1 %v3104_v51, %s3975_s23  ;;  %2478 = vst.msk [vmem:[#allocation5 + $0x108] sm:$0xff] %vm269_vm13, %v3104_v51  ;;  %v3402_v6 = vld [vmem:[#allocation5 + $0x58] sm:$0xff] }
 0x2db   : > { %3557 = vmatprep.subr.bf16.mxu1 %v3407_v8  ;;  %2928 = vst.msk [vmem:[#allocation5 + $0xf8] sm:$0xff] %vm269_vm13, %v3232_v58  ;;  %v3509_v8 = vsel %vm269_vm13, %v3402_v6, 0 }
 0x2dc   : > { %2731 = vst.msk [vmem:[#allocation5 + $0x90] sm:$0xff] %vm2724_vm1, %v2689_v10  ;;  %3558 = vmatpush1.bf16.xpose.msra.mxu1 %v3406_v11  ;;  %v2818_v12 = vpop.permute.xlu1 %2817 }
 0x2dd   : > { %2860 = vst.msk [vmem:[#allocation5 + $0x90] sm:$0xff] %vm2853_vm2, %v2818_v12 }
 0x2de   : > { %3273 = vrot.lane.b32.xlu0 %v3232_v58, %s3975_s23  ;;  %2569 = vrot.lane.b32.xlu1 %v3232_v58, %s3973_s15 }
 0x2e0   : > { %v3420_v13 = vld [vmem:[#allocation5 + $0xe8] sm:$0xff]  ;;  %v2562_v30 = vpop.permute.xlu1 %2561 }
 0x2e1   : > { %3919 = vmatprep.subr.msk.bf16.mxu0 %vm269_vm13, %v3420_v13  ;;  %2603 = vst.msk [vmem:[#allocation5 + $0xa8] sm:$0xff] %vm2595_vm0, %v2562_v30 }
 0x2e2   : > { %3018 = vrot.lane.b32.xlu0 %v3360_v5, %s3973_s15  ;;  %2698 = vrot.lane.b32.xlu1 %v3360_v5, %s3974_s22 }
 0x2e3   : > { %3819 = vmatpush3.bf16.xpose.msra.mxu0 %v3503_v14 }
 0x2e4   : > { %v2691_v4 = vpop.permute.xlu1 %2690  ;;  %v3409_v32 = vld [vmem:[#allocation5 + $0x90] sm:$0xff] }
 0x2e5   : > { %2732 = vst.msk [vmem:[#allocation5 + $0xa8] sm:$0xff] %vm2724_vm1, %v2691_v4 }
 0x2e8   : > { %v3881_v17 = vpop.f32.mrb[22].mxu0 }
 0x2e9   : > { %v2312_v48 = vadd.f32 %v5344_v50, %v3881_v17  ;;  %v2306_v49 = vpop.f32.mrb[23].mxu0 }
 0x2ea   : > { %v2307_v21 = vadd.f32 %v5344_v50, %v2306_v49 }
 0x2eb   : > { %v3140_v43 = vpop.permute.xlu0 %3139  ;;  %v2820_v18 = vpop.permute.xlu1 %2819  ;;  %v2378_v44 = vmax.f32 %v2312_v48, 0.0 }
 0x2ec   : > { %3181 = vst.msk [vmem:[#allocation5 + $0x98] sm:$0xff] %vm2724_vm1, %v3140_v43  ;;  %v2377_v19 = vmax.f32 %v2307_v21, 0.0 }
 0x2ed   : > { %2861 = vst.msk [vmem:[#allocation5 + $0xa8] sm:$0xff] %vm2853_vm2, %v2820_v18 }
 0x2ee   : > { %2410 = vst.msk [vmem:[#allocation3 + $0x129] sm:$0xff] %vm269_vm13, %v2378_v44  ;;  %2409 = vst.msk [vmem:[#allocation3 + $0x121] sm:$0xff] %vm269_vm13, %v2377_v19 }
 0x2ef   : > { %v3268_v29 = vpop.permute.xlu0 %3267  ;;  %v2564_v22 = vpop.permute.xlu1 %2563 }
 0x2f0   : > { %3309 = vst.msk [vmem:[#allocation5 + $0x98] sm:$0xff] %vm2853_vm2, %v3268_v29 }
 0x2f1   : > { %2604 = vst.msk [vmem:[#allocation5 + $0xc0] sm:$0xff] %vm2595_vm0, %v2564_v22 }
 0x2f3   : > { %v3013_v23 = vpop.permute.xlu0 %3012  ;;  %v2693_v24 = vpop.permute.xlu1 %2692 }
 0x2f4   : > { %3053 = vst.msk [vmem:[#allocation5 + $0xb0] sm:$0xff] %vm2595_vm0, %v3013_v23  ;;  %v3412_v51 = vld [vmem:[#allocation5 + $0xa8] sm:$0xff] }
 0x2f5   : > { %2733 = vst.msk [vmem:[#allocation5 + $0xc0] sm:$0xff] %vm2724_vm1, %v2693_v24  ;;  %v3340_v55 = vld [vmem:[#allocation3 + $0x12a] sm:$0xff]  ;;  %v3339_v9 = vld [vmem:[#allocation3 + $0x122] sm:$0xff] }
 0x2f6   : > { %v3212_v25 = vld [vmem:[#allocation3 + $0x129] sm:$0xff]  ;;  %v3083_v26 = vld [vmem:[#allocation3 + $0x120] sm:$0xff]  ;;  %v3361_v20 = vpack.c.bf16 %v3340_v55, %v3339_v9 }
 0x2f7   : > { %v3084_v31 = vld [vmem:[#allocation3 + $0x128] sm:$0xff] }
 0x2f8   : > { %v3410_v7 = vld [vmem:[#allocation5 + $0x98] sm:$0xff]  ;;  %v3105_v36 = vpack.c.bf16 %v3084_v31, %v3083_v26  ;;  %3377 = vst.msk [vmem:[#allocation5 + $0x100] sm:$0xff] %vm269_vm13, %v3361_v20  ;;  %v3405_v26 = vld [vmem:[#allocation5 + $0x70] sm:$0xff] }
 0x2f9   : > { %v3211_v37 = vld [vmem:[#allocation3 + $0x121] sm:$0xff]  ;;  %3559 = vmatprep.subr.bf16.mxu1 %v3410_v7 }
 0x2fa   : > { %v3233_v56 = vpack.c.bf16 %v3212_v25, %v3211_v37  ;;  %3147 = vrot.lane.b32.xlu0 %v3105_v36, %s3974_s22  ;;  %2827 = vrot.lane.b32.xlu1 %v3105_v36, %s3975_s23  ;;  %2479 = vst.msk [vmem:[#allocation5 + $0x120] sm:$0xff] %vm269_vm13, %v3105_v36 }
 0x2fb   : > { %3560 = vmatpush1.bf16.xpose.msra.mxu1 %v3409_v32 }
 0x2fc   : > { %2929 = vst.msk [vmem:[#allocation5 + $0x110] sm:$0xff] %vm269_vm13, %v3233_v56 }
 0x2fe   : > { %3275 = vrot.lane.b32.xlu0 %v3233_v56, %s3975_s23  ;;  %2571 = vrot.lane.b32.xlu1 %v3233_v56, %s3973_s15 }
 0x2ff   : > { %v3423_v35 = vld [vmem:[#allocation5 + $0x100] sm:$0xff] }
 0x300   : > { %3920 = vmatprep.subr.msk.bf16.mxu0 %vm269_vm13, %v3423_v35 }
 0x301   : > { %3821 = vmatpush3.bf16.xpose.msra.mxu0 %v3506_v39 }
 0x302   : > { %3020 = vrot.lane.b32.xlu0 %v3361_v20, %s3973_s15  ;;  %2700 = vrot.lane.b32.xlu1 %v3361_v20, %s3974_s22  ;;  %v3512_v20 = vsel %vm269_vm13, %v3405_v26, 0  ;;  %v3414_v26 = vld [vmem:[#allocation5 + $0xb8] sm:$0xff] }
 0x308   : > { %v3884_v41 = vpop.f32.mrb[24].mxu0 }
 0x309   : > { %v2322_v15 = vadd.f32 %v5344_v50, %v3884_v41  ;;  %v2316_v45 = vpop.f32.mrb[25].mxu0 }
 0x30a   : > { %v2317_v16 = vadd.f32 %v5344_v50, %v2316_v45 }
 0x30b   : > { %v2380_v34 = vmax.f32 %v2322_v15, 0.0 }
 0x30c   : > { %v3142_v57 = vpop.permute.xlu0 %3141  ;;  %v2822_v46 = vpop.permute.xlu1 %2821  ;;  %v2379_v28 = vmax.f32 %v2317_v16, 0.0 }
 0x30d   : > { %3182 = vst.msk [vmem:[#allocation5 + $0xb0] sm:$0xff] %vm2724_vm1, %v3142_v57 }
 0x30e   : > { %2862 = vst.msk [vmem:[#allocation5 + $0xc0] sm:$0xff] %vm2853_vm2, %v2822_v46 }
 0x30f   : > { %2412 = vst.msk [vmem:[#allocation3 + $0x141] sm:$0xff] %vm269_vm13, %v2380_v34  ;;  %2411 = vst.msk [vmem:[#allocation3 + $0x139] sm:$0xff] %vm269_vm13, %v2379_v28 }
 0x310   : > { %v3270_v53 = vpop.permute.xlu0 %3269  ;;  %v2566_v52 = vpop.permute.xlu1 %2565 }
 0x311   : > { %3310 = vst.msk [vmem:[#allocation5 + $0xb0] sm:$0xff] %vm2853_vm2, %v3270_v53 }
 0x312   : > { %2605 = vst.msk [vmem:[#allocation5 + $0xd8] sm:$0xff] %vm2595_vm0, %v2566_v52 }
 0x314   : > { %v3015_v54 = vpop.permute.xlu0 %3014  ;;  %v2695_v60 = vpop.permute.xlu1 %2694 }
 0x315   : > { %3054 = vst.msk [vmem:[#allocation5 + $0xc8] sm:$0xff] %vm2595_vm0, %v3015_v54  ;;  %v3415_v9 = vld [vmem:[#allocation5 + $0xc0] sm:$0xff] }
 0x316   : > { %2734 = vst.msk [vmem:[#allocation5 + $0xd8] sm:$0xff] %vm2724_vm1, %v2695_v60  ;;  %v3342_v42 = vld [vmem:[#allocation3 + $0x142] sm:$0xff]  ;;  %v3341_v33 = vld [vmem:[#allocation3 + $0x13a] sm:$0xff] }
 0x317   : > { %v3214_v61 = vld [vmem:[#allocation3 + $0x141] sm:$0xff]  ;;  %v3085_v62 = vld [vmem:[#allocation3 + $0x138] sm:$0xff]  ;;  %v3362_v59 = vpack.c.bf16 %v3342_v42, %v3341_v33 }
 0x318   : > { %v3086_v27 = vld [vmem:[#allocation3 + $0x140] sm:$0xff]  ;;  %v3408_v42 = vld [vmem:[#allocation5 + $0x88] sm:$0xff] }
 0x319   : > { %v3413_v2 = vld [vmem:[#allocation5 + $0xb0] sm:$0xff]  ;;  %v3106_v63 = vpack.c.bf16 %v3086_v27, %v3085_v62  ;;  %3378 = vst.msk [vmem:[#allocation5 + $0x118] sm:$0xff] %vm269_vm13, %v3362_v59  ;;  %v3515_v33 = vsel %vm269_vm13, %v3408_v42, 0 }
 0x31a   : > { %v3213_v1 = vld [vmem:[#allocation3 + $0x139] sm:$0xff]  ;;  %3561 = vmatprep.subr.bf16.mxu1 %v3413_v2 }
 0x31b   : > { %v3234_v5 = vpack.c.bf16 %v3214_v61, %v3213_v1  ;;  %3149 = vrot.lane.b32.xlu0 %v3106_v63, %s3974_s22  ;;  %2829 = vrot.lane.b32.xlu1 %v3106_v63, %s3975_s23  ;;  %2480 = vst.msk [vmem:[#allocation5 + $0x138] sm:$0xff] %vm269_vm13, %v3106_v63 }
 0x31c   : > { %3562 = vmatpush1.bf16.xpose.msra.mxu1 %v3412_v51 }
 0x31d   : > { %2930 = vst.msk [vmem:[#allocation5 + $0x128] sm:$0xff] %vm269_vm13, %v3234_v5 }
 0x31f   : > { %3277 = vrot.lane.b32.xlu0 %v3234_v5, %s3975_s23  ;;  %2573 = vrot.lane.b32.xlu1 %v3234_v5, %s3973_s15 }
 0x320   : > { %v3426_v58 = vld [vmem:[#allocation5 + $0x118] sm:$0xff] }
 0x321   : > { %3921 = vmatprep.subr.msk.bf16.mxu0 %vm269_vm13, %v3426_v58 }
 0x322   : > { %3823 = vmatpush3.bf16.xpose.msra.mxu0 %v3509_v8 }
 0x323   : > { %3022 = vrot.lane.b32.xlu0 %v3362_v59, %s3973_s15  ;;  %2702 = vrot.lane.b32.xlu1 %v3362_v59, %s3974_s22 }
 0x328   : > { %v3887_v10 = vpop.f32.mrb[26].mxu0 }
 0x329   : > { %v2332_v11 = vadd.f32 %v5344_v50, %v3887_v10  ;;  %v2326_v12 = vpop.f32.mrb[27].mxu0 }
 0x32a   : > { %v2327_v3 = vadd.f32 %v5344_v50, %v2326_v12 }
 0x32b   : > { %v2382_v13 = vmax.f32 %v2332_v11, 0.0 }
 0x32c   : > { %v3144_v14 = vpop.permute.xlu0 %3143  ;;  %v2824_v30 = vpop.permute.xlu1 %2823  ;;  %v2381_v4 = vmax.f32 %v2327_v3, 0.0 }
 0x32d   : > { %3183 = vst.msk [vmem:[#allocation5 + $0xc8] sm:$0xff] %vm2724_vm1, %v3144_v14 }
 0x32e   : > { %2863 = vst.msk [vmem:[#allocation5 + $0xd8] sm:$0xff] %vm2853_vm2, %v2824_v30 }
 0x32f   : > { %2414 = vst.msk [vmem:[#allocation3 + $0x159] sm:$0xff] %vm269_vm13, %v2382_v13  ;;  %2413 = vst.msk [vmem:[#allocation3 + $0x151] sm:$0xff] %vm269_vm13, %v2381_v4 }
 0x330   : > { %v3272_v17 = vpop.permute.xlu0 %3271  ;;  %v2568_v48 = vpop.permute.xlu1 %2567 }
 0x331   : > { %3311 = vst.msk [vmem:[#allocation5 + $0xc8] sm:$0xff] %vm2853_vm2, %v3272_v17 }
 0x332   : > { %2606 = vst.msk [vmem:[#allocation5 + $0xf0] sm:$0xff] %vm2595_vm0, %v2568_v48 }
 0x334   : > { %v3017_v49 = vpop.permute.xlu0 %3016  ;;  %v2697_v21 = vpop.permute.xlu1 %2696 }
 0x335   : > { %3055 = vst.msk [vmem:[#allocation5 + $0xe0] sm:$0xff] %vm2595_vm0, %v3017_v49  ;;  %v3418_v60 = vld [vmem:[#allocation5 + $0xd8] sm:$0xff] }
 0x336   : > { %v3344_v43 = vld [vmem:[#allocation3 + $0x15a] sm:$0xff]  ;;  %2735 = vst.msk [vmem:[#allocation5 + $0xf0] sm:$0xff] %vm2724_vm1, %v2697_v21  ;;  %v3343_v44 = vld [vmem:[#allocation3 + $0x152] sm:$0xff] }
 0x337   : > { %v3216_v18 = vld [vmem:[#allocation3 + $0x159] sm:$0xff]  ;;  %v3087_v19 = vld [vmem:[#allocation3 + $0x150] sm:$0xff]  ;;  %v3363_v22 = vpack.c.bf16 %v3344_v43, %v3343_v44 }
 0x338   : > { %v3088_v29 = vld [vmem:[#allocation3 + $0x158] sm:$0xff]  ;;  %v3411_v21 = vld [vmem:[#allocation5 + $0xa0] sm:$0xff] }
 0x339   : > { %v3107_v23 = vpack.c.bf16 %v3088_v29, %v3087_v19  ;;  %v3215_v24 = vld [vmem:[#allocation3 + $0x151] sm:$0xff]  ;;  %3379 = vst.msk [vmem:[#allocation5 + $0x130] sm:$0xff] %vm269_vm13, %v3363_v22  ;;  %v3438_v19 = vld [vmem:[#allocation5 + $0x178] sm:$0xff]  ;;  %v3518_v29 = vsel %vm269_vm13, %v3411_v21, 0 }
 0x33a   : > { %v3416_v55 = vld [vmem:[#allocation5 + $0xc8] sm:$0xff]  ;;  %v3235_v25 = vpack.c.bf16 %v3216_v18, %v3215_v24  ;;  %v3094_v18 = vld [vmem:[#allocation3 + $0x1a0] sm:$0xff] }
 0x33b   : > { %3563 = vmatprep.subr.bf16.mxu1 %v3416_v55  ;;  %3151 = vrot.lane.b32.xlu0 %v3107_v23, %s3974_s22  ;;  %2481 = vst.msk [vmem:[#allocation5 + $0x150] sm:$0xff] %vm269_vm13, %v3107_v23  ;;  %v3093_v43 = vld [vmem:[#allocation3 + $0x198] sm:$0xff]  ;;  %v3222_v24 = vld [vmem:[#allocation3 + $0x1a1] sm:$0xff] }
 0x33c   : > { %2831 = vrot.lane.b32.xlu1 %v3107_v23, %s3975_s23  ;;  %3564 = vmatpush1.bf16.xpose.msra.mxu1 %v3415_v9  ;;  %2931 = vst.msk [vmem:[#allocation5 + $0x140] sm:$0xff] %vm269_vm13, %v3235_v25  ;;  %v3221_v23 = vld [vmem:[#allocation3 + $0x199] sm:$0xff] }
 0x33d   : > { %v3238_v55 = vpack.c.bf16 %v3222_v24, %v3221_v23  ;;  %v3951_v9 = vld [vmem:[%s5653_s3 + $0x4] ss:$12 sps:$4 sm:$0xff]  }
 0x33e   : > { %3579 = vmatprep.mubr.bf16.mxu1 %v3951_v9 }
 0x33f   : > { %3279 = vrot.lane.b32.xlu0 %v3235_v25, %s3975_s23 }
 0x340   : > { %2575 = vrot.lane.b32.xlu1 %v3235_v25, %s3973_s15  ;;  %v3429_v31 = vld [vmem:[#allocation5 + $0x130] sm:$0xff] }
 0x341   : > { %3922 = vmatprep.subr.msk.bf16.mxu0 %vm269_vm13, %v3429_v31  ;;  %v3948_v25 = vld [vmem:[%s5653_s3 + $0x8] ss:$12 sps:$4 sm:$0xff]   ;;  %v3521_v31 = vsel %vm269_vm13, %v3414_v26, 0 }
 0x342   : > { %3825 = vmatpush3.bf16.xpose.msra.mxu0 %v3512_v20  ;;  %3832 = vmatprep.mubr.msk.bf16.mxu0 %vm269_vm13, %v3948_v25 }
 0x343   : > { %3024 = vrot.lane.b32.xlu0 %v3363_v22, %s3973_s15 }
 0x344   : > { %2704 = vrot.lane.b32.xlu1 %v3363_v22, %s3974_s22  ;;  %v3110_v22 = vpack.c.bf16 %v3094_v18, %v3093_v43 }
 0x348   : > { %v3890_v7 = vpop.f32.mrb[28].mxu0 }
 0x349   : > { %v2342_v36 = vadd.f32 %v5344_v50, %v3890_v7  ;;  %v2336_v37 = vpop.f32.mrb[29].mxu0 }
 0x34a   : > { %v2337_v56 = vadd.f32 %v5344_v50, %v2336_v37 }
 0x34b   : > { %v2384_v0 = vmax.f32 %v2342_v36, 0.0  ;;  %v3952_v36 = vld [vmem:[%s5653_s3 + $0x20] ss:$12 sps:$4 sm:$0xff]  }
 0x34c   : > { %v3146_v32 = vpop.permute.xlu0 %3145  ;;  %v2826_v38 = vpop.permute.xlu1 %2825  ;;  %v2383_v47 = vmax.f32 %v2337_v56, 0.0 }
 0x34d   : > { %3184 = vst.msk [vmem:[#allocation5 + $0xe0] sm:$0xff] %vm2724_vm1, %v3146_v32  ;;  %v3439_v32 = vld [vmem:[%s5654_s4] sm:$0xff] }
 0x34e   : > { %2864 = vst.msk [vmem:[#allocation5 + $0xf0] sm:$0xff] %vm2853_vm2, %v2826_v38  ;;  %v3440_v38 = vld [vmem:[%s5654_s4 + $0x8] sm:$0xff] }
 0x34f   : > { %2416 = vst.msk [vmem:[#allocation3 + $0x171] sm:$0xff] %vm269_vm13, %v2384_v0  ;;  %2415 = vst.msk [vmem:[#allocation3 + $0x169] sm:$0xff] %vm269_vm13, %v2383_v47  ;;  %v3976_v0 = vmov 0  }
 0x350   : > { %v3274_v40 = vpop.permute.xlu0 %3273  ;;  %v2570_v35 = vpop.permute.xlu1 %2569  ;;  %3946 = vset.pattern.permute.xlu0 %v3976_v0  ;;  %3947 = vset.pattern.permute.xlu1 %v3976_v0 }
 0x351   : > { %3312 = vst.msk [vmem:[#allocation5 + $0xe0] sm:$0xff] %vm2853_vm2, %v3274_v40 }
 0x352   : > { %2607 = vst.msk [vmem:[#allocation5 + $0x108] sm:$0xff] %vm2595_vm0, %v2570_v35  ;;  %v3442_v35 = vld [vmem:[%s5654_s4 + $0x18] sm:$0xff] }
 0x354   : > { %v3019_v39 = vpop.permute.xlu0 %3018  ;;  %v2699_v41 = vpop.permute.xlu1 %2698 }
 0x355   : > { %3056 = vst.msk [vmem:[#allocation5 + $0xf8] sm:$0xff] %vm2595_vm0, %v3019_v39  ;;  %v3421_v49 = vld [vmem:[#allocation5 + $0xf0] sm:$0xff] }
 0x356   : > { %v3346_v15 = vld [vmem:[#allocation3 + $0x172] sm:$0xff]  ;;  %2736 = vst.msk [vmem:[#allocation5 + $0x108] sm:$0xff] %vm2724_vm1, %v2699_v41  ;;  %v3345_v16 = vld [vmem:[#allocation3 + $0x16a] sm:$0xff]  ;;  %v3441_v39 = vld [vmem:[%s5654_s4 + $0x10] sm:$0xff] }
 0x357   : > { %v3218_v45 = vld [vmem:[#allocation3 + $0x171] sm:$0xff]  ;;  %v3089_v57 = vld [vmem:[#allocation3 + $0x168] sm:$0xff]  ;;  %v3364_v34 = vpack.c.bf16 %v3346_v15, %v3345_v16 }
 0x358   : > { %v3090_v46 = vld [vmem:[#allocation3 + $0x170] sm:$0xff] }
 0x359   : > { %v3419_v28 = vld [vmem:[#allocation5 + $0xe0] sm:$0xff]  ;;  %v3108_v53 = vpack.c.bf16 %v3090_v46, %v3089_v57  ;;  %3380 = vst.msk [vmem:[#allocation5 + $0x148] sm:$0xff] %vm269_vm13, %v3364_v34 }
 0x35a   : > { %v3217_v52 = vld [vmem:[#allocation3 + $0x169] sm:$0xff]  ;;  %3565 = vmatprep.subr.bf16.mxu1 %v3419_v28 }
 0x35b   : > { %v3236_v54 = vpack.c.bf16 %v3218_v45, %v3217_v52  ;;  %3153 = vrot.lane.b32.xlu0 %v3108_v53, %s3974_s22  ;;  %2833 = vrot.lane.b32.xlu1 %v3108_v53, %s3975_s23  ;;  %2482 = vst.msk [vmem:[#allocation5 + $0x168] sm:$0xff] %vm269_vm13, %v3108_v53 }
 0x35c   : > { %3566 = vmatpush1.bf16.xpose.msra.mxu1 %v3418_v60 }
 0x35d   : > { %2932 = vst.msk [vmem:[#allocation5 + $0x158] sm:$0xff] %vm269_vm13, %v3236_v54 }
 0x35f   : > { %3281 = vrot.lane.b32.xlu0 %v3236_v54, %s3975_s23  ;;  %2577 = vrot.lane.b32.xlu1 %v3236_v54, %s3973_s15 }
 0x360   : > { %v3432_v61 = vld [vmem:[#allocation5 + $0x148] sm:$0xff] }
 0x361   : > { %3923 = vmatprep.subr.msk.bf16.mxu0 %vm269_vm13, %v3432_v61 }
 0x362   : > { %3827 = vmatpush3.bf16.xpose.msra.mxu0 %v3515_v33 }
 0x363   : > { %3026 = vrot.lane.b32.xlu0 %v3364_v34, %s3973_s15  ;;  %2706 = vrot.lane.b32.xlu1 %v3364_v34, %s3974_s22 }
 0x364   : > { %v3893_v62 = vpop.f32.mrb[30].mxu0 }
 0x365   : > { %v2352_v27 = vadd.f32 %v5344_v50, %v3893_v62  ;;  %v2346_v59 = vpop.f32.mrb[31].mxu0 }
 0x366   : > { %v2347_v2 = vadd.f32 %v5344_v50, %v2346_v59 }
 0x367   : > { %v2386_v63 = vmax.f32 %v2352_v27, 0.0 }
 0x368   : > { %v2385_v1 = vmax.f32 %v2347_v2, 0.0 }
 0x369   : > { %2418 = vst.msk [vmem:[#allocation3 + $0x189] sm:$0xff] %vm269_vm13, %v2386_v63 }
 0x36a   : > { %2417 = vst.msk [vmem:[#allocation3 + $0x181] sm:$0xff] %vm269_vm13, %v2385_v1 }
 0x36c   : > { %v3148_v5 = vpop.permute.xlu0 %3147  ;;  %v2828_v51 = vpop.permute.xlu1 %2827 }
 0x36d   : > { %3185 = vst.msk [vmem:[#allocation5 + $0xf8] sm:$0xff] %vm2724_vm1, %v3148_v5 }
 0x36e   : > { %2865 = vst.msk [vmem:[#allocation5 + $0x108] sm:$0xff] %vm2853_vm2, %v2828_v51 }
 0x370   : > { %v3276_v6 = vpop.permute.xlu0 %3275  ;;  %v2572_v58 = vpop.permute.xlu1 %2571  ;;  %v3348_v8 = vld [vmem:[#allocation3 + $0x18a] sm:$0xff] }
 0x371   : > { %3313 = vst.msk [vmem:[#allocation5 + $0xf8] sm:$0xff] %vm2853_vm2, %v3276_v6  ;;  %v3220_v50 = vld [vmem:[#allocation3 + $0x189] sm:$0xff]  ;;  %v3091_v12 = vld [vmem:[#allocation3 + $0x180] sm:$0xff] }
 0x372   : > { %2608 = vst.msk [vmem:[#allocation5 + $0x120] sm:$0xff] %vm2595_vm0, %v2572_v58  ;;  %v3347_v10 = vld [vmem:[#allocation3 + $0x182] sm:$0xff] }
 0x373   : > { %v3092_v3 = vld [vmem:[#allocation3 + $0x188] sm:$0xff]  ;;  %v3365_v13 = vpack.c.bf16 %v3348_v8, %v3347_v10 }
 0x374   : > { %v3021_v11 = vpop.permute.xlu0 %3020  ;;  %v2701_v14 = vpop.permute.xlu1 %2700  ;;  %v3109_v30 = vpack.c.bf16 %v3092_v3, %v3091_v12  ;;  %v3219_v4 = vld [vmem:[#allocation3 + $0x181] sm:$0xff]  ;;  %v3953_v12 = vld [vmem:[%s5653_s3 + $0x1c] ss:$12 sps:$4 sm:$0xff]  }
 0x375   : > { %3057 = vst.msk [vmem:[#allocation5 + $0x110] sm:$0xff] %vm2595_vm0, %v3021_v11  ;;  %v3237_v17 = vpack.c.bf16 %v3220_v50, %v3219_v4  ;;  %v3424_v15 = vld [vmem:[#allocation5 + $0x108] sm:$0xff]  ;;  %v3955_v3 = vld [vmem:[%s5653_s3 + $0x18] ss:$12 sps:$4 sm:$0xff]  }
 0x376   : > { %2737 = vst.msk [vmem:[#allocation5 + $0x120] sm:$0xff] %vm2724_vm1, %v2701_v14  ;;  %3155 = vrot.lane.b32.xlu0 %v3109_v30, %s3974_s22  ;;  %2835 = vrot.lane.b32.xlu1 %v3109_v30, %s3975_s23  ;;  %v3949_v11 = vld [vmem:[%s5653_s3] ss:$12 sps:$4 sm:$0xff]  }
 0x377   : > { %3381 = vst.msk [vmem:[#allocation5 + $0x160] sm:$0xff] %vm269_vm13, %v3365_v13  ;;  %2933 = vst.msk [vmem:[#allocation5 + $0x170] sm:$0xff] %vm269_vm13, %v3237_v17 }
 0x378   : > { %v3422_v48 = vld [vmem:[#allocation5 + $0xf8] sm:$0xff] }
 0x379   : > { %3567 = vmatprep.subr.bf16.mxu1 %v3422_v48 }
 0x37a   : > { %3568 = vmatpush1.bf16.xpose.msra.mxu1 %v3421_v49  ;;  %3283 = vrot.lane.b32.xlu0 %v3237_v17, %s3975_s23 }
 0x37b   : > { %3450 = vperm.xlu1 %3947, %v3440_v38  }
 0x37e   : > { %v3435_v44 = vld [vmem:[#allocation5 + $0x160] sm:$0xff]  ;;  %3028 = vrot.lane.b32.xlu0 %v3365_v13, %s3973_s15 }
 0x37f   : > { %3924 = vmatprep.subr.msk.bf16.mxu0 %vm269_vm13, %v3435_v44  ;;  %3455 = vperm.xlu1 %3947, %v3441_v39  }
 0x380   : > { %3829 = vmatpush3.bf16.xpose.msra.mxu0 %v3518_v29 }
 0x381   : > { %3925 = vmatprep.subr.msk.bf16.mxu0 %vm269_vm13, %v3438_v19 }
 0x382   : > { %3157 = vrot.lane.b32.xlu0 %v3110_v22, %s3974_s22 }
 0x386   : > { %3285 = vrot.lane.b32.xlu0 %v3238_v55, %s3975_s23  ;;  %s3778_s23 = sshll.u32 %s5658_s19, 6 }
 0x387   : > { %s5637_s26 = scalar_lea.vmem %s5655_s5, %s3778_s23 }
 0x388   : > { %3831 = vmatpush3.bf16.xpose.msra.mxu0 %v3521_v31 }
 0x38a   : > { %3445 = vperm.xlu0 %3946, %v3439_v32  }
 0x38d   : > { %v3150_v20 = vpop.permute.xlu0 %3149  ;;  %v2830_v7 = vpop.permute.xlu1 %2829 }
 0x38e   : > { %3186 = vst.msk [vmem:[#allocation5 + $0x110] sm:$0xff] %vm2724_vm1, %v3150_v20  ;;  %3460 = vperm.xlu0 %3946, %v3442_v35  }
 0x38f   : > { %2866 = vst.msk [vmem:[#allocation5 + $0x120] sm:$0xff] %vm2853_vm2, %v2830_v7  ;;  %3833 = vmatmul.mubr.msk.bf16.vlgmr.msra.gmra.mrb[32].mxu0 %vm269_vm13, %v3948_v25 }
 0x390   : > { %3834 = vmatprep.mubr.msk.bf16.mxu0 %vm269_vm13, %v3952_v36 }
 0x391   : > { %v3278_v37 = vpop.permute.xlu0 %3277  ;;  %v2574_v56 = vpop.permute.xlu1 %2573 }
 0x392   : > { %3314 = vst.msk [vmem:[#allocation5 + $0x110] sm:$0xff] %vm2853_vm2, %v3278_v37 }
 0x393   : > { %2609 = vst.msk [vmem:[#allocation5 + $0x138] sm:$0xff] %vm2595_vm0, %v2574_v56 }
 0x395   : > { %v3023_v47 = vpop.permute.xlu0 %3022  ;;  %v2703_v40 = vpop.permute.xlu1 %2702 }
 0x396   : > { %3058 = vst.msk [vmem:[#allocation5 + $0x128] sm:$0xff] %vm2595_vm0, %v3023_v47  ;;  %v3427_v52 = vld [vmem:[#allocation5 + $0x120] sm:$0xff] }
 0x397   : > { %2738 = vst.msk [vmem:[#allocation5 + $0x138] sm:$0xff] %vm2724_vm1, %v2703_v40  ;;  %3835 = vmatmul.mubr.msk.bf16.gmra.mrb[36].mxu0 %vm269_vm13, %v3952_v36 }
 0x399   : > { %v3425_v41 = vld [vmem:[#allocation5 + $0x110] sm:$0xff] }
 0x39a   : > { %3569 = vmatprep.subr.bf16.mxu1 %v3425_v41 }
 0x39b   : > { %3570 = vmatpush1.bf16.xpose.msra.mxu1 %v3424_v15 }
 0x3ad   : > { %v3152_v45 = vpop.permute.xlu0 %3151 }
 0x3ae   : > { %3187 = vst.msk [vmem:[#allocation5 + $0x128] sm:$0xff] %vm2724_vm1, %v3152_v45  ;;  %v2832_v16 = vpop.permute.xlu1 %2831 }
 0x3af   : > { %2867 = vst.msk [vmem:[#allocation5 + $0x138] sm:$0xff] %vm2853_vm2, %v2832_v16 }
 0x3b1   : > { %v3280_v57 = vpop.permute.xlu0 %3279 }
 0x3b2   : > { %3315 = vst.msk [vmem:[#allocation5 + $0x128] sm:$0xff] %vm2853_vm2, %v3280_v57  ;;  %v2576_v46 = vpop.permute.xlu1 %2575 }
 0x3b3   : > { %2610 = vst.msk [vmem:[#allocation5 + $0x150] sm:$0xff] %vm2595_vm0, %v2576_v46 }
 0x3b5   : > { %v3025_v34 = vpop.permute.xlu0 %3024 }
 0x3b6   : > { %3059 = vst.msk [vmem:[#allocation5 + $0x140] sm:$0xff] %vm2595_vm0, %v3025_v34  ;;  %v2705_v28 = vpop.permute.xlu1 %2704  ;;  %v3430_v59 = vld [vmem:[#allocation5 + $0x138] sm:$0xff] }
 0x3b7   : > { %2739 = vst.msk [vmem:[#allocation5 + $0x150] sm:$0xff] %vm2724_vm1, %v2705_v28 }
 0x3b9   : > { %v3428_v53 = vld [vmem:[#allocation5 + $0x128] sm:$0xff] }
 0x3ba   : > { %3571 = vmatprep.subr.bf16.mxu1 %v3428_v53 }
 0x3bb   : > { %3572 = vmatpush1.bf16.xpose.msra.mxu1 %v3427_v52 }
 0x3cd   : > { %v3154_v54 = vpop.permute.xlu0 %3153  ;;  %v2834_v60 = vpop.permute.xlu1 %2833 }
 0x3ce   : > { %3188 = vst.msk [vmem:[#allocation5 + $0x140] sm:$0xff] %vm2724_vm1, %v3154_v54 }
 0x3cf   : > { %2868 = vst.msk [vmem:[#allocation5 + $0x150] sm:$0xff] %vm2853_vm2, %v2834_v60 }
 0x3d1   : > { %v3282_v42 = vpop.permute.xlu0 %3281  ;;  %v2578_v61 = vpop.permute.xlu1 %2577 }
 0x3d2   : > { %3316 = vst.msk [vmem:[#allocation5 + $0x140] sm:$0xff] %vm2853_vm2, %v3282_v42 }
 0x3d3   : > { %2611 = vst.msk [vmem:[#allocation5 + $0x168] sm:$0xff] %vm2595_vm0, %v2578_v61 }
 0x3d5   : > { %v3027_v33 = vpop.permute.xlu0 %3026  ;;  %v2707_v62 = vpop.permute.xlu1 %2706 }
 0x3d6   : > { %3060 = vst.msk [vmem:[#allocation5 + $0x158] sm:$0xff] %vm2595_vm0, %v3027_v33  ;;  %v3433_v58 = vld [vmem:[#allocation5 + $0x150] sm:$0xff] }
 0x3d7   : > { %2740 = vst.msk [vmem:[#allocation5 + $0x168] sm:$0xff] %vm2724_vm1, %v2707_v62 }
 0x3d9   : > { %v3431_v27 = vld [vmem:[#allocation5 + $0x140] sm:$0xff] }
 0x3da   : > { %3573 = vmatprep.subr.bf16.mxu1 %v3431_v27 }
 0x3db   : > { %3574 = vmatpush1.bf16.xpose.msra.mxu1 %v3430_v59 }
 0x3e8   : > { %v3156_v2 = vpop.permute.xlu0 %3155  ;;  %v2836_v63 = vpop.permute.xlu1 %2835 }
 0x3e9   : > { %3189 = vst.msk [vmem:[#allocation5 + $0x158] sm:$0xff] %vm2724_vm1, %v3156_v2 }
 0x3ea   : > { %2869 = vst.msk [vmem:[#allocation5 + $0x168] sm:$0xff] %vm2853_vm2, %v2836_v63 }
 0x3ec   : > { %v3284_v1 = vpop.permute.xlu0 %3283 }
 0x3ed   : > { %3317 = vst.msk [vmem:[#allocation5 + $0x158] sm:$0xff] %vm2853_vm2, %v3284_v1 }
 0x3f0   : > { %v3029_v5 = vpop.permute.xlu0 %3028 }
 0x3f1   : > { %3061 = vst.msk [vmem:[#allocation5 + $0x170] sm:$0xff] %vm2595_vm0, %v3029_v5  ;;  %v3436_v10 = vld [vmem:[#allocation5 + $0x168] sm:$0xff] }
 0x3f4   : > { %v3158_v51 = vpop.permute.xlu0 %3157  ;;  %v3434_v6 = vld [vmem:[#allocation5 + $0x158] sm:$0xff] }
 0x3f5   : > { %3190 = vst.msk [vmem:[#allocation5 + $0x170] sm:$0xff] %vm2724_vm1, %v3158_v51  ;;  %3575 = vmatprep.subr.bf16.mxu1 %v3434_v6 }
 0x3f6   : > { %3576 = vmatpush1.bf16.xpose.msra.mxu1 %v3433_v58 }
 0x3f8   : > { %v3286_v8 = vpop.permute.xlu0 %3285 }
 0x3f9   : > { %3318 = vst.msk [vmem:[#allocation5 + $0x170] sm:$0xff] %vm2853_vm2, %v3286_v8 }
 0x3fa   : > { %v3451_v44 = vpop.permute.xlu1 %3450 }
 0x3fe   : > { %v3456_v37 = vpop.permute.xlu1 %3455 }
 0x400   : > { %v3437_v50 = vld [vmem:[#allocation5 + $0x170] sm:$0xff] }
 0x401   : > { %3577 = vmatprep.subr.bf16.mxu1 %v3437_v50 }
 0x402   : > { %3578 = vmatpush1.bf16.xpose.msra.mxu1 %v3436_v10 }
 0x409   : > { %3580 = vmatmul.mubr.bf16.vlgmr.msra.gmra.mrb[0].mxu1 %v3949_v11  ;;  %v3446_v43 = vpop.permute.xlu0 %3445 }
 0x40a   : > { %3589 = vmatprep.mubr.bf16.mxu1 %v3953_v12 }
 0x40d   : > { %v3461_v40 = vpop.permute.xlu0 %3460 }
 0x411   : > { %3590 = vmatmul.mubr.bf16.gmra.mrb[4].mxu1 %v3955_v3 }
 0x462   : > { %v3634_v13 = vpop.f32.mrb[32].mxu0 }
 0x463   : > { %v3636_v14 = vpop.f32.mrb[33].mxu0 }
 0x464   : > { %v3638_v30 = vpop.f32.mrb[34].mxu0 }
 0x465   : > { %v3640_v4 = vpop.f32.mrb[35].mxu0 }
 0x46a   : > { %v3644_v17 = vpop.f32.mrb[36].mxu0 }
 0x46b   : > { %v3646_v48 = vpop.f32.mrb[37].mxu0 }
 0x46c   : > { %v3648_v49 = vpop.f32.mrb[38].mxu0 }
 0x46d   : > { %v3650_v21 = vpop.f32.mrb[39].mxu0 }
 0x4dc   : > { %v3581_v18 = vpop.f32.mrb[0].mxu1 }
 0x4dd   : > { %v3582_v19 = vadd.f32 %v3581_v18, %v3446_v43  ;;  %v3583_v29 = vpop.f32.mrb[1].mxu1 }
 0x4de   : > { %v3584_v22 = vadd.f32 %v3583_v29, %v3446_v43  ;;  %v3585_v23 = vpop.f32.mrb[2].mxu1 }
 0x4df   : > { %v3635_v24 = vadd.f32 %v3634_v13, %v3582_v19  ;;  %v3586_v55 = vadd.f32 %v3585_v23, %v3451_v44  ;;  %v3587_v25 = vpop.f32.mrb[3].mxu1 }
 0x4e0   : > { %v3637_v9 = vadd.f32 %v3636_v14, %v3584_v22  ;;  %v3588_v26 = vadd.f32 %v3587_v25, %v3451_v44 }
 0x4e1   : > { %v3653_v31 = vmax.f32 %v3635_v24, 0.0  ;;  %v3639_v20 = vadd.f32 %v3638_v30, %v3586_v55 }
 0x4e2   : > { %v3654_v7 = vmax.f32 %v3637_v9, 0.0  ;;  %v3641_v36 = vadd.f32 %v3640_v4, %v3588_v26 }
 0x4e3   : > { %3661 = vst [vmem:[%s5637_s26] sm:$0xff] %v3653_v31  ;;  %v3655_v56 = vmax.f32 %v3639_v20, 0.0 }
 0x4e4   : > { %3662 = vst [vmem:[%s5637_s26 + $0x8] sm:$0xff] %v3654_v7  ;;  %v3656_v32 = vmax.f32 %v3641_v36, 0.0  ;;  %v3591_v38 = vpop.f32.mrb[4].mxu1 }
 0x4e5   : > { %3663 = vst [vmem:[%s5637_s26 + $0x10] sm:$0xff] %v3655_v56  ;;  %v3592_v0 = vadd.f32 %v3591_v38, %v3456_v37  ;;  %v3593_v47 = vpop.f32.mrb[5].mxu1 }
 0x4e6   : > { %3664 = vst [vmem:[%s5637_s26 + $0x18] sm:$0xff] %v3656_v32  ;;  %v3594_v35 = vadd.f32 %v3593_v47, %v3456_v37  ;;  %v3595_v39 = vpop.f32.mrb[6].mxu1 }
 0x4e7   : > { %v3645_v41 = vadd.f32 %v3644_v17, %v3592_v0  ;;  %v3596_v15 = vadd.f32 %v3595_v39, %v3461_v40  ;;  %v3597_v45 = vpop.f32.mrb[7].mxu1 }
 0x4e8   : > { %v3647_v16 = vadd.f32 %v3646_v48, %v3594_v35  ;;  %v3598_v57 = vadd.f32 %v3597_v45, %v3461_v40 }
 0x4e9   : > { %v3657_v46 = vmax.f32 %v3645_v41, 0.0  ;;  %v3649_v34 = vadd.f32 %v3648_v49, %v3596_v15 }
 0x4ea   : > { %v3658_v28 = vmax.f32 %v3647_v16, 0.0  ;;  %v3651_v53 = vadd.f32 %v3650_v21, %v3598_v57 }
 0x4eb   : > { %3665 = vst [vmem:[%s5637_s26 + $0x20] sm:$0xff] %v3657_v46  ;;  %v3659_v52 = vmax.f32 %v3649_v34, 0.0 }
 0x4ec   : > { %3666 = vst [vmem:[%s5637_s26 + $0x28] sm:$0xff] %v3658_v28  ;;  %v3660_v54 = vmax.f32 %v3651_v53, 0.0 }
 0x4ed   : > { %3667 = vst [vmem:[%s5637_s26 + $0x30] sm:$0xff] %v3659_v52 }
 0x4ee   : > { %3668 = vst [vmem:[%s5637_s26 + $0x38] sm:$0xff] %v3660_v54 }
 0x4ef PF: > { %s15_s18 = sadd.s32 1, %s3963_s18  }
 0x4f0   : > { %p12_p4 = scmp.ge.s32.totalorder %s15_s18, 4  }
 0x4f2   :  { %14 = sbr.rel (!%p12_p4) target bundleno = 1 (0x1), region = 76 }

</bundles_post_ra>
